<compile_context>
chip_gen: v5e
topology: v5e:2x2
jax: 0.10.0
libtpu: 0.0.40
codegen_flags: <defaults>
</compile_context>

<pallas_src>
import functools

import jax
import jax.numpy as jnp
from jax.experimental import pallas as pl
from jax.experimental.pallas import tpu as pltpu

# ---------------------------------------------------------------------------
# Example hyper-parameters (consistent with how the parent VAE uses this block:
# in_size = flattened reduced latent maps, n_features = VAE latent width).
# ---------------------------------------------------------------------------
BATCH = 256
IN_SIZE = 1024
N_FEATURES = 128
OUT_SIZE = 1024


def _round_up(x, m):
    return (x + m - 1) // m * m


# ---------------------------------------------------------------------------
# Fused kernel: one batch tile per grid step.
#   dense1 (MXU, bf16 in / f32 acc) -> +bias -> split -> reparameterize (VPU/EUP,
#   f32) -> dense2 (MXU) -> +bias.  Everything stays in VMEM/vregs for the tile.
# ---------------------------------------------------------------------------
def _vb_kernel(x_ref, w1_ref, b1_ref, w2_ref, b2_ref, eps_ref,
               out_ref, mu_ref, lv_ref, z_ref, *, n_features):
    # dense1: (tb, in) @ (in, 2F), f32 accumulation on the MXU.
    d1 = jnp.dot(x_ref[...], w1_ref[...], preferred_element_type=jnp.float32)
    d1 = d1 + b1_ref[...]

    # torch.split(x, n_features, dim=1) — 128-aligned static lane slices.
    mu = d1[:, :n_features]
    logvar = d1[:, n_features:]

    # reparameterize: mu + eps * exp(0.5 * logvar)   (f32 epilogue; exp rides the EUP)
    z = mu + eps_ref[...] * jnp.exp(0.5 * logvar)

    # dense2: (tb, F) @ (F, out), bf16 MXU inputs, f32 accumulation.
    out = jnp.dot(z.astype(w2_ref.dtype), w2_ref[...],
                  preferred_element_type=jnp.float32)
    out = out + b2_ref[...]

    out_ref[...] = out
    mu_ref[...] = mu
    lv_ref[...] = logvar
    z_ref[...] = z


def variational_block(x, w1, b1, w2, b2, eps, *, return_parameters=False, tb=128):
    """Forward pass of VariationalBlock.

    x:   (B, in_size) f32
    w1:  (2*n_features, in_size), b1: (2*n_features,)     -- PyTorch nn.Linear layout
    w2:  (out_size, n_features),  b2: (out_size,)
    eps: (B, n_features) standard-normal noise (== torch.randn_like(std))
    """
    B, in_size = x.shape
    two_f = w1.shape[0]
    n_features = two_f // 2
    out_size = w2.shape[0]

    # bf16 storage / MXU inputs; biases, noise and all accumulation stay f32.
    x_b = x.astype(jnp.bfloat16)
    w1_t = w1.T.astype(jnp.bfloat16)            # (in, 2F)
    w2_t = w2.T.astype(jnp.bfloat16)            # (F, out)
    b1_r = b1.reshape(1, two_f).astype(jnp.float32)
    b2_r = b2.reshape(1, out_size).astype(jnp.float32)
    eps_f = eps.astype(jnp.float32)

    tb = min(tb, _round_up(B, 8))
    Bp = _round_up(B, tb)
    if Bp != B:
        x_b = jnp.pad(x_b, ((0, Bp - B), (0, 0)))
        eps_f = jnp.pad(eps_f, ((0, Bp - B), (0, 0)))

    row = lambda i: (i, 0)   # batch-tiled operands
    rep = lambda i: (0, 0)   # VMEM-resident (replicated) operands

    out_shapes = (
        jax.ShapeDtypeStruct((Bp, out_size), jnp.float32),
        jax.ShapeDtypeStruct((Bp, n_features), jnp.float32),
        jax.ShapeDtypeStruct((Bp, n_features), jnp.float32),
        jax.ShapeDtypeStruct((Bp, n_features), jnp.float32),
    )

    out, mu, logvar, z = pl.pallas_call(
        functools.partial(_vb_kernel, n_features=n_features),
        out_shape=out_shapes,
        grid=(Bp // tb,),
        in_specs=[
            pl.BlockSpec((tb, in_size), row),          # x tile
            pl.BlockSpec((in_size, two_f), rep),       # W1^T (full, in-register pad)
            pl.BlockSpec((1, two_f), rep),             # b1
            pl.BlockSpec((n_features, out_size), rep), # W2^T
            pl.BlockSpec((1, out_size), rep),          # b2
            pl.BlockSpec((tb, n_features), row),       # eps tile
        ],
        out_specs=(
            pl.BlockSpec((tb, out_size), row),
            pl.BlockSpec((tb, n_features), row),
            pl.BlockSpec((tb, n_features), row),
            pl.BlockSpec((tb, n_features), row),
        ),
        compiler_params=pltpu.CompilerParams(dimension_semantics=("parallel",)),
    )(x_b, w1_t, b1_r, w2_t, b2_r, eps_f)

    out, mu, logvar, z = out[:B], mu[:B], logvar[:B], z[:B]
    if return_parameters:
        return out, mu, logvar, z
    return out, mu, logvar


# ---------------------------------------------------------------------------
# Deterministic parameter init matching PyTorch nn.Linear defaults
# (uniform(-1/sqrt(fan_in), 1/sqrt(fan_in)) for both weight and bias).
# ---------------------------------------------------------------------------
def init_params(key, in_size, n_features, out_size):
    k1, k2, k3, k4 = jax.random.split(key, 4)
    b1_bound = 1.0 / (in_size ** 0.5)
    w1 = jax.random.uniform(k1, (2 * n_features, in_size), jnp.float32,
                            -b1_bound, b1_bound)
    b1 = jax.random.uniform(k2, (2 * n_features,), jnp.float32, -b1_bound, b1_bound)
    b2_bound = 1.0 / (n_features ** 0.5)
    w2 = jax.random.uniform(k3, (out_size, n_features), jnp.float32,
                            -b2_bound, b2_bound)
    b2 = jax.random.uniform(k4, (out_size,), jnp.float32, -b2_bound, b2_bound)
    return w1, b1, w2, b2


# ---------------------------------------------------------------------------
if __name__ == "__main__":
    key = jax.random.PRNGKey(0)
    pkey, xkey, ekey = jax.random.split(key, 3)
    w1, b1, w2, b2 = init_params(pkey, IN_SIZE, N_FEATURES, OUT_SIZE)
    x = jax.random.normal(xkey, (BATCH, IN_SIZE), jnp.float32)
    # TODO(synk): torch.randn_like draws from torch's stateful RNG; here the noise is
    # generated with jax.random.normal and passed in (same distribution, different seed).
    eps = jax.random.normal(ekey, (BATCH, N_FEATURES), jnp.float32)

    fwd = jax.jit(functools.partial(variational_block, return_parameters=False))
    out, mu, logvar = fwd(x, w1, b1, w2, b2, eps)
    jax.block_until_ready((out, mu, logvar))

    assert out.shape == (BATCH, OUT_SIZE), out.shape
    assert mu.shape == (BATCH, N_FEATURES), mu.shape
    assert logvar.shape == (BATCH, N_FEATURES), logvar.shape
    assert bool(jnp.all(jnp.isfinite(out)))
    assert bool(jnp.all(jnp.isfinite(mu)))
    assert bool(jnp.all(jnp.isfinite(logvar)))

    # Pure-JAX f32 reference of the same forward (loose tolerance: bf16 MXU inputs).
    d1_ref = x @ w1.T + b1
    mu_ref, lv_ref = d1_ref[:, :N_FEATURES], d1_ref[:, N_FEATURES:]
    z_ref = mu_ref + eps * jnp.exp(0.5 * lv_ref)
    out_ref = z_ref @ w2.T + b2
    assert float(jnp.max(jnp.abs(mu - mu_ref))) < 1e-1
    assert float(jnp.max(jnp.abs(logvar - lv_ref))) < 1e-1
    assert float(jnp.max(jnp.abs(out - out_ref))) < 5e-1

    print("KERNEL_OK")
</pallas_src>

<mosaic_0001>
module attributes {stable_mosaic.version = 11 : i64} {
  func.func @_vb_kernel(%arg0: i32, %arg1: memref<128x1024xbf16, #tpu.memory_space<vmem>>, %arg2: memref<1024x256xbf16, #tpu.memory_space<vmem>>, %arg3: memref<1x256xf32, #tpu.memory_space<vmem>>, %arg4: memref<128x1024xbf16, #tpu.memory_space<vmem>>, %arg5: memref<1x1024xf32, #tpu.memory_space<vmem>>, %arg6: memref<128x128xf32, #tpu.memory_space<vmem>>, %arg7: memref<128x1024xf32, #tpu.memory_space<vmem>>, %arg8: memref<128x128xf32, #tpu.memory_space<vmem>>, %arg9: memref<128x128xf32, #tpu.memory_space<vmem>>, %arg10: memref<128x128xf32, #tpu.memory_space<vmem>>) attributes {dimension_semantics = [#tpu.dimension_semantics<parallel>], iteration_bounds = array<i64: 2>, scalar_prefetch = 0 : i64, scratch_operands = 0 : i64, tpu.core_type = #tpu.core_type<tc>, window_params = [{transform_indices = @transform_0, window_bounds = array<i64: 128, 1024>}, {pipeline_mode = #tpu.pipeline_mode<synchronous>, transform_indices = @transform_1, window_bounds = array<i64: 1024, 256>}, {pipeline_mode = #tpu.pipeline_mode<synchronous>, transform_indices = @transform_2, window_bounds = array<i64: 1, 256>}, {pipeline_mode = #tpu.pipeline_mode<synchronous>, transform_indices = @transform_3, window_bounds = array<i64: 128, 1024>}, {pipeline_mode = #tpu.pipeline_mode<synchronous>, transform_indices = @transform_4, window_bounds = array<i64: 1, 1024>}, {transform_indices = @transform_5, window_bounds = array<i64: 128, 128>}, {transform_indices = @transform_6, window_bounds = array<i64: 128, 1024>}, {transform_indices = @transform_7, window_bounds = array<i64: 128, 128>}, {transform_indices = @transform_8, window_bounds = array<i64: 128, 128>}, {transform_indices = @transform_9, window_bounds = array<i64: 128, 128>}]} {
    %c0 = arith.constant 0 : index
    %c0_0 = arith.constant 0 : index
    %0 = vector.load %arg1[%c0, %c0_0] : memref<128x1024xbf16, #tpu.memory_space<vmem>>, vector<128x1024xbf16>
    %c0_1 = arith.constant 0 : index
    %c0_2 = arith.constant 0 : index
    %1 = vector.load %arg2[%c0_1, %c0_2] : memref<1024x256xbf16, #tpu.memory_space<vmem>>, vector<1024x256xbf16>
    %cst = arith.constant dense<0.000000e+00> : vector<128x256xf32>
    %2 = tpu.matmul %0, %1, %cst {dimension_numbers = #tpu.dot_dimension_numbers<[1], [0], [0], [1], [0, 0, 1, 1], [], []>} : vector<128x1024xbf16>, vector<1024x256xbf16>, vector<128x256xf32> -> vector<128x256xf32>
    %c0_3 = arith.constant 0 : index
    %c0_4 = arith.constant 0 : index
    %3 = vector.load %arg3[%c0_3, %c0_4] : memref<1x256xf32, #tpu.memory_space<vmem>>, vector<1x256xf32>
    %4 = vector.broadcast %3 : vector<1x256xf32> to vector<128x256xf32>
    %5 = arith.addf %2, %4 : vector<128x256xf32>
    %6 = vector.extract_strided_slice %5 {offsets = [0, 0], sizes = [128, 128], strides = [1, 1]} : vector<128x256xf32> to vector<128x128xf32>
    %7 = vector.extract_strided_slice %5 {offsets = [0, 128], sizes = [128, 128], strides = [1, 1]} : vector<128x256xf32> to vector<128x128xf32>
    %c0_5 = arith.constant 0 : index
    %c0_6 = arith.constant 0 : index
    %8 = vector.load %arg6[%c0_5, %c0_6] : memref<128x128xf32, #tpu.memory_space<vmem>>, vector<128x128xf32>
    %cst_7 = arith.constant 5.000000e-01 : f32
    %9 = vector.broadcast %cst_7 : f32 to vector<128x128xf32>
    %10 = arith.mulf %9, %7 : vector<128x128xf32>
    %11 = math.exp %10 : vector<128x128xf32>
    %12 = arith.mulf %8, %11 : vector<128x128xf32>
    %13 = arith.addf %6, %12 : vector<128x128xf32>
    %14 = arith.truncf %13 : vector<128x128xf32> to vector<128x128xbf16>
    %c0_8 = arith.constant 0 : index
    %c0_9 = arith.constant 0 : index
    %15 = vector.load %arg4[%c0_8, %c0_9] : memref<128x1024xbf16, #tpu.memory_space<vmem>>, vector<128x1024xbf16>
    %cst_10 = arith.constant dense<0.000000e+00> : vector<128x1024xf32>
    %16 = tpu.matmul %14, %15, %cst_10 {dimension_numbers = #tpu.dot_dimension_numbers<[1], [0], [0], [1], [0, 0, 1, 1], [], []>} : vector<128x128xbf16>, vector<128x1024xbf16>, vector<128x1024xf32> -> vector<128x1024xf32>
    %c0_11 = arith.constant 0 : index
    %c0_12 = arith.constant 0 : index
    %17 = vector.load %arg5[%c0_11, %c0_12] : memref<1x1024xf32, #tpu.memory_space<vmem>>, vector<1x1024xf32>
    %18 = vector.broadcast %17 : vector<1x1024xf32> to vector<128x1024xf32>
    %19 = arith.addf %16, %18 : vector<128x1024xf32>
    %c0_13 = arith.constant 0 : index
    %c0_14 = arith.constant 0 : index
    %20 = vector.load %arg7[%c0_13, %c0_14] : memref<128x1024xf32, #tpu.memory_space<vmem>>, vector<128x1024xf32>
    tpu.vector_store %arg7[%c0_13, %c0_14], %19 {strides = array<i32>} : memref<128x1024xf32, #tpu.memory_space<vmem>>, vector<128x1024xf32>,
    %c0_15 = arith.constant 0 : index
    %c0_16 = arith.constant 0 : index
    %21 = vector.load %arg8[%c0_15, %c0_16] : memref<128x128xf32, #tpu.memory_space<vmem>>, vector<128x128xf32>
    tpu.vector_store %arg8[%c0_15, %c0_16], %6 {strides = array<i32>} : memref<128x128xf32, #tpu.memory_space<vmem>>, vector<128x128xf32>,
    %c0_17 = arith.constant 0 : index
    %c0_18 = arith.constant 0 : index
    %22 = vector.load %arg9[%c0_17, %c0_18] : memref<128x128xf32, #tpu.memory_space<vmem>>, vector<128x128xf32>
    tpu.vector_store %arg9[%c0_17, %c0_18], %7 {strides = array<i32>} : memref<128x128xf32, #tpu.memory_space<vmem>>, vector<128x128xf32>,
    %c0_19 = arith.constant 0 : index
    %c0_20 = arith.constant 0 : index
    %23 = vector.load %arg10[%c0_19, %c0_20] : memref<128x128xf32, #tpu.memory_space<vmem>>, vector<128x128xf32>
    tpu.vector_store %arg10[%c0_19, %c0_20], %13 {strides = array<i32>} : memref<128x128xf32, #tpu.memory_space<vmem>>, vector<128x128xf32>,
    return
  }
  func.func @transform_0(%arg0: i32) -> (i32, i32) {
    %c0_i32 = arith.constant 0 : i32
    %c0_i32_0 = arith.constant 0 : i32
    return %arg0, %c0_i32 : i32, i32
  }
  func.func @transform_1(%arg0: i32) -> (i32, i32) {
    %c0_i32 = arith.constant 0 : i32
    %c0_i32_0 = arith.constant 0 : i32
    %c0_i32_1 = arith.constant 0 : i32
    return %c0_i32, %c0_i32_0 : i32, i32
  }
  func.func @transform_2(%arg0: i32) -> (i32, i32) {
    %c0_i32 = arith.constant 0 : i32
    %c0_i32_0 = arith.constant 0 : i32
    %c0_i32_1 = arith.constant 0 : i32
    return %c0_i32, %c0_i32_0 : i32, i32
  }
  func.func @transform_3(%arg0: i32) -> (i32, i32) {
    %c0_i32 = arith.constant 0 : i32
    %c0_i32_0 = arith.constant 0 : i32
    %c0_i32_1 = arith.constant 0 : i32
    return %c0_i32, %c0_i32_0 : i32, i32
  }
  func.func @transform_4(%arg0: i32) -> (i32, i32) {
    %c0_i32 = arith.constant 0 : i32
    %c0_i32_0 = arith.constant 0 : i32
    %c0_i32_1 = arith.constant 0 : i32
    return %c0_i32, %c0_i32_0 : i32, i32
  }
  func.func @transform_5(%arg0: i32) -> (i32, i32) {
    %c0_i32 = arith.constant 0 : i32
    %c0_i32_0 = arith.constant 0 : i32
    return %arg0, %c0_i32 : i32, i32
  }
  func.func @transform_6(%arg0: i32) -> (i32, i32) {
    %c0_i32 = arith.constant 0 : i32
    %c0_i32_0 = arith.constant 0 : i32
    return %arg0, %c0_i32 : i32, i32
  }
  func.func @transform_7(%arg0: i32) -> (i32, i32) {
    %c0_i32 = arith.constant 0 : i32
    %c0_i32_0 = arith.constant 0 : i32
    return %arg0, %c0_i32 : i32, i32
  }
  func.func @transform_8(%arg0: i32) -> (i32, i32) {
    %c0_i32 = arith.constant 0 : i32
    %c0_i32_0 = arith.constant 0 : i32
    return %arg0, %c0_i32 : i32, i32
  }
  func.func @transform_9(%arg0: i32) -> (i32, i32) {
    %c0_i32 = arith.constant 0 : i32
    %c0_i32_0 = arith.constant 0 : i32
    return %arg0, %c0_i32 : i32, i32
  }
}

</mosaic_0001>

<bundles_post_ra>
// kernel: variational_block.1
= control target key start
LH: loop header
LB: loop body
LE: loop exit
PB: predicated region body
PF: predicated region fallthrough
CT: control target
= control target key end

     0   :  { %s7635_s0 = inlined_call_operand.vmem [shape: bf16[256,1024], index: 0, kind: input, shape index: {}]   ;;  %s7636_s1 = inlined_call_operand.vmem [shape: bf16[1024,256], index: 1, kind: input, shape index: {}]   ;;  %s7637_s2 = inlined_call_operand.vmem [shape: f32[1,256], index: 2, kind: input, shape index: {}]   ;;  %s7638_s3 = inlined_call_operand.vmem [shape: bf16[128,1024], index: 3, kind: input, shape index: {}]   ;;  %s7639_s4 = inlined_call_operand.vmem [shape: f32[1,1024], index: 4, kind: input, shape index: {}]   ;;  %s7640_s5 = inlined_call_operand.vmem [shape: f32[256,128], index: 5, kind: input, shape index: {}]   ;;  %s7641_s6 = inlined_call_operand.hbm [shape: f32[256,1024], index: 6, kind: output, shape index: {0}]   ;;  %s7642_s7 = inlined_call_operand.hbm [shape: f32[256,128], index: 7, kind: output, shape index: {1}]   ;;  %s7643_s8 = inlined_call_operand.hbm [shape: f32[256,128], index: 8, kind: output, shape index: {2}]   ;;  %s7644_s9 = inlined_call_operand.hbm [shape: f32[256,128], index: 9, kind: output, shape index: {3}]  }
   0x1   :  { %7679 = sst [smem:[#allocation46_spill]] %s7635_s0 }
   0x2   :  { %7680 = sst [smem:[#allocation47_spill]] %s7636_s1 }
   0x3   :  { %7681 = sst [smem:[#allocation48_spill]] %s7637_s2 }
   0x4   :  { %7682 = sst [smem:[#allocation49_spill]] %s7638_s3 }
   0x5   :  { %7683 = sst [smem:[#allocation50_spill]] %s7639_s4 }
   0x6   :  { %7684 = sst [smem:[#allocation51_spill]] %s7640_s5 }
   0x7   :  { %15 = vsyncpa [#allocation3], 0 }
   0x8   :  { %17 = vsyncpa [#allocation3 + $0x1], 0 }
   0x9   :  { %18 = vsyncpa [#allocation5], 0 }
   0xa   :  { %20 = vsyncpa [#allocation5 + $0x1], 0 }
   0xb   :  { %21 = vsyncpa [#allocation8], 0 }
   0xc   :  { %23 = vsyncpa [#allocation8 + $0x1], 0  ;;  %s5290_s30 = smov 0   ;;  %s5292_s10 = smov 0  }
   0xd   :  { %s5294_s11 = smov 0   ;;  %s5296_s12 = smov 0  }
   0xe LB: > { %s5311_s13 = sadd.s32 4294967295, %s5234_s12   ;;  %s7645_s14 = sadd.s32 4294967294, %s5234_s12   ;;  %s5234_s12 = sphi %s5296_s12, %s7765_s12   ;;  %s5230_s11 = sphi %s5294_s11, %s7764_s11   ;;  %s5226_s10 = sphi %s5292_s10, %s7763_s10   ;;  %s5222_s30 = sphi %s5290_s30, %s7762_s30  }
   0xf   : > { %s5315_s15 = sadd.s32 1, %s5234_s12   ;;  %s172_s16 = sadd.s32 1, %s5230_s11 }
  0x10   : > { %s169_s17 = ssub.s32 %s5234_s12, %s5315_s15  ;;  %p182_p0 = scmp.ne.s32.totalorder %s5230_s11, %s5226_s10 }
  0x11   : > { %p170_p1 = scmp.eq.s32.totalorder %s169_s17, 0  ;;  %p183_p2 = scmp.eq.s32.totalorder %s5311_s13, 1 }
  0x12   : > { %p188_p3 = scmp.ne.s32.totalorder %s5226_s10, %s5222_s30  ;;  %p189_p4 = scmp.eq.s32.totalorder %s7645_s14, 1 }
  0x13   : > { %s5328_s18 = scalar_select %p170_p1, %s5230_s11, %s172_s16  }
  0x14   : > { %p5330_p5 = por %p183_p2, %p182_p0  ;;  %p5334_p6 = por %p189_p4, %p188_p3 }
  0x15   : > { %7685 = sst [smem:[#allocation12_spill]] %s5328_s18  ;;  %p3662_p7 = scmp.ge.s32.totalorder %s5234_s12, 1 }
  0x16   : > { %p316_p8 = scmp.lt.s32.totalorder %s5234_s12, 3 }
  0x18   : > { %p317_p9 = pnand %p3662_p7, %p316_p8 }
  0x1a   : > { %320 = sbr.rel (%p317_p9) target bundleno = 1017 (0x3f9), region = 44 }
  0x1f   : > { %s7688_s1 = sld [smem:[#allocation47_spill]]  ;;  %s3667_s16 = sshll.u32 %s5311_s13, 4 }
  0x20   : > { %p374_p10 = scmp.lt.s32.totalorder %s3667_s16, 31  ;;  %s7689_s0 = sld [smem:[#allocation46_spill]] }
  0x21   : > { %s7695_s2 = sld [smem:[#allocation48_spill]]  ;;  %s6345_s23 = sand.u32 1, %s5226_s10  }
  0x22   : > { %s7767_s16 = smov (!%p374_p10, %s3667_s16), 31  ;;  %s6354_s24 = sshll.u32 %s6345_s23, 7 }
  0x23   : > { %s4711_s17 = sshll.u32 %s7767_s16, 5  ;;  %s6377_s28 = scalar_lea.vmem [#allocation4], %s6354_s24 }
  0x24   : > { %s7733_s3 = sld [smem:[#allocation49_spill]]  ;;  %s6863_s22 = scalar_lea.vmem [#allocation6], %s6354_s24 }
  0x25   : > { %v3986_v0 = vld [vmem:[%s7688_s1 + $0x70] sm:$0xf]  ;;  %v4791_v1 = vld [vmem:[%s7688_s1 + $0x74] sm:$0xf0]  ;;  %v3978_v11 = vld [vmem:[%s7688_s1 + $0x60] sm:$0xf] }
  0x26   : > { %v4050_v2 = vld [vmem:[%s7688_s1 + $0xf0] sm:$0xf]  ;;  %v3987_v3 = vor.u32 %v4791_v1, %v3986_v0  ;;  %v4807_v4 = vld [vmem:[%s7688_s1 + $0xf4] sm:$0xf0]  ;;  %v4789_v13 = vld [vmem:[%s7688_s1 + $0x64] sm:$0xf0]  ;;  %s5545_s26 = scalar_lea.vmem %s7689_s0, %s4711_s17 }
  0x27   : > { %v4114_v5 = vld [vmem:[%s7688_s1 + $0x170] sm:$0xf]  ;;  %v4823_v6 = vld [vmem:[%s7688_s1 + $0x174] sm:$0xf0]  ;;  %v4051_v7 = vor.u32 %v4807_v4, %v4050_v2  ;;  %v4042_v14 = vld [vmem:[%s7688_s1 + $0xe0] sm:$0xf]  ;;  %v3979_v16 = vor.u32 %v4789_v13, %v3978_v11 }
  0x28   : > { %v4115_v8 = vor.u32 %v4823_v6, %v4114_v5  ;;  %v4178_v9 = vld [vmem:[%s7688_s1 + $0x1f0] sm:$0xf]  ;;  %v4839_v10 = vld [vmem:[%s7688_s1 + $0x1f4] sm:$0xf0]  ;;  %1548 = vmatpush.bf16.msra.mxu0 %v3987_v3  ;;  %v4805_v15 = vld [vmem:[%s7688_s1 + $0xe4] sm:$0xf0] }
  0x29   : > { %v4179_v12 = vor.u32 %v4839_v10, %v4178_v9  ;;  %1597 = vmatpush.bf16.msra.mxu1 %v4051_v7  ;;  %v4043_v17 = vor.u32 %v4805_v15, %v4042_v14  ;;  %v4106_v18 = vld [vmem:[%s7688_s1 + $0x160] sm:$0xf]  ;;  %v4821_v19 = vld [vmem:[%s7688_s1 + $0x164] sm:$0xf0]  ;;  %v3970_v23 = vld [vmem:[%s7688_s1 + $0x50] sm:$0xf] }
  0x2a   : > { %1646 = vmatpush.bf16.msra.mxu2 %v4115_v8  ;;  %v4170_v20 = vld [vmem:[%s7688_s1 + $0x1e0] sm:$0xf]  ;;  %v4107_v21 = vor.u32 %v4821_v19, %v4106_v18  ;;  %v4837_v22 = vld [vmem:[%s7688_s1 + $0x1e4] sm:$0xf0]  ;;  %v4787_v24 = vld [vmem:[%s7688_s1 + $0x54] sm:$0xf0] }
  0x2b   : > { %1695 = vmatpush.bf16.msra.mxu3 %v4179_v12  ;;  %v4171_v25 = vor.u32 %v4837_v22, %v4170_v20  ;;  %v4034_v26 = vld [vmem:[%s7688_s1 + $0xd0] sm:$0xf]  ;;  %v4803_v27 = vld [vmem:[%s7688_s1 + $0xd4] sm:$0xf0]  ;;  %v3971_v29 = vor.u32 %v4787_v24, %v3970_v23  ;;  %v3962_v35 = vld [vmem:[%s7688_s1 + $0x40] sm:$0xf] }
  0x2c   : > { %v4098_v28 = vld [vmem:[%s7688_s1 + $0x150] sm:$0xf]  ;;  %1549 = vmatpush.bf16.msra.mxu0 %v3979_v16  ;;  %v4819_v30 = vld [vmem:[%s7688_s1 + $0x154] sm:$0xf0]  ;;  %v4035_v33 = vor.u32 %v4803_v27, %v4034_v26  ;;  %v4785_v36 = vld [vmem:[%s7688_s1 + $0x44] sm:$0xf0] }
  0x2d   : > { %v4162_v31 = vld [vmem:[%s7688_s1 + $0x1d0] sm:$0xf]  ;;  %v4835_v32 = vld [vmem:[%s7688_s1 + $0x1d4] sm:$0xf0]  ;;  %1598 = vmatpush.bf16.msra.mxu1 %v4043_v17  ;;  %v4099_v34 = vor.u32 %v4819_v30, %v4098_v28  ;;  %v4026_v37 = vld [vmem:[%s7688_s1 + $0xc0] sm:$0xf]  ;;  %v3963_v44 = vor.u32 %v4785_v36, %v3962_v35 }
  0x2e   : > { %1647 = vmatpush.bf16.msra.mxu2 %v4107_v21  ;;  %v4163_v38 = vor.u32 %v4835_v32, %v4162_v31  ;;  %v4801_v39 = vld [vmem:[%s7688_s1 + $0xc4] sm:$0xf0]  ;;  %v4090_v40 = vld [vmem:[%s7688_s1 + $0x140] sm:$0xf]  ;;  %v3954_v47 = vld [vmem:[%s7688_s1 + $0x30] sm:$0xf] }
  0x2f   : > { %1696 = vmatpush.bf16.msra.mxu3 %v4171_v25  ;;  %v4817_v41 = vld [vmem:[%s7688_s1 + $0x144] sm:$0xf0]  ;;  %v4154_v42 = vld [vmem:[%s7688_s1 + $0x1c0] sm:$0xf]  ;;  %v4027_v45 = vor.u32 %v4801_v39, %v4026_v37  ;;  %v4783_v48 = vld [vmem:[%s7688_s1 + $0x34] sm:$0xf0] }
  0x30   : > { %v4833_v43 = vld [vmem:[%s7688_s1 + $0x1c4] sm:$0xf0]  ;;  %1550 = vmatpush.bf16.msra.mxu0 %v3971_v29  ;;  %v4091_v46 = vor.u32 %v4817_v41, %v4090_v40  ;;  %v4018_v49 = vld [vmem:[%s7688_s1 + $0xb0] sm:$0xf]  ;;  %v4799_v51 = vld [vmem:[%s7688_s1 + $0xb4] sm:$0xf0]  ;;  %v3955_v56 = vor.u32 %v4783_v48, %v3954_v47 }
  0x31   : > { %1599 = vmatpush.bf16.msra.mxu1 %v4035_v33  ;;  %v4155_v50 = vor.u32 %v4833_v43, %v4154_v42  ;;  %v4082_v52 = vld [vmem:[%s7688_s1 + $0x130] sm:$0xf]  ;;  %v4815_v53 = vld [vmem:[%s7688_s1 + $0x134] sm:$0xf0]  ;;  %v4019_v57 = vor.u32 %v4799_v51, %v4018_v49  ;;  %v3946_v59 = vld [vmem:[%s7688_s1 + $0x20] sm:$0xf] }
  0x32   : > { %1648 = vmatpush.bf16.msra.mxu2 %v4099_v34  ;;  %v4146_v54 = vld [vmem:[%s7688_s1 + $0x1b0] sm:$0xf]  ;;  %v4831_v55 = vld [vmem:[%s7688_s1 + $0x1b4] sm:$0xf0]  ;;  %v4083_v58 = vor.u32 %v4815_v53, %v4082_v52  ;;  %v4781_v60 = vld [vmem:[%s7688_s1 + $0x24] sm:$0xf0] }
  0x33   : > { %1697 = vmatpush.bf16.msra.mxu3 %v4163_v38  ;;  %v4010_v61 = vld [vmem:[%s7688_s1 + $0xa0] sm:$0xf]  ;;  %v4147_v62 = vor.u32 %v4831_v55, %v4146_v54  ;;  %v4797_v63 = vld [vmem:[%s7688_s1 + $0xa4] sm:$0xf0]  ;;  %v3947_v4 = vor.u32 %v4781_v60, %v3946_v59  ;;  %v3938_v5 = vld [vmem:[%s7688_s1 + $0x10] sm:$0xf] }
  0x34   : > { %1551 = vmatpush.bf16.msra.mxu0 %v3963_v44  ;;  %v4074_v0 = vld [vmem:[%s7688_s1 + $0x120] sm:$0xf]  ;;  %v4813_v1 = vld [vmem:[%s7688_s1 + $0x124] sm:$0xf0]  ;;  %v4011_v6 = vor.u32 %v4797_v63, %v4010_v61  ;;  %v4779_v8 = vld [vmem:[%s7688_s1 + $0x14] sm:$0xf0] }
  0x35   : > { %1600 = vmatpush.bf16.msra.mxu1 %v4027_v45  ;;  %v4138_v2 = vld [vmem:[%s7688_s1 + $0x1a0] sm:$0xf]  ;;  %v4829_v3 = vld [vmem:[%s7688_s1 + $0x1a4] sm:$0xf0]  ;;  %v4075_v7 = vor.u32 %v4813_v1, %v4074_v0  ;;  %v4002_v9 = vld [vmem:[%s7688_s1 + $0x90] sm:$0xf]  ;;  %v3939_v16 = vor.u32 %v4779_v8, %v3938_v5 }
  0x36   : > { %1649 = vmatpush.bf16.msra.mxu2 %v4091_v46  ;;  %v4795_v10 = vld [vmem:[%s7688_s1 + $0x94] sm:$0xf0]  ;;  %v4139_v11 = vor.u32 %v4829_v3, %v4138_v2  ;;  %v4066_v12 = vld [vmem:[%s7688_s1 + $0x110] sm:$0xf]  ;;  %v3930_v17 = vld [vmem:[%s7688_s1] sm:$0xf] }
  0x37   : > { %1698 = vmatpush.bf16.msra.mxu3 %v4155_v50  ;;  %v4811_v13 = vld [vmem:[%s7688_s1 + $0x114] sm:$0xf0]  ;;  %v4130_v14 = vld [vmem:[%s7688_s1 + $0x190] sm:$0xf]  ;;  %v4777_v18 = vld [vmem:[%s7688_s1 + $0x4] sm:$0xf0]  ;;  %v4003_v20 = vor.u32 %v4795_v10, %v4002_v9 }
  0x38   : > { %1552 = vmatpush.bf16.msra.mxu0 %v3955_v56  ;;  %v4827_v15 = vld [vmem:[%s7688_s1 + $0x194] sm:$0xf0]  ;;  %v3994_v19 = vld [vmem:[%s7688_s1 + $0x80] sm:$0xf]  ;;  %v4067_v21 = vor.u32 %v4811_v13, %v4066_v12  ;;  %v4793_v22 = vld [vmem:[%s7688_s1 + $0x84] sm:$0xf0]  ;;  %v3931_v30 = vor.u32 %v4777_v18, %v3930_v17 }
  0x39   : > { %1601 = vmatpush.bf16.msra.mxu1 %v4019_v57  ;;  %v4058_v23 = vld [vmem:[%s7688_s1 + $0x100] sm:$0xf]  ;;  %v4131_v24 = vor.u32 %v4827_v15, %v4130_v14  ;;  %v4809_v25 = vld [vmem:[%s7688_s1 + $0x104] sm:$0xf0]  ;;  %v4370_v28 = vld [vmem:[%s7688_s1 + $0x370] sm:$0xf]  ;;  %v3995_v35 = vor.u32 %v4793_v22, %v3994_v19 }
  0x3a   : > { %1650 = vmatpush.bf16.msra.mxu2 %v4083_v58  ;;  %v4122_v26 = vld [vmem:[%s7688_s1 + $0x180] sm:$0xf]  ;;  %v4825_v27 = vld [vmem:[%s7688_s1 + $0x184] sm:$0xf0]  ;;  %v4887_v29 = vld [vmem:[%s7688_s1 + $0x374] sm:$0xf0]  ;;  %v4059_v36 = vor.u32 %v4809_v25, %v4058_v23 }
  0x3b   : > { %1699 = vmatpush.bf16.msra.mxu3 %v4147_v62  ;;  %v4242_v31 = vld [vmem:[%s7688_s1 + $0x270] sm:$0xf]  ;;  %v4855_v32 = vld [vmem:[%s7688_s1 + $0x274] sm:$0xf0]  ;;  %v3674_v37 = vld [vmem:[%s5545_s26] sm:$0xf]  ;;  %v4123_v43 = vor.u32 %v4825_v27, %v4122_v26  ;;  %v4371_v47 = vor.u32 %v4887_v29, %v4370_v28 }
  0x3c   : > { %1553 = vmatpush.bf16.msra.mxu0 %v3947_v4  ;;  %v4434_v33 = vld [vmem:[%s7688_s1 + $0x3f0] sm:$0xf]  ;;  %v4903_v34 = vld [vmem:[%s7688_s1 + $0x3f4] sm:$0xf0]  ;;  %v4716_v38 = vld [vmem:[%s5545_s26 + $0x1c] sm:$0xf0]  ;;  %v4243_v58 = vor.u32 %v4855_v32, %v4242_v31 }
  0x3d   : > { %1602 = vmatpush.bf16.msra.mxu1 %v4011_v6  ;;  %v4712_v39 = vld [vmem:[%s5545_s26 + $0x4] sm:$0xf]  ;;  %v4306_v40 = vld [vmem:[%s7688_s1 + $0x2f0] sm:$0xf]  ;;  %v4871_v41 = vld [vmem:[%s7688_s1 + $0x2f4] sm:$0xf0]  ;;  %v5574_v48 = vor.u32 %v4716_v38, %v3674_v37  ;;  %v4435_v51 = vor.u32 %v4903_v34, %v4434_v33 }
  0x3e   : > { %1651 = vmatpush.bf16.msra.mxu2 %v4075_v7  ;;  %v4362_v42 = vld [vmem:[%s7688_s1 + $0x360] sm:$0xf]  ;;  %v3676_v44 = vld [vmem:[%s5545_s26 + $0x20] sm:$0xf0]  ;;  %v3682_v45 = vld [vmem:[%s5545_s26 + $0x8] sm:$0xf]  ;;  %v4307_v59 = vor.u32 %v4871_v41, %v4306_v40 }
  0x3f   : > { %1700 = vmatpush.bf16.msra.mxu3 %v4139_v11  ;;  %v4717_v46 = vld [vmem:[%s5545_s26 + $0x24] sm:$0xf0]  ;;  %v4713_v49 = vld [vmem:[%s5545_s26 + $0xc] sm:$0xf]  ;;  %v5581_v53 = vor.u32 %v4712_v39, %v3676_v44  ;;  %v4426_v55 = vld [vmem:[%s7688_s1 + $0x3e0] sm:$0xf] }
  0x40   : > { %1554 = vmatpush.bf16.msra.mxu0 %v3939_v16  ;;  %v3684_v50 = vld [vmem:[%s5545_s26 + $0x28] sm:$0xf0]  ;;  %v4885_v52 = vld [vmem:[%s7688_s1 + $0x364] sm:$0xf0]  ;;  %v5583_v54 = vor.u32 %v4717_v46, %v3682_v45  ;;  %v4234_v61 = vld [vmem:[%s7688_s1 + $0x260] sm:$0xf] }
  0x41   : > { %1603 = vmatpush.bf16.msra.mxu1 %v4003_v20  ;;  %v4901_v56 = vld [vmem:[%s7688_s1 + $0x3e4] sm:$0xf0]  ;;  %v5591_v57 = vor.u32 %v4713_v49, %v3684_v50  ;;  %v4363_v60 = vor.u32 %v4885_v52, %v4362_v42  ;;  %v4298_v0 = vld [vmem:[%s7688_s1 + $0x2e0] sm:$0xf]  ;;  %v4354_v3 = vld [vmem:[%s7688_s1 + $0x350] sm:$0xf] }
  0x42   : > { %1652 = vmatpush.bf16.msra.mxu2 %v4067_v21  ;;  %v4853_v62 = vld [vmem:[%s7688_s1 + $0x264] sm:$0xf0]  ;;  %v4427_v63 = vor.u32 %v4901_v56, %v4426_v55  ;;  %v4883_v4 = vld [vmem:[%s7688_s1 + $0x354] sm:$0xf0]  ;;  %v4226_v5 = vld [vmem:[%s7688_s1 + $0x250] sm:$0xf] }
  0x43   : > { %1701 = vmatpush.bf16.msra.mxu3 %v4131_v24  ;;  %v4869_v1 = vld [vmem:[%s7688_s1 + $0x2e4] sm:$0xf0]  ;;  %v4235_v2 = vor.u32 %v4853_v62, %v4234_v61  ;;  %v4355_v7 = vor.u32 %v4883_v4, %v4354_v3  ;;  %v4851_v8 = vld [vmem:[%s7688_s1 + $0x254] sm:$0xf0]  ;;  %v4418_v9 = vld [vmem:[%s7688_s1 + $0x3d0] sm:$0xf] }
  0x44   : > { %1555 = vmatpush.bf16.msra.mxu0 %v3931_v30  ;;  %v4299_v6 = vor.u32 %v4869_v1, %v4298_v0  ;;  %v4899_v10 = vld [vmem:[%s7688_s1 + $0x3d4] sm:$0xf0]  ;;  %v4290_v12 = vld [vmem:[%s7688_s1 + $0x2d0] sm:$0xf]  ;;  %v4227_v14 = vor.u32 %v4851_v8, %v4226_v5  ;;  %v3706_v16 = vld [vmem:[%s5545_s26 + $0x40] sm:$0xf] }
  0x45   : > { %1604 = vmatpush.bf16.msra.mxu1 %v3995_v35  ;;  %v4419_v11 = vor.u32 %v4899_v10, %v4418_v9  ;;  %v4867_v13 = vld [vmem:[%s7688_s1 + $0x2d4] sm:$0xf0]  ;;  %v4724_v17 = vld [vmem:[%s5545_s26 + $0x5c] sm:$0xf0]  ;;  %v4720_v18 = vld [vmem:[%s5545_s26 + $0x44] sm:$0xf] }
  0x46   : > { %1653 = vmatpush.bf16.msra.mxu2 %v4059_v36  ;;  %v4291_v15 = vor.u32 %v4867_v13, %v4290_v12  ;;  %v3708_v19 = vld [vmem:[%s5545_s26 + $0x60] sm:$0xf0]  ;;  %v3714_v20 = vld [vmem:[%s5545_s26 + $0x48] sm:$0xf]  ;;  %v4721_v22 = vld [vmem:[%s5545_s26 + $0x4c] sm:$0xf]  ;;  %v5641_v24 = vor.u32 %v4724_v17, %v3706_v16 }
  0x47   : > { %1702 = vmatpush.bf16.msra.mxu3 %v4123_v43  ;;  %1556 = vmatmul.bf16.vlgmr.msra.gmra.mxu0 %v5574_v48  ;;  %v4725_v21 = vld [vmem:[%s5545_s26 + $0x64] sm:$0xf0]  ;;  %v3716_v23 = vld [vmem:[%s5545_s26 + $0x68] sm:$0xf0]  ;;  %v5643_v25 = vor.u32 %v4720_v18, %v3708_v19  ;;  %v4346_v28 = vld [vmem:[%s7688_s1 + $0x340] sm:$0xf] }
  0x48   : > { %1605 = vmatmul.bf16.vlgmr.msra.gmra.mxu1 %v5581_v53  ;;  %1744 = vmatpush.bf16.msrb.mxu0 %v4243_v58  ;;  %v5645_v26 = vor.u32 %v4725_v21, %v3714_v20  ;;  %v5647_v27 = vor.u32 %v4721_v22, %v3716_v23  ;;  %v4881_v29 = vld [vmem:[%s7688_s1 + $0x344] sm:$0xf0]  ;;  %v4218_v30 = vld [vmem:[%s7688_s1 + $0x240] sm:$0xf]  ;;  %v4728_v42 = vld [vmem:[%s5545_s26 + $0x84] sm:$0xf] }
  0x49   : > { %1654 = vmatmul.bf16.vlgmr.msra.gmra.mxu2 %v5583_v54  ;;  %1793 = vmatpush.bf16.msrb.mxu1 %v4307_v59  ;;  %v4347_v31 = vor.u32 %v4881_v29, %v4346_v28  ;;  %v4849_v32 = vld [vmem:[%s7688_s1 + $0x244] sm:$0xf0]  ;;  %v4410_v33 = vld [vmem:[%s7688_s1 + $0x3c0] sm:$0xf]  ;;  %v3740_v43 = vld [vmem:[%s5545_s26 + $0xa0] sm:$0xf0] }
  0x4a   : > { %1842 = vmatpush.bf16.msrb.mxu2 %v4371_v47  ;;  %1703 = vmatmul.bf16.vlgmr.msra.gmra.mxu3 %v5591_v57  ;;  %v4897_v34 = vld [vmem:[%s7688_s1 + $0x3c4] sm:$0xf0]  ;;  %v4219_v35 = vor.u32 %v4849_v32, %v4218_v30  ;;  %v4282_v37 = vld [vmem:[%s7688_s1 + $0x2c0] sm:$0xf]  ;;  %v4729_v46 = vld [vmem:[%s5545_s26 + $0x8c] sm:$0xf]  ;;  %v5687_v50 = vor.u32 %v4728_v42, %v3740_v43 }
  0x4b   : > { %1891 = vmatpush.bf16.msrb.mxu3 %v4435_v51  ;;  %v4411_v36 = vor.u32 %v4897_v34, %v4410_v33  ;;  %v4865_v38 = vld [vmem:[%s7688_s1 + $0x2c4] sm:$0xf0]  ;;  %v3738_v40 = vld [vmem:[%s5545_s26 + $0x80] sm:$0xf]  ;;  %v3748_v47 = vld [vmem:[%s5545_s26 + $0xa8] sm:$0xf0] }
  0x4c   : > { %1745 = vmatpush.bf16.msrb.mxu0 %v4235_v2  ;;  %v4283_v39 = vor.u32 %v4865_v38, %v4282_v37  ;;  %v4732_v41 = vld [vmem:[%s5545_s26 + $0x9c] sm:$0xf0]  ;;  %v3746_v44 = vld [vmem:[%s5545_s26 + $0x88] sm:$0xf]  ;;  %v5691_v52 = vor.u32 %v4729_v46, %v3748_v47  ;;  %v4338_v55 = vld [vmem:[%s7688_s1 + $0x330] sm:$0xf] }
  0x4d   : > { %1794 = vmatpush.bf16.msrb.mxu1 %v4299_v6  ;;  %v4733_v45 = vld [vmem:[%s5545_s26 + $0xa4] sm:$0xf0]  ;;  %v5685_v49 = vor.u32 %v4732_v41, %v3738_v40  ;;  %v4879_v56 = vld [vmem:[%s7688_s1 + $0x334] sm:$0xf0]  ;;  %v4210_v58 = vld [vmem:[%s7688_s1 + $0x230] sm:$0xf] }
  0x4e   : > { %1843 = vmatpush.bf16.msrb.mxu2 %v4363_v60  ;;  %v5689_v51 = vor.u32 %v4733_v45, %v3746_v44  ;;  %v4339_v59 = vor.u32 %v4879_v56, %v4338_v55  ;;  %v4847_v60 = vld [vmem:[%s7688_s1 + $0x234] sm:$0xf0]  ;;  %v4402_v61 = vld [vmem:[%s7688_s1 + $0x3b0] sm:$0xf]  ;;  %v3770_v4 = vld [vmem:[%s5545_s26 + $0xc0] sm:$0xf] }
  0x4f   : > { %1892 = vmatpush.bf16.msrb.mxu3 %v4427_v63  ;;  %v4895_v62 = vld [vmem:[%s7688_s1 + $0x3b4] sm:$0xf0]  ;;  %v4211_v63 = vor.u32 %v4847_v60, %v4210_v58  ;;  %v4274_v1 = vld [vmem:[%s7688_s1 + $0x2b0] sm:$0xf]  ;;  %v4740_v5 = vld [vmem:[%s5545_s26 + $0xdc] sm:$0xf0] }
  0x50   : > { %1746 = vmatpush.bf16.msrb.mxu0 %v4227_v14  ;;  %v4403_v0 = vor.u32 %v4895_v62, %v4402_v61  ;;  %v4863_v2 = vld [vmem:[%s7688_s1 + $0x2b4] sm:$0xf0]  ;;  %v4736_v6 = vld [vmem:[%s5545_s26 + $0xc4] sm:$0xf]  ;;  %v3778_v8 = vld [vmem:[%s5545_s26 + $0xc8] sm:$0xf]  ;;  %v5729_v12 = vor.u32 %v4740_v5, %v3770_v4 }
  0x51   : > { %1795 = vmatpush.bf16.msrb.mxu1 %v4291_v15  ;;  %v4275_v3 = vor.u32 %v4863_v2, %v4274_v1  ;;  %v4741_v9 = vld [vmem:[%s5545_s26 + $0xe4] sm:$0xf0]  ;;  %v4737_v10 = vld [vmem:[%s5545_s26 + $0xcc] sm:$0xf]  ;;  %v4330_v16 = vld [vmem:[%s7688_s1 + $0x320] sm:$0xf] }
  0x52   : > { %1844 = vmatpush.bf16.msrb.mxu2 %v4355_v7  ;;  %v3772_v7 = vld [vmem:[%s5545_s26 + $0xe0] sm:$0xf0]  ;;  %v5733_v14 = vor.u32 %v4741_v9, %v3778_v8  ;;  %v4877_v17 = vld [vmem:[%s7688_s1 + $0x324] sm:$0xf0]  ;;  %v4202_v18 = vld [vmem:[%s7688_s1 + $0x220] sm:$0xf] }
  0x53   : > { %1893 = vmatpush.bf16.msrb.mxu3 %v4419_v11  ;;  %v3780_v11 = vld [vmem:[%s5545_s26 + $0xe8] sm:$0xf0]  ;;  %v5731_v13 = vor.u32 %v4736_v6, %v3772_v7  ;;  %v4331_v19 = vor.u32 %v4877_v17, %v4330_v16  ;;  %v4845_v20 = vld [vmem:[%s7688_s1 + $0x224] sm:$0xf0]  ;;  %v4394_v21 = vld [vmem:[%s7688_s1 + $0x3a0] sm:$0xf] }
  0x54   : > { %1747 = vmatpush.bf16.msrb.mxu0 %v4219_v35  ;;  %v5735_v15 = vor.u32 %v4737_v10, %v3780_v11  ;;  %v4893_v22 = vld [vmem:[%s7688_s1 + $0x3a4] sm:$0xf0]  ;;  %v4203_v23 = vor.u32 %v4845_v20, %v4202_v18  ;;  %v4266_v29 = vld [vmem:[%s7688_s1 + $0x2a0] sm:$0xf]  ;;  %v4744_v34 = vld [vmem:[%s5545_s26 + $0x104] sm:$0xf] }
  0x55   : > { %1796 = vmatpush.bf16.msrb.mxu1 %v4283_v39  ;;  %v4395_v28 = vor.u32 %v4893_v22, %v4394_v21  ;;  %v4861_v30 = vld [vmem:[%s7688_s1 + $0x2a4] sm:$0xf0]  ;;  %v3802_v32 = vld [vmem:[%s5545_s26 + $0x100] sm:$0xf]  ;;  %v3804_v35 = vld [vmem:[%s5545_s26 + $0x120] sm:$0xf0] }
  0x56   : > { %1845 = vmatpush.bf16.msrb.mxu2 %v4347_v31  ;;  %v4267_v31 = vor.u32 %v4861_v30, %v4266_v29  ;;  %v4748_v33 = vld [vmem:[%s5545_s26 + $0x11c] sm:$0xf0]  ;;  %v4749_v37 = vld [vmem:[%s5545_s26 + $0x124] sm:$0xf0]  ;;  %v4745_v38 = vld [vmem:[%s5545_s26 + $0x10c] sm:$0xf]  ;;  %v5775_v41 = vor.u32 %v4744_v34, %v3804_v35 }
  0x57   : > { %1561 = vmatmul.bf16.gmra.mxu0 %v5641_v24  ;;  %1894 = vmatpush.bf16.msrb.mxu3 %v4411_v36  ;;  %v3810_v36 = vld [vmem:[%s5545_s26 + $0x108] sm:$0xf]  ;;  %v3812_v39 = vld [vmem:[%s5545_s26 + $0x128] sm:$0xf0]  ;;  %v5773_v40 = vor.u32 %v4748_v33, %v3802_v32  ;;  %v4322_v44 = vld [vmem:[%s7688_s1 + $0x310] sm:$0xf] }
  0x58   : > { %1610 = vmatmul.bf16.gmra.mxu1 %v5643_v25  ;;  %1748 = vmatpush.bf16.msrb.mxu0 %v4211_v63  ;;  %v5777_v42 = vor.u32 %v4749_v37, %v3810_v36  ;;  %v5779_v43 = vor.u32 %v4745_v38, %v3812_v39  ;;  %v4875_v45 = vld [vmem:[%s7688_s1 + $0x314] sm:$0xf0]  ;;  %v4194_v46 = vld [vmem:[%s7688_s1 + $0x210] sm:$0xf]  ;;  %v4756_v1 = vld [vmem:[%s5545_s26 + $0x15c] sm:$0xf0] }
  0x59   : > { %1659 = vmatmul.bf16.gmra.mxu2 %v5645_v26  ;;  %1797 = vmatpush.bf16.msrb.mxu1 %v4275_v3  ;;  %v4323_v47 = vor.u32 %v4875_v45, %v4322_v44  ;;  %v4843_v55 = vld [vmem:[%s7688_s1 + $0x214] sm:$0xf0]  ;;  %v4386_v56 = vld [vmem:[%s7688_s1 + $0x390] sm:$0xf]  ;;  %v4752_v2 = vld [vmem:[%s5545_s26 + $0x144] sm:$0xf] }
  0x5a   : > { %1708 = vmatmul.bf16.gmra.mxu3 %v5647_v27  ;;  %1846 = vmatpush.bf16.msrb.mxu2 %v4339_v59  ;;  %v4891_v58 = vld [vmem:[%s7688_s1 + $0x394] sm:$0xf0]  ;;  %v4195_v59 = vor.u32 %v4843_v55, %v4194_v46  ;;  %v4258_v61 = vld [vmem:[%s7688_s1 + $0x290] sm:$0xf]  ;;  %v3836_v3 = vld [vmem:[%s5545_s26 + $0x160] sm:$0xf0] }
  0x5b   : > { %1895 = vmatpush.bf16.msrb.mxu3 %v4403_v0  ;;  %v4387_v60 = vor.u32 %v4891_v58, %v4386_v56  ;;  %v4859_v62 = vld [vmem:[%s7688_s1 + $0x294] sm:$0xf0]  ;;  %v3834_v0 = vld [vmem:[%s5545_s26 + $0x140] sm:$0xf]  ;;  %v3842_v4 = vld [vmem:[%s5545_s26 + $0x148] sm:$0xf]  ;;  %v5819_v9 = vor.u32 %v4752_v2, %v3836_v3 }
  0x5c   : > { %1749 = vmatpush.bf16.msrb.mxu0 %v4203_v23  ;;  %v4259_v63 = vor.u32 %v4859_v62, %v4258_v61  ;;  %v4757_v5 = vld [vmem:[%s5545_s26 + $0x164] sm:$0xf0]  ;;  %v4753_v6 = vld [vmem:[%s5545_s26 + $0x14c] sm:$0xf]  ;;  %v5817_v8 = vor.u32 %v4756_v1, %v3834_v0  ;;  %v4314_v16 = vld [vmem:[%s7688_s1 + $0x300] sm:$0xf] }
  0x5d   : > { %1798 = vmatpush.bf16.msrb.mxu1 %v4267_v31  ;;  %v3844_v7 = vld [vmem:[%s5545_s26 + $0x168] sm:$0xf0]  ;;  %v5821_v10 = vor.u32 %v4757_v5, %v3842_v4  ;;  %v4873_v17 = vld [vmem:[%s7688_s1 + $0x304] sm:$0xf0]  ;;  %v4186_v18 = vld [vmem:[%s7688_s1 + $0x200] sm:$0xf] }
  0x5e   : > { %1847 = vmatpush.bf16.msrb.mxu2 %v4331_v19  ;;  %v5823_v11 = vor.u32 %v4753_v6, %v3844_v7  ;;  %v4315_v19 = vor.u32 %v4873_v17, %v4314_v16  ;;  %v4841_v20 = vld [vmem:[%s7688_s1 + $0x204] sm:$0xf0]  ;;  %v4378_v21 = vld [vmem:[%s7688_s1 + $0x380] sm:$0xf]  ;;  %v4760_v34 = vld [vmem:[%s5545_s26 + $0x184] sm:$0xf] }
  0x5f   : > { %1896 = vmatpush.bf16.msrb.mxu3 %v4395_v28  ;;  %v4889_v22 = vld [vmem:[%s7688_s1 + $0x384] sm:$0xf0]  ;;  %v4187_v23 = vor.u32 %v4841_v20, %v4186_v18  ;;  %v4250_v29 = vld [vmem:[%s7688_s1 + $0x280] sm:$0xf]  ;;  %v3868_v35 = vld [vmem:[%s5545_s26 + $0x1a0] sm:$0xf0] }
  0x60   : > { %1750 = vmatpush.bf16.msrb.mxu0 %v4195_v59  ;;  %v4379_v28 = vor.u32 %v4889_v22, %v4378_v21  ;;  %v4857_v30 = vld [vmem:[%s7688_s1 + $0x284] sm:$0xf0]  ;;  %v3866_v32 = vld [vmem:[%s5545_s26 + $0x180] sm:$0xf]  ;;  %v4761_v38 = vld [vmem:[%s5545_s26 + $0x18c] sm:$0xf]  ;;  %v5863_v45 = vor.u32 %v4760_v34, %v3868_v35 }
  0x61   : > { %1799 = vmatpush.bf16.msrb.mxu1 %v4259_v63  ;;  %v4251_v31 = vor.u32 %v4857_v30, %v4250_v29  ;;  %v4764_v33 = vld [vmem:[%s5545_s26 + $0x19c] sm:$0xf0]  ;;  %v3874_v36 = vld [vmem:[%s5545_s26 + $0x188] sm:$0xf]  ;;  %v3876_v39 = vld [vmem:[%s5545_s26 + $0x1a8] sm:$0xf0] }
  0x62   : > { %1848 = vmatpush.bf16.msrb.mxu2 %v4323_v47  ;;  %v4765_v37 = vld [vmem:[%s5545_s26 + $0x1a4] sm:$0xf0]  ;;  %v5861_v44 = vor.u32 %v4764_v33, %v3866_v32  ;;  %v5867_v47 = vor.u32 %v4761_v38, %v3876_v39  ;;  %v4822_v55 = vld [vmem:[%s7688_s1 + $0x174] sm:$0xf]  ;;  %v4116_v56 = vld [vmem:[%s7688_s1 + $0x178] sm:$0xf0] }
  0x63   : > { %1897 = vmatpush.bf16.msrb.mxu3 %v4387_v60  ;;  %v5865_v46 = vor.u32 %v4765_v37, %v3874_v36  ;;  %v4790_v58 = vld [vmem:[%s7688_s1 + $0x74] sm:$0xf]  ;;  %v4119_v59 = vor.u32 %v4822_v55, %v4116_v56  ;;  %v3988_v60 = vld [vmem:[%s7688_s1 + $0x78] sm:$0xf0]  ;;  %v3898_v4 = vld [vmem:[%s5545_s26 + $0x1c0] sm:$0xf] }
  0x64   : > { %1751 = vmatpush.bf16.msrb.mxu0 %v4187_v23  ;;  %7690 = vst [vmem:[#allocation13_spill] sm:$0xff] %v5867_v47  ;;  %v4838_v61 = vld [vmem:[%s7688_s1 + $0x1f4] sm:$0xf]  ;;  %v4180_v62 = vld [vmem:[%s7688_s1 + $0x1f8] sm:$0xf0]  ;;  %v3991_v63 = vor.u32 %v4790_v58, %v3988_v60  ;;  %s3671_s17 = sshll.u32 %s7767_s16, 3 }
  0x65   : > { %1800 = vmatpush.bf16.msrb.mxu1 %v4251_v31  ;;  %v4183_v0 = vor.u32 %v4838_v61, %v4180_v62  ;;  %v4806_v1 = vld [vmem:[%s7688_s1 + $0xf4] sm:$0xf]  ;;  %v4052_v2 = vld [vmem:[%s7688_s1 + $0xf8] sm:$0xf0]  ;;  %v4772_v5 = vld [vmem:[%s5545_s26 + $0x1dc] sm:$0xf0] }
  0x66   : > { %1849 = vmatpush.bf16.msrb.mxu2 %v4315_v19  ;;  %v4055_v3 = vor.u32 %v4806_v1, %v4052_v2  ;;  %v4768_v6 = vld [vmem:[%s5545_s26 + $0x1c4] sm:$0xf]  ;;  %v3906_v16 = vld [vmem:[%s5545_s26 + $0x1c8] sm:$0xf]  ;;  %v4769_v18 = vld [vmem:[%s5545_s26 + $0x1cc] sm:$0xf]  ;;  %v5905_v20 = vor.u32 %v4772_v5, %v3898_v4 }
  0x67   : > { %1566 = vmatmul.bf16.gmra.mxu0 %v5685_v49  ;;  %1898 = vmatpush.bf16.msrb.mxu3 %v4379_v28  ;;  %v3900_v7 = vld [vmem:[%s5545_s26 + $0x1e0] sm:$0xf0]  ;;  %v4773_v17 = vld [vmem:[%s5545_s26 + $0x1e4] sm:$0xf0]  ;;  %v3908_v19 = vld [vmem:[%s5545_s26 + $0x1e8] sm:$0xf0] }
  0x68   : > { %1615 = vmatmul.bf16.gmra.mxu1 %v5687_v50  ;;  %1940 = vmatpush.bf16.msra.mxu0 %v3991_v63  ;;  %7691 = vst [vmem:[#allocation14_spill] sm:$0xff] %v5905_v20  ;;  %v5907_v21 = vor.u32 %v4768_v6, %v3900_v7  ;;  %v5909_v22 = vor.u32 %v4773_v17, %v3906_v16  ;;  %v4820_v28 = vld [vmem:[%s7688_s1 + $0x164] sm:$0xf]  ;;  %v4108_v29 = vld [vmem:[%s7688_s1 + $0x168] sm:$0xf0]  ;;  %s7758_s5 = sld [smem:[#allocation51_spill]] }
  0x69   : > { %1664 = vmatmul.bf16.gmra.mxu2 %v5689_v51  ;;  %1989 = vmatpush.bf16.msra.mxu1 %v4055_v3  ;;  %v5911_v23 = vor.u32 %v4769_v18, %v3908_v19  ;;  %v4788_v30 = vld [vmem:[%s7688_s1 + $0x64] sm:$0xf]  ;;  %v4111_v31 = vor.u32 %v4820_v28, %v4108_v29  ;;  %v3980_v32 = vld [vmem:[%s7688_s1 + $0x68] sm:$0xf0]  ;;  %v582_v37 = vld [vmem:[%s7695_s2] sm:$0x3] }
  0x6a   : > { %1713 = vmatmul.bf16.gmra.mxu3 %v5691_v52  ;;  %2038 = vmatpush.bf16.msra.mxu2 %v4119_v59  ;;  %7692 = vst [vmem:[#allocation15_spill] sm:$0xff] %v5907_v21  ;;  %v4836_v33 = vld [vmem:[%s7688_s1 + $0x1e4] sm:$0xf]  ;;  %v4172_v34 = vld [vmem:[%s7688_s1 + $0x1e8] sm:$0xf0]  ;;  %v3983_v35 = vor.u32 %v4788_v30, %v3980_v32  ;;  %v5944_v55 = vperm.slane %v582_v37, 0 }
  0x6b   : > { %2087 = vmatpush.bf16.msra.mxu3 %v4183_v0  ;;  %7693 = vst [vmem:[#allocation16_spill] sm:$0xff] %v5909_v22  ;;  %v4175_v36 = vor.u32 %v4836_v33, %v4172_v34  ;;  %v4804_v38 = vld [vmem:[%s7688_s1 + $0xe4] sm:$0xf]  ;;  %v4044_v39 = vld [vmem:[%s7688_s1 + $0xe8] sm:$0xf0]  ;;  %s6890_s18 = scalar_lea.vmem [#allocation7], %s6354_s24 }
  0x6c   : > { %7694 = vst [vmem:[#allocation17_spill] sm:$0xff] %v5911_v23  ;;  %1941 = vmatpush.bf16.msra.mxu0 %v3983_v35  ;;  %v4047_v56 = vor.u32 %v4804_v38, %v4044_v39  ;;  %v3690_v58 = vld [vmem:[%s5545_s26 + $0x10] sm:$0xf]  ;;  %v4714_v60 = vld [vmem:[%s5545_s26 + $0x14] sm:$0xf]  ;;  %s7759_s4 = sld [smem:[#allocation50_spill]] }
  0x6d   : > { %v4718_v59 = vld [vmem:[%s5545_s26 + $0x2c] sm:$0xf0]  ;;  %v3692_v61 = vld [vmem:[%s5545_s26 + $0x30] sm:$0xf0]  ;;  %v3698_v62 = vld [vmem:[%s5545_s26 + $0x18] sm:$0xf] }
  0x6e   : > { %2039 = vmatpush.bf16.msra.mxu2 %v4111_v31  ;;  %v4719_v63 = vld [vmem:[%s5545_s26 + $0x34] sm:$0xf0]  ;;  %1990 = vmatpush.bf16.msra.mxu1 %v4047_v56  ;;  %v4715_v0 = vld [vmem:[%s5545_s26 + $0x1c] sm:$0xf]  ;;  %v5954_v2 = vor.u32 %v4718_v59, %v3690_v58  ;;  %v5956_v4 = vor.u32 %v4714_v60, %v3692_v61  ;;  %v4818_v18 = vld [vmem:[%s7688_s1 + $0x154] sm:$0xf]  ;;  %s6870_s25 = scalar_lea.vmem %s7758_s5, %s3671_s17 }
  0x6f   : > { %2088 = vmatpush.bf16.msra.mxu3 %v4175_v36  ;;  %v3700_v1 = vld [vmem:[%s5545_s26 + $0x38] sm:$0xf0]  ;;  %v5958_v5 = vor.u32 %v4719_v63, %v3698_v62  ;;  %v4786_v28 = vld [vmem:[%s7688_s1 + $0x54] sm:$0xf]  ;;  %v3722_v63 = vld [vmem:[%s5545_s26 + $0x50] sm:$0xf] }
  0x70   : > { %7696 = vst [vmem:[#allocation18_spill] sm:$0xff] %v5954_v2  ;;  %v5961_v16 = vor.u32 %v4715_v0, %v3700_v1  ;;  %v4100_v19 = vld [vmem:[%s7688_s1 + $0x158] sm:$0xf0]  ;;  %v4834_v31 = vld [vmem:[%s7688_s1 + $0x1d4] sm:$0xf]  ;;  %s7391_s24 = sshll.u32 %s5311_s13, 7 }
  0x71   : > { %7697 = vst [vmem:[#allocation19_spill] sm:$0xff] %v5956_v4  ;;  %v4103_v29 = vor.u32 %v4818_v18, %v4100_v19  ;;  %v3972_v30 = vld [vmem:[%s7688_s1 + $0x58] sm:$0xf0]  ;;  %v4802_v59 = vld [vmem:[%s7688_s1 + $0xd4] sm:$0xf]  ;;  %s3451_s27 = scalar_lea.hbm %s7642_s7, %s7391_s24  ;;  %s3411_s16 = sand.u32 1, %s5311_s13  }
  0x72   : > { %7698 = vst [vmem:[#allocation20_spill] sm:$0xff] %v5958_v5  ;;  %v4164_v32 = vld [vmem:[%s7688_s1 + $0x1d8] sm:$0xf0]  ;;  %v3975_v34 = vor.u32 %v4786_v28, %v3972_v30  ;;  %v4726_v0 = vld [vmem:[%s5545_s26 + $0x6c] sm:$0xf0]  ;;  %s3452_s29 = sshll.u32 %s6377_s28, 4  ;;  %s3468_s17 = scalar_lea.hbm %s7643_s8, %s7391_s24  ;;  %s3453_s29 = int_to_ptr.vmem [resolvable:$true] %s3452_s29 }
  0x73   : > { %7699 = vst [vmem:[#allocation21_spill] sm:$0xff] %v5961_v16  ;;  %v4167_v35 = vor.u32 %v4834_v31, %v4164_v32  ;;  %2040 = vmatpush.bf16.msra.mxu2 %v4103_v29  ;;  %v4036_v60 = vld [vmem:[%s7688_s1 + $0xd8] sm:$0xf0]  ;;  %v4722_v1 = vld [vmem:[%s5545_s26 + $0x54] sm:$0xf]  ;;  %v6002_v28 = vor.u32 %v4726_v0, %v3722_v63  ;;  %s3454_s14 = sshll.u32 %s3451_s27, 4  ;;  %s3455_s14 = int_to_ptr.hbm [resolvable:$true] %s3454_s14 }
  0x74   : > { %1942 = vmatpush.bf16.msra.mxu0 %v3975_v34  ;;  %v4039_v62 = vor.u32 %v4802_v59, %v4036_v60  ;;  %v3732_v18 = vld [vmem:[%s5545_s26 + $0x78] sm:$0xf0]  ;;  %v4784_v59 = vld [vmem:[%s7688_s1 + $0x44] sm:$0xf]  ;;  %v4156_v63 = vld [vmem:[%s7688_s1 + $0x1c8] sm:$0xf0] }
  0x75   : > { %2089 = vmatpush.bf16.msra.mxu3 %v4167_v35  ;;  %7700 = vst [vmem:[#allocation22_spill] sm:$0xff] %v6002_v28  ;;  %s7417_s0 = scalar_lea.sflag [#allocation5], %s3411_s16 }
  0x76   : > { %1991 = vmatpush.bf16.msra.mxu1 %v4039_v62  ;;  %v4832_v62 = vld [vmem:[%s7688_s1 + $0x1c4] sm:$0xf] }
  0x77   : > { %1571 = vmatmul.bf16.gmra.mxu0 %v5729_v12 }
  0x78   : > { %1620 = vmatmul.bf16.gmra.mxu1 %v5731_v13 }
  0x79   : > { %1669 = vmatmul.bf16.gmra.mxu2 %v5733_v14 }
  0x7a   : > { %1718 = vmatmul.bf16.gmra.mxu3 %v5735_v15 }
  0x87   : > { %1576 = vmatmul.bf16.gmra.mxu0 %v5773_v40 }
  0x88   : > { %1625 = vmatmul.bf16.gmra.mxu1 %v5775_v41 }
  0x89   : > { %1674 = vmatmul.bf16.gmra.mxu2 %v5777_v42 }
  0x8a   : > { %1723 = vmatmul.bf16.gmra.mxu3 %v5779_v43 }
  0x97   : > { %1581 = vmatmul.bf16.gmra.mxu0 %v5817_v8 }
  0x98   : > { %1630 = vmatmul.bf16.gmra.mxu1 %v5819_v9 }
  0x99   : > { %1679 = vmatmul.bf16.gmra.mxu2 %v5821_v10 }
  0x9a   : > { %1728 = vmatmul.bf16.gmra.mxu3 %v5823_v11 }
  0xa7   : > { %1586 = vmatmul.bf16.gmra.mxu0 %v5861_v44 }
  0xa8   : > { %1635 = vmatmul.bf16.gmra.mxu1 %v5863_v45 }
  0xa9   : > { %1684 = vmatmul.bf16.gmra.mxu2 %v5865_v46 }
  0xaa   : > { %1733 = vmatmul.bf16.gmra.mxu3 %v5867_v47 }
  0xb7   : > { %1591 = vmatmul.bf16.gmra.mxu0 %v5905_v20 }
  0xb8   : > { %1640 = vmatmul.bf16.gmra.mxu1 %v5907_v21 }
  0xb9   : > { %1689 = vmatmul.bf16.gmra.mxu2 %v5909_v22 }
  0xba   : > { %1738 = vmatmul.bf16.gmra.mxu3 %v5911_v23 }
  0xc4   : > { %v1557_v3 = vpop.f32.mrf.mxu0 }
  0xc5   : > { %v1558_v6 = vadd.f32 %v1557_v3, %v5944_v55  ;;  %v1606_v7 = vpop.f32.mrf.mxu1  ;;  %v3724_v3 = vld [vmem:[%s5545_s26 + $0x70] sm:$0xf0] }
  0xc6   : > { %v6004_v32 = vor.u32 %v4722_v1, %v3724_v3  ;;  %v4159_v3 = vor.u32 %v4832_v62, %v4156_v63  ;;  %v4731_v62 = vld [vmem:[%s5545_s26 + $0x9c] sm:$0xf] }
  0xc7   : > { %v1607_v17 = vadd.f32 %v1606_v7, %v1558_v6  ;;  %1752 = vmatmul.bf16.vlgmr.msrb.gmra.mxu0 %v5954_v2  ;;  %v3730_v6 = vld [vmem:[%s5545_s26 + $0x58] sm:$0xf]  ;;  %v3764_v63 = vld [vmem:[%s5545_s26 + $0xb8] sm:$0xf0] }
  0xc8   : > { %1801 = vmatmul.bf16.vlgmr.msrb.gmra.mxu1 %v5956_v4  ;;  %v4727_v7 = vld [vmem:[%s5545_s26 + $0x74] sm:$0xf0]  ;;  %7701 = vst [vmem:[#allocation23_spill] sm:$0xff] %v6004_v32  ;;  %2090 = vmatpush.bf16.msra.mxu3 %v4159_v3 }
  0xc9   : > { %1850 = vmatmul.bf16.vlgmr.msrb.gmra.mxu2 %v5958_v5 }
  0xca   : > { %1899 = vmatmul.bf16.vlgmr.msrb.gmra.mxu3 %v5961_v16 }
  0xcc   : > { %v1655_v33 = vpop.f32.mrf.mxu2  ;;  %v1559_v38 = vpop.f32.mrf.mxu0 }
  0xcd   : > { %v1656_v36 = vadd.f32 %v1655_v33, %v1607_v17  ;;  %v1704_v37 = vpop.f32.mrf.mxu3  ;;  %v1560_v39 = vadd.f32 %v1559_v38, %v5944_v55  ;;  %v1608_v56 = vpop.f32.mrf.mxu1  ;;  %v4723_v17 = vld [vmem:[%s5545_s26 + $0x5c] sm:$0xf]  ;;  %v6006_v33 = vor.u32 %v4727_v7, %v3730_v6 }
  0xcf   : > { %v5986_v58 = vadd.f32 %v1704_v37, %v1656_v36  ;;  %v1609_v61 = vadd.f32 %v1608_v56, %v1560_v39  ;;  %7702 = vst [vmem:[#allocation24_spill] sm:$0xff] %v6006_v33  ;;  %v6009_v36 = vor.u32 %v4723_v17, %v3732_v18  ;;  %v4816_v39 = vld [vmem:[%s7688_s1 + $0x144] sm:$0xf]  ;;  %v4092_v56 = vld [vmem:[%s7688_s1 + $0x148] sm:$0xf0] }
  0xd0   : > { %v4095_v60 = vor.u32 %v4816_v39, %v4092_v56  ;;  %v4734_v39 = vld [vmem:[%s5545_s26 + $0xac] sm:$0xf0]  ;;  %v4730_v56 = vld [vmem:[%s5545_s26 + $0x94] sm:$0xf] }
  0xd1   : > { %7703 = vst [vmem:[#allocation25_spill] sm:$0xff] %v6009_v36 }
  0xd2   : > { %2041 = vmatpush.bf16.msra.mxu2 %v4095_v60  ;;  %v3762_v60 = vld [vmem:[%s5545_s26 + $0x98] sm:$0xf] }
  0xd4   : > { %v1657_v19 = vpop.f32.mrf.mxu2  ;;  %v1562_v31 = vpop.f32.mrf.mxu0 }
  0xd5   : > { %v1658_v29 = vadd.f32 %v1657_v19, %v1609_v61  ;;  %v1706_v30 = vpop.f32.mrf.mxu3  ;;  %v1563_v34 = vadd.f32 %v1562_v31, %v5944_v55  ;;  %v1611_v35 = vpop.f32.mrf.mxu1  ;;  %v3964_v61 = vld [vmem:[%s7688_s1 + $0x48] sm:$0xf0] }
  0xd6   : > { %v3967_v1 = vor.u32 %v4784_v59, %v3964_v61  ;;  %v4028_v31 = vld [vmem:[%s7688_s1 + $0xc8] sm:$0xf0]  ;;  %v3756_v59 = vld [vmem:[%s5545_s26 + $0xb0] sm:$0xf0]  ;;  %v4735_v61 = vld [vmem:[%s5545_s26 + $0xb4] sm:$0xf0] }
  0xd7   : > { %v6011_v37 = vadd.f32 %v1706_v30, %v1658_v29  ;;  %v1612_v38 = vadd.f32 %v1611_v35, %v1563_v34  ;;  %1757 = vmatmul.bf16.gmra.mxu0 %v6002_v28  ;;  %v4800_v30 = vld [vmem:[%s7688_s1 + $0xc4] sm:$0xf] }
  0xd8   : > { %1806 = vmatmul.bf16.gmra.mxu1 %v6004_v32  ;;  %1943 = vmatpush.bf16.msra.mxu0 %v3967_v1  ;;  %v4031_v35 = vor.u32 %v4800_v30, %v4028_v31  ;;  %v6059_v30 = vor.u32 %v4731_v62, %v3764_v63 }
  0xd9   : > { %1855 = vmatmul.bf16.gmra.mxu2 %v6006_v33 }
  0xda   : > { %1904 = vmatmul.bf16.gmra.mxu3 %v6009_v36  ;;  %1992 = vmatpush.bf16.msra.mxu1 %v4031_v35  ;;  %v6056_v36 = vor.u32 %v4735_v61, %v3762_v60  ;;  %7707 = vst [vmem:[#allocation29_spill] sm:$0xff] %v6059_v30  ;;  %v4830_v60 = vld [vmem:[%s7688_s1 + $0x1b4] sm:$0xf]  ;;  %v4148_v61 = vld [vmem:[%s7688_s1 + $0x1b8] sm:$0xf0] }
  0xdc   : > { %v1660_v0 = vpop.f32.mrf.mxu2  ;;  %v1564_v17 = vpop.f32.mrf.mxu0  ;;  %7706 = vst [vmem:[#allocation28_spill] sm:$0xff] %v6056_v36 }
  0xdd   : > { %v1661_v6 = vadd.f32 %v1660_v0, %v1612_v38  ;;  %v1709_v7 = vpop.f32.mrf.mxu3  ;;  %v1565_v18 = vadd.f32 %v1564_v17, %v5944_v55  ;;  %v1613_v19 = vpop.f32.mrf.mxu1  ;;  %v3754_v38 = vld [vmem:[%s5545_s26 + $0x90] sm:$0xf]  ;;  %v6054_v17 = vor.u32 %v4730_v56, %v3756_v59  ;;  %v3956_v59 = vld [vmem:[%s7688_s1 + $0x38] sm:$0xf0] }
  0xde   : > { %v6052_v1 = vor.u32 %v4734_v39, %v3754_v38  ;;  %v4084_v38 = vld [vmem:[%s7688_s1 + $0x138] sm:$0xf0]  ;;  %v4782_v39 = vld [vmem:[%s7688_s1 + $0x34] sm:$0xf] }
  0xdf   : > { %v6036_v29 = vadd.f32 %v1709_v7, %v1661_v6  ;;  %v1614_v34 = vadd.f32 %v1613_v19, %v1565_v18  ;;  %7705 = vst [vmem:[#allocation27_spill] sm:$0xff] %v6054_v17  ;;  %v3959_v63 = vor.u32 %v4782_v39, %v3956_v59 }
  0xe0   : > { %7704 = vst [vmem:[#allocation26_spill] sm:$0xff] %v6052_v1 }
  0xe1   : > { %1944 = vmatpush.bf16.msra.mxu0 %v3959_v63  ;;  %v4739_v63 = vld [vmem:[%s5545_s26 + $0xdc] sm:$0xf] }
  0xe4   : > { %v1662_v0 = vpop.f32.mrf.mxu2  ;;  %v1567_v7 = vpop.f32.mrf.mxu0 }
  0xe5   : > { %v1663_v3 = vadd.f32 %v1662_v0, %v1614_v34  ;;  %v1711_v6 = vpop.f32.mrf.mxu3  ;;  %v1568_v18 = vadd.f32 %v1567_v7, %v5944_v55  ;;  %v1616_v19 = vpop.f32.mrf.mxu1  ;;  %v4814_v34 = vld [vmem:[%s7688_s1 + $0x134] sm:$0xf]  ;;  %v4151_v0 = vor.u32 %v4830_v60, %v4148_v61  ;;  %v4742_v60 = vld [vmem:[%s5545_s26 + $0xec] sm:$0xf0] }
  0xe6   : > { %v4087_v56 = vor.u32 %v4814_v34, %v4084_v38  ;;  %v4798_v38 = vld [vmem:[%s7688_s1 + $0xb4] sm:$0xf] }
  0xe7   : > { %v6061_v31 = vadd.f32 %v1711_v6, %v1663_v3  ;;  %v1617_v35 = vadd.f32 %v1616_v19, %v1568_v18  ;;  %1762 = vmatmul.bf16.gmra.mxu0 %v6052_v1  ;;  %2091 = vmatpush.bf16.msra.mxu3 %v4151_v0  ;;  %v4738_v61 = vld [vmem:[%s5545_s26 + $0xd4] sm:$0xf]  ;;  %v3796_v0 = vld [vmem:[%s5545_s26 + $0xf8] sm:$0xf0] }
  0xe8   : > { %1811 = vmatmul.bf16.gmra.mxu1 %v6054_v17  ;;  %2042 = vmatpush.bf16.msra.mxu2 %v4087_v56  ;;  %v3786_v56 = vld [vmem:[%s5545_s26 + $0xd0] sm:$0xf] }
  0xe9   : > { %1860 = vmatmul.bf16.gmra.mxu2 %v6056_v36 }
  0xea   : > { %1909 = vmatmul.bf16.gmra.mxu3 %v6059_v30  ;;  %v4743_v30 = vld [vmem:[%s5545_s26 + $0xf4] sm:$0xf0] }
  0xec   : > { %v1665_v62 = vpop.f32.mrf.mxu2  ;;  %v1569_v7 = vpop.f32.mrf.mxu0 }
  0xed   : > { %v1666_v3 = vadd.f32 %v1665_v62, %v1617_v35  ;;  %v1714_v6 = vpop.f32.mrf.mxu3  ;;  %v1570_v18 = vadd.f32 %v1569_v7, %v5944_v55  ;;  %v1618_v19 = vpop.f32.mrf.mxu1  ;;  %v4020_v35 = vld [vmem:[%s7688_s1 + $0xb8] sm:$0xf0]  ;;  %v3788_v62 = vld [vmem:[%s5545_s26 + $0xf0] sm:$0xf0]  ;;  %v3794_v7 = vld [vmem:[%s5545_s26 + $0xd8] sm:$0xf] }
  0xee   : > { %v4023_v59 = vor.u32 %v4798_v38, %v4020_v35  ;;  %v6104_v33 = vor.u32 %v4738_v61, %v3788_v62  ;;  %v6106_v32 = vor.u32 %v4743_v30, %v3794_v7  ;;  %v6109_v38 = vor.u32 %v4739_v63, %v3796_v0  ;;  %v4812_v30 = vld [vmem:[%s7688_s1 + $0x124] sm:$0xf] }
  0xef   : > { %v6086_v34 = vadd.f32 %v1714_v6, %v1666_v3  ;;  %v1619_v39 = vadd.f32 %v1618_v19, %v1570_v18  ;;  %v6102_v6 = vor.u32 %v4742_v60, %v3786_v56  ;;  %v4828_v56 = vld [vmem:[%s7688_s1 + $0x1a4] sm:$0xf]  ;;  %v4140_v60 = vld [vmem:[%s7688_s1 + $0x1a8] sm:$0xf0] }
  0xf0   : > { %1993 = vmatpush.bf16.msra.mxu1 %v4023_v59  ;;  %7709 = vst [vmem:[#allocation31_spill] sm:$0xff] %v6104_v33  ;;  %v4143_v7 = vor.u32 %v4828_v56, %v4140_v60  ;;  %v4750_v56 = vld [vmem:[%s5545_s26 + $0x12c] sm:$0xf0]  ;;  %v4746_v60 = vld [vmem:[%s5545_s26 + $0x114] sm:$0xf] }
  0xf1   : > { %7708 = vst [vmem:[#allocation30_spill] sm:$0xff] %v6102_v6 }
  0xf2   : > { %7710 = vst [vmem:[#allocation32_spill] sm:$0xff] %v6106_v32  ;;  %2092 = vmatpush.bf16.msra.mxu3 %v4143_v7  ;;  %v3828_v7 = vld [vmem:[%s5545_s26 + $0x138] sm:$0xf0] }
  0xf3   : > { %7711 = vst [vmem:[#allocation33_spill] sm:$0xff] %v6109_v38 }
  0xf4   : > { %v1667_v3 = vpop.f32.mrf.mxu2  ;;  %v1572_v1 = vpop.f32.mrf.mxu0 }
  0xf5   : > { %v1668_v36 = vadd.f32 %v1667_v3, %v1619_v39  ;;  %v1716_v17 = vpop.f32.mrf.mxu3  ;;  %v1573_v18 = vadd.f32 %v1572_v1, %v5944_v55  ;;  %v1621_v19 = vpop.f32.mrf.mxu1  ;;  %v4076_v1 = vld [vmem:[%s7688_s1 + $0x128] sm:$0xf0] }
  0xf6   : > { %v3948_v39 = vld [vmem:[%s7688_s1 + $0x28] sm:$0xf0] }
  0xf7   : > { %v6111_v35 = vadd.f32 %v1716_v17, %v1668_v36  ;;  %v1622_v59 = vadd.f32 %v1621_v19, %v1573_v18  ;;  %1767 = vmatmul.bf16.gmra.mxu0 %v6102_v6  ;;  %v4780_v36 = vld [vmem:[%s7688_s1 + $0x24] sm:$0xf]  ;;  %v4079_v17 = vor.u32 %v4812_v30, %v4076_v1 }
  0xf8   : > { %1816 = vmatmul.bf16.gmra.mxu1 %v6104_v33  ;;  %v3951_v62 = vor.u32 %v4780_v36, %v3948_v39  ;;  %v4796_v1 = vld [vmem:[%s7688_s1 + $0xa4] sm:$0xf] }
  0xf9   : > { %1865 = vmatmul.bf16.gmra.mxu2 %v6106_v32 }
  0xfa   : > { %1914 = vmatmul.bf16.gmra.mxu3 %v6109_v38  ;;  %2043 = vmatpush.bf16.msra.mxu2 %v4079_v17  ;;  %v3818_v17 = vld [vmem:[%s5545_s26 + $0x110] sm:$0xf]  ;;  %v4751_v38 = vld [vmem:[%s5545_s26 + $0x134] sm:$0xf0] }
  0xfb   : > { %1945 = vmatpush.bf16.msra.mxu0 %v3951_v62  ;;  %v4747_v62 = vld [vmem:[%s5545_s26 + $0x11c] sm:$0xf] }
  0xfc   : > { %v1670_v61 = vpop.f32.mrf.mxu2  ;;  %v1574_v3 = vpop.f32.mrf.mxu0 }
  0xfd   : > { %v1671_v63 = vadd.f32 %v1670_v61, %v1622_v59  ;;  %v1719_v0 = vpop.f32.mrf.mxu3  ;;  %v1575_v18 = vadd.f32 %v1574_v3, %v5944_v55  ;;  %v1623_v19 = vpop.f32.mrf.mxu1  ;;  %v4012_v59 = vld [vmem:[%s7688_s1 + $0xa8] sm:$0xf0]  ;;  %v3820_v61 = vld [vmem:[%s5545_s26 + $0x130] sm:$0xf0]  ;;  %v3826_v3 = vld [vmem:[%s5545_s26 + $0x118] sm:$0xf] }
  0xfe   : > { %v4015_v39 = vor.u32 %v4796_v1, %v4012_v59  ;;  %v6154_v28 = vor.u32 %v4746_v60, %v3820_v61  ;;  %v6156_v16 = vor.u32 %v4751_v38, %v3826_v3  ;;  %v6159_v1 = vor.u32 %v4747_v62, %v3828_v7  ;;  %v4810_v38 = vld [vmem:[%s7688_s1 + $0x114] sm:$0xf] }
  0xff   : > { %v6136_v30 = vadd.f32 %v1719_v0, %v1671_v63  ;;  %v1624_v36 = vadd.f32 %v1623_v19, %v1575_v18  ;;  %v6152_v0 = vor.u32 %v4750_v56, %v3818_v17  ;;  %v4826_v17 = vld [vmem:[%s7688_s1 + $0x194] sm:$0xf]  ;;  %v4132_v56 = vld [vmem:[%s7688_s1 + $0x198] sm:$0xf0] }
 0x100   : > { %1994 = vmatpush.bf16.msra.mxu1 %v4015_v39  ;;  %7713 = vst [vmem:[#allocation35_spill] sm:$0xff] %v6154_v28  ;;  %v4135_v3 = vor.u32 %v4826_v17, %v4132_v56  ;;  %v4758_v17 = vld [vmem:[%s5545_s26 + $0x16c] sm:$0xf0]  ;;  %v4754_v56 = vld [vmem:[%s5545_s26 + $0x154] sm:$0xf] }
 0x101   : > { %7712 = vst [vmem:[#allocation34_spill] sm:$0xff] %v6152_v0 }
 0x102   : > { %7714 = vst [vmem:[#allocation36_spill] sm:$0xff] %v6156_v16  ;;  %2093 = vmatpush.bf16.msra.mxu3 %v4135_v3  ;;  %v3860_v3 = vld [vmem:[%s5545_s26 + $0x178] sm:$0xf0] }
 0x103   : > { %7715 = vst [vmem:[#allocation37_spill] sm:$0xff] %v6159_v1 }
 0x104   : > { %v1672_v63 = vpop.f32.mrf.mxu2  ;;  %v1577_v6 = vpop.f32.mrf.mxu0 }
 0x105   : > { %v1673_v32 = vadd.f32 %v1672_v63, %v1624_v36  ;;  %v1721_v33 = vpop.f32.mrf.mxu3  ;;  %v1578_v18 = vadd.f32 %v1577_v6, %v5944_v55  ;;  %v1626_v19 = vpop.f32.mrf.mxu1  ;;  %v4068_v6 = vld [vmem:[%s7688_s1 + $0x118] sm:$0xf0] }
 0x106   : > { %v3940_v36 = vld [vmem:[%s7688_s1 + $0x18] sm:$0xf0] }
 0x107   : > { %v6161_v59 = vadd.f32 %v1721_v33, %v1673_v32  ;;  %v1627_v39 = vadd.f32 %v1626_v19, %v1578_v18  ;;  %1772 = vmatmul.bf16.gmra.mxu0 %v6152_v0  ;;  %v4778_v32 = vld [vmem:[%s7688_s1 + $0x14] sm:$0xf]  ;;  %v4071_v33 = vor.u32 %v4810_v38, %v4068_v6 }
 0x108   : > { %1821 = vmatmul.bf16.gmra.mxu1 %v6154_v28  ;;  %v3943_v61 = vor.u32 %v4778_v32, %v3940_v36  ;;  %v4794_v6 = vld [vmem:[%s7688_s1 + $0x94] sm:$0xf] }
 0x109   : > { %1870 = vmatmul.bf16.gmra.mxu2 %v6156_v16 }
 0x10a   : > { %1919 = vmatmul.bf16.gmra.mxu3 %v6159_v1  ;;  %2044 = vmatpush.bf16.msra.mxu2 %v4071_v33  ;;  %v3850_v33 = vld [vmem:[%s5545_s26 + $0x150] sm:$0xf]  ;;  %v4759_v1 = vld [vmem:[%s5545_s26 + $0x174] sm:$0xf0] }
 0x10b   : > { %1946 = vmatpush.bf16.msra.mxu0 %v3943_v61  ;;  %v4755_v61 = vld [vmem:[%s5545_s26 + $0x15c] sm:$0xf] }
 0x10c   : > { %v1675_v60 = vpop.f32.mrf.mxu2  ;;  %v1579_v63 = vpop.f32.mrf.mxu0 }
 0x10d   : > { %v1676_v62 = vadd.f32 %v1675_v60, %v1627_v39  ;;  %v1724_v7 = vpop.f32.mrf.mxu3  ;;  %v1580_v18 = vadd.f32 %v1579_v63, %v5944_v55  ;;  %v1628_v19 = vpop.f32.mrf.mxu1  ;;  %v4004_v39 = vld [vmem:[%s7688_s1 + $0x98] sm:$0xf0]  ;;  %v3852_v60 = vld [vmem:[%s5545_s26 + $0x170] sm:$0xf0]  ;;  %v3858_v63 = vld [vmem:[%s5545_s26 + $0x158] sm:$0xf] }
 0x10e   : > { %v4007_v36 = vor.u32 %v4794_v6, %v4004_v39  ;;  %v6204_v5 = vor.u32 %v4754_v56, %v3852_v60  ;;  %v6206_v4 = vor.u32 %v4759_v1, %v3858_v63  ;;  %v6209_v6 = vor.u32 %v4755_v61, %v3860_v3  ;;  %v4808_v1 = vld [vmem:[%s7688_s1 + $0x104] sm:$0xf] }
 0x10f   : > { %v6186_v38 = vadd.f32 %v1724_v7, %v1676_v62  ;;  %v1629_v32 = vadd.f32 %v1628_v19, %v1580_v18  ;;  %v6202_v7 = vor.u32 %v4758_v17, %v3850_v33  ;;  %v4824_v33 = vld [vmem:[%s7688_s1 + $0x184] sm:$0xf]  ;;  %v4124_v17 = vld [vmem:[%s7688_s1 + $0x188] sm:$0xf0] }
 0x110   : > { %1995 = vmatpush.bf16.msra.mxu1 %v4007_v36  ;;  %7717 = vst [vmem:[#allocation39_spill] sm:$0xff] %v6204_v5  ;;  %v4127_v63 = vor.u32 %v4824_v33, %v4124_v17  ;;  %v4766_v33 = vld [vmem:[%s5545_s26 + $0x1ac] sm:$0xf0]  ;;  %v4762_v17 = vld [vmem:[%s5545_s26 + $0x194] sm:$0xf] }
 0x111   : > { %7716 = vst [vmem:[#allocation38_spill] sm:$0xff] %v6202_v7 }
 0x112   : > { %7718 = vst [vmem:[#allocation40_spill] sm:$0xff] %v6206_v4  ;;  %2094 = vmatpush.bf16.msra.mxu3 %v4127_v63  ;;  %v3892_v63 = vld [vmem:[%s5545_s26 + $0x1b8] sm:$0xf0] }
 0x113   : > { %7719 = vst [vmem:[#allocation41_spill] sm:$0xff] %v6209_v6 }
 0x114   : > { %v1677_v62 = vpop.f32.mrf.mxu2  ;;  %v1582_v0 = vpop.f32.mrf.mxu0 }
 0x115   : > { %v1678_v16 = vadd.f32 %v1677_v62, %v1629_v32  ;;  %v1726_v28 = vpop.f32.mrf.mxu3  ;;  %v1583_v18 = vadd.f32 %v1582_v0, %v5944_v55  ;;  %v1631_v19 = vpop.f32.mrf.mxu1  ;;  %v4060_v0 = vld [vmem:[%s7688_s1 + $0x108] sm:$0xf0] }
 0x116   : > { %v3932_v32 = vld [vmem:[%s7688_s1 + $0x8] sm:$0xf0] }
 0x117   : > { %v6211_v39 = vadd.f32 %v1726_v28, %v1678_v16  ;;  %v1632_v36 = vadd.f32 %v1631_v19, %v1583_v18  ;;  %1777 = vmatmul.bf16.gmra.mxu0 %v6202_v7  ;;  %v4776_v16 = vld [vmem:[%s7688_s1 + $0x4] sm:$0xf]  ;;  %v4063_v28 = vor.u32 %v4808_v1, %v4060_v0 }
 0x118   : > { %1826 = vmatmul.bf16.gmra.mxu1 %v6204_v5  ;;  %v3935_v60 = vor.u32 %v4776_v16, %v3932_v32  ;;  %v4792_v0 = vld [vmem:[%s7688_s1 + $0x84] sm:$0xf] }
 0x119   : > { %1875 = vmatmul.bf16.gmra.mxu2 %v6206_v4 }
 0x11a   : > { %1924 = vmatmul.bf16.gmra.mxu3 %v6209_v6  ;;  %2045 = vmatpush.bf16.msra.mxu2 %v4063_v28  ;;  %v3882_v28 = vld [vmem:[%s5545_s26 + $0x190] sm:$0xf]  ;;  %v4767_v6 = vld [vmem:[%s5545_s26 + $0x1b4] sm:$0xf0] }
 0x11b   : > { %1947 = vmatpush.bf16.msra.mxu0 %v3935_v60  ;;  %v4763_v60 = vld [vmem:[%s5545_s26 + $0x19c] sm:$0xf] }
 0x11c   : > { %v1680_v56 = vpop.f32.mrf.mxu2  ;;  %v1584_v62 = vpop.f32.mrf.mxu0 }
 0x11d   : > { %v1681_v61 = vadd.f32 %v1680_v56, %v1632_v36  ;;  %v1729_v3 = vpop.f32.mrf.mxu3  ;;  %v1585_v18 = vadd.f32 %v1584_v62, %v5944_v55  ;;  %v1633_v19 = vpop.f32.mrf.mxu1  ;;  %v3996_v36 = vld [vmem:[%s7688_s1 + $0x88] sm:$0xf0]  ;;  %v3884_v56 = vld [vmem:[%s5545_s26 + $0x1b0] sm:$0xf0]  ;;  %v3890_v62 = vld [vmem:[%s5545_s26 + $0x198] sm:$0xf] }
 0x11e   : > { %v3999_v32 = vor.u32 %v4792_v0, %v3996_v36  ;;  %v6254_v2 = vor.u32 %v4762_v17, %v3884_v56  ;;  %v6256_v23 = vor.u32 %v4767_v6, %v3890_v62  ;;  %v6259_v0 = vor.u32 %v4763_v60, %v3892_v63  ;;  %v4886_v6 = vld [vmem:[%s7688_s1 + $0x374] sm:$0xf] }
 0x11f   : > { %v6236_v1 = vadd.f32 %v1729_v3, %v1681_v61  ;;  %v1634_v16 = vadd.f32 %v1633_v19, %v1585_v18  ;;  %v6252_v3 = vor.u32 %v4766_v33, %v3882_v28  ;;  %v4902_v28 = vld [vmem:[%s7688_s1 + $0x3f4] sm:$0xf]  ;;  %v4436_v33 = vld [vmem:[%s7688_s1 + $0x3f8] sm:$0xf0] }
 0x120   : > { %1996 = vmatpush.bf16.msra.mxu1 %v3999_v32  ;;  %7721 = vst [vmem:[#allocation43_spill] sm:$0xff] %v6254_v2  ;;  %v4439_v62 = vor.u32 %v4902_v28, %v4436_v33  ;;  %v3916_v28 = vld [vmem:[%s5545_s26 + $0x1f0] sm:$0xf0]  ;;  %v3922_v33 = vld [vmem:[%s5545_s26 + $0x1d8] sm:$0xf] }
 0x121   : > { %7720 = vst [vmem:[#allocation42_spill] sm:$0xff] %v6252_v3 }
 0x122   : > { %7722 = vst [vmem:[#allocation44_spill] sm:$0xff] %v6256_v23  ;;  %2283 = vmatpush.bf16.msrb.mxu3 %v4439_v62  ;;  %v3924_v62 = vld [vmem:[%s5545_s26 + $0x1f8] sm:$0xf0] }
 0x123   : > { %7723 = vst [vmem:[#allocation45_spill] sm:$0xff] %v6259_v0 }
 0x124   : > { %v1682_v61 = vpop.f32.mrf.mxu2  ;;  %v1587_v7 = vpop.f32.mrf.mxu0 }
 0x125   : > { %v1683_v4 = vadd.f32 %v1682_v61, %v1634_v16  ;;  %v1731_v5 = vpop.f32.mrf.mxu3  ;;  %v1588_v18 = vadd.f32 %v1587_v7, %v5944_v55  ;;  %v1636_v19 = vpop.f32.mrf.mxu1  ;;  %v4372_v7 = vld [vmem:[%s7688_s1 + $0x378] sm:$0xf0] }
 0x126   : > { %v4244_v16 = vld [vmem:[%s7688_s1 + $0x278] sm:$0xf0] }
 0x127   : > { %v6261_v36 = vadd.f32 %v1731_v5, %v1683_v4  ;;  %v1637_v32 = vadd.f32 %v1636_v19, %v1588_v18  ;;  %1782 = vmatmul.bf16.gmra.mxu0 %v6252_v3  ;;  %v4854_v4 = vld [vmem:[%s7688_s1 + $0x274] sm:$0xf]  ;;  %v4375_v5 = vor.u32 %v4886_v6, %v4372_v7 }
 0x128   : > { %1831 = vmatmul.bf16.gmra.mxu1 %v6254_v2  ;;  %v4247_v56 = vor.u32 %v4854_v4, %v4244_v16  ;;  %v4774_v4 = vld [vmem:[%s5545_s26 + $0x1ec] sm:$0xf0]  ;;  %v4770_v16 = vld [vmem:[%s5545_s26 + $0x1d4] sm:$0xf] }
 0x129   : > { %1880 = vmatmul.bf16.gmra.mxu2 %v6256_v23  ;;  %v6304_v2 = vor.u32 %v4770_v16, %v3916_v28  ;;  %v4428_v16 = vld [vmem:[%s7688_s1 + $0x3e8] sm:$0xf0] }
 0x12a   : > { %1929 = vmatmul.bf16.gmra.mxu3 %v6259_v0  ;;  %2234 = vmatpush.bf16.msrb.mxu2 %v4375_v5  ;;  %v3914_v0 = vld [vmem:[%s5545_s26 + $0x1d0] sm:$0xf]  ;;  %v4308_v5 = vld [vmem:[%s7688_s1 + $0x2f8] sm:$0xf0] }
 0x12b   : > { %2136 = vmatpush.bf16.msrb.mxu0 %v4247_v56  ;;  %v4771_v56 = vld [vmem:[%s5545_s26 + $0x1dc] sm:$0xf] }
 0x12c   : > { %v1685_v17 = vpop.f32.mrf.mxu2  ;;  %v1589_v61 = vpop.f32.mrf.mxu0  ;;  %v6309_v20 = vor.u32 %v4771_v56, %v3924_v62 }
 0x12d   : > { %v1686_v60 = vadd.f32 %v1685_v17, %v1637_v32  ;;  %v1734_v63 = vpop.f32.mrf.mxu3  ;;  %v1590_v18 = vadd.f32 %v1589_v61, %v5944_v55  ;;  %v1638_v19 = vpop.f32.mrf.mxu1  ;;  %v4870_v32 = vld [vmem:[%s7688_s1 + $0x2f4] sm:$0xf]  ;;  %v4775_v17 = vld [vmem:[%s5545_s26 + $0x1f4] sm:$0xf0] }
 0x12e   : > { %v4311_v61 = vor.u32 %v4870_v32, %v4308_v5  ;;  %v6306_v3 = vor.u32 %v4775_v17, %v3922_v33 }
 0x12f   : > { %v6286_v6 = vadd.f32 %v1734_v63, %v1686_v60  ;;  %v1639_v7 = vadd.f32 %v1638_v19, %v1590_v18  ;;  %v6302_v63 = vor.u32 %v4774_v4, %v3914_v0  ;;  %v4884_v0 = vld [vmem:[%s7688_s1 + $0x364] sm:$0xf] }
 0x130   : > { %2185 = vmatpush.bf16.msrb.mxu1 %v4311_v61  ;;  %v4900_v4 = vld [vmem:[%s7688_s1 + $0x3e4] sm:$0xf] }
 0x131   : > { %v4431_v33 = vor.u32 %v4900_v4, %v4428_v16 }
 0x133   : > { %2284 = vmatpush.bf16.msrb.mxu3 %v4431_v33  ;;  %v4356_v33 = vld [vmem:[%s7688_s1 + $0x358] sm:$0xf0] }
 0x134   : > { %v1687_v60 = vpop.f32.mrf.mxu2  ;;  %v1592_v23 = vpop.f32.mrf.mxu0 }
 0x135   : > { %v1688_v18 = vadd.f32 %v1687_v60, %v1639_v7  ;;  %v1736_v19 = vpop.f32.mrf.mxu3  ;;  %v1593_v22 = vadd.f32 %v1592_v23, %v5944_v55  ;;  %v1641_v21 = vpop.f32.mrf.mxu1  ;;  %v4364_v23 = vld [vmem:[%s7688_s1 + $0x368] sm:$0xf0] }
 0x136   : > { %v4236_v7 = vld [vmem:[%s7688_s1 + $0x268] sm:$0xf0] }
 0x137   : > { %v6311_v47 = vadd.f32 %v1736_v19, %v1688_v18  ;;  %v1642_v32 = vadd.f32 %v1641_v21, %v1593_v22  ;;  %1787 = vmatmul.bf16.gmra.mxu0 %v6302_v63  ;;  %v4852_v21 = vld [vmem:[%s7688_s1 + $0x264] sm:$0xf]  ;;  %v4367_v22 = vor.u32 %v4884_v0, %v4364_v23 }
 0x138   : > { %1836 = vmatmul.bf16.gmra.mxu1 %v6304_v2  ;;  %v4239_v28 = vor.u32 %v4852_v21, %v4236_v7  ;;  %v4868_v0 = vld [vmem:[%s7688_s1 + $0x2e4] sm:$0xf] }
 0x139   : > { %1885 = vmatmul.bf16.gmra.mxu2 %v6306_v3 }
 0x13a   : > { %1934 = vmatmul.bf16.gmra.mxu3 %v6309_v20  ;;  %2235 = vmatpush.bf16.msrb.mxu2 %v4367_v22 }
 0x13b   : > { %2137 = vmatpush.bf16.msrb.mxu0 %v4239_v28  ;;  %v4882_v28 = vld [vmem:[%s7688_s1 + $0x354] sm:$0xf] }
 0x13c   : > { %v1690_v5 = vpop.f32.mrf.mxu2  ;;  %v1594_v56 = vpop.f32.mrf.mxu0 }
 0x13d   : > { %v1691_v17 = vadd.f32 %v1690_v5, %v1642_v32  ;;  %v1739_v61 = vpop.f32.mrf.mxu3  ;;  %v1595_v62 = vadd.f32 %v1594_v56, %v5944_v55  ;;  %v1643_v60 = vpop.f32.mrf.mxu1  ;;  %v4300_v32 = vld [vmem:[%s7688_s1 + $0x2e8] sm:$0xf0] }
 0x13e   : > { %v4303_v23 = vor.u32 %v4868_v0, %v4300_v32 }
 0x13f   : > { %v6336_v18 = vadd.f32 %v1739_v61, %v1691_v17  ;;  %v1644_v19 = vadd.f32 %v1643_v60, %v1595_v62  ;;  %v4420_v17 = vld [vmem:[%s7688_s1 + $0x3d8] sm:$0xf0] }
 0x140   : > { %2186 = vmatpush.bf16.msrb.mxu1 %v4303_v23 }
 0x144   : > { %v1692_v21 = vpop.f32.mrf.mxu2  ;;  %v1753_v55 = vpop.f32.mrf.mxu0 }
 0x145   : > { %v1693_v22 = vadd.f32 %v1692_v21, %v1644_v19  ;;  %v1741_v7 = vpop.f32.mrf.mxu3  ;;  %v1802_v4 = vpop.f32.mrf.mxu1  ;;  %v1754_v5 = vadd.f32 %v1753_v55, %v5986_v58 }
 0x147   : > { %v6347_v16 = vadd.f32 %v1741_v7, %v1693_v22  ;;  %1948 = vmatmul.bf16.vlgmr.msra.gmra.mxu0 %v5574_v48  ;;  %v4850_v48 = vld [vmem:[%s7688_s1 + $0x254] sm:$0xf]  ;;  %v1803_v58 = vadd.f32 %v1802_v4, %v1754_v5  ;;  %v4292_v7 = vld [vmem:[%s7688_s1 + $0x2d8] sm:$0xf0] }
 0x148   : > { %1997 = vmatmul.bf16.vlgmr.msra.gmra.mxu1 %v5581_v53  ;;  %v4359_v53 = vor.u32 %v4882_v28, %v4356_v33  ;;  %v4866_v22 = vld [vmem:[%s7688_s1 + $0x2d4] sm:$0xf] }
 0x149   : > { %2046 = vmatmul.bf16.vlgmr.msra.gmra.mxu2 %v5583_v54  ;;  %v4228_v54 = vld [vmem:[%s7688_s1 + $0x258] sm:$0xf0]  ;;  %v4295_v55 = vor.u32 %v4866_v22, %v4292_v7  ;;  %v4864_v22 = vld [vmem:[%s7688_s1 + $0x2c4] sm:$0xf]  ;;  %v4284_v7 = vld [vmem:[%s7688_s1 + $0x2c8] sm:$0xf0] }
 0x14a   : > { %2095 = vmatmul.bf16.vlgmr.msra.gmra.mxu3 %v5591_v57  ;;  %v4898_v57 = vld [vmem:[%s7688_s1 + $0x3d4] sm:$0xf]  ;;  %v4231_v56 = vor.u32 %v4850_v48, %v4228_v54  ;;  %2236 = vmatpush.bf16.msrb.mxu2 %v4359_v53  ;;  %v4880_v54 = vld [vmem:[%s7688_s1 + $0x344] sm:$0xf] }
 0x14b   : > { %v4423_v62 = vor.u32 %v4898_v57, %v4420_v17  ;;  %2187 = vmatpush.bf16.msrb.mxu1 %v4295_v55  ;;  %v4348_v57 = vld [vmem:[%s7688_s1 + $0x348] sm:$0xf0]  ;;  %v4287_v55 = vor.u32 %v4864_v22, %v4284_v7 }
 0x14c   : > { %v1851_v61 = vpop.f32.mrf.mxu2  ;;  %v1755_v0 = vpop.f32.mrf.mxu0  ;;  %2138 = vmatpush.bf16.msrb.mxu0 %v4231_v56  ;;  %v4351_v17 = vor.u32 %v4880_v54, %v4348_v57  ;;  %v4340_v54 = vld [vmem:[%s7688_s1 + $0x338] sm:$0xf0] }
 0x14d   : > { %v1852_v60 = vadd.f32 %v1851_v61, %v1803_v58  ;;  %v1900_v19 = vpop.f32.mrf.mxu3  ;;  %v1804_v32 = vpop.f32.mrf.mxu1  ;;  %2285 = vmatpush.bf16.msrb.mxu3 %v4423_v62  ;;  %v1756_v21 = vadd.f32 %v1755_v0, %v6011_v37 }
 0x14e   : > { %2237 = vmatpush.bf16.msrb.mxu2 %v4351_v17 }
 0x14f   : > { %v1901_v23 = vadd.f32 %v1900_v19, %v1852_v60  ;;  %v1805_v4 = vadd.f32 %v1804_v32, %v1756_v21  ;;  %2188 = vmatpush.bf16.msrb.mxu1 %v4287_v55 }
 0x151   : > { %3358 = vst [vmem:[%s6377_s28] sm:$0xff] %v1901_v23 }
 0x154   : > { %v1853_v5 = vpop.f32.mrf.mxu2  ;;  %v1758_v37 = vpop.f32.mrf.mxu0 }
 0x155   : > { %v1854_v28 = vadd.f32 %v1853_v5, %v1805_v4  ;;  %v1902_v33 = vpop.f32.mrf.mxu3  ;;  %v1807_v48 = vpop.f32.mrf.mxu1  ;;  %v1759_v53 = vadd.f32 %v1758_v37, %v6036_v29  ;;  %v4848_v29 = vld [vmem:[%s7688_s1 + $0x244] sm:$0xf] }
 0x157   : > { %v1903_v58 = vadd.f32 %v1902_v33, %v1854_v28  ;;  %1953 = vmatmul.bf16.gmra.mxu0 %v5641_v24  ;;  %v1808_v24 = vadd.f32 %v1807_v48, %v1759_v53  ;;  %v4878_v53 = vld [vmem:[%s7688_s1 + $0x334] sm:$0xf] }
 0x158   : > { %2002 = vmatmul.bf16.gmra.mxu1 %v5643_v25  ;;  %v4220_v25 = vld [vmem:[%s7688_s1 + $0x248] sm:$0xf0]  ;;  %v4343_v57 = vor.u32 %v4878_v53, %v4340_v54 }
 0x159   : > { %3359 = vst [vmem:[%s6377_s28 + $0x8] sm:$0xff] %v1903_v58  ;;  %2051 = vmatmul.bf16.gmra.mxu2 %v5645_v26  ;;  %v4896_v26 = vld [vmem:[%s7688_s1 + $0x3c4] sm:$0xf]  ;;  %v4223_v56 = vor.u32 %v4848_v29, %v4220_v25 }
 0x15a   : > { %2100 = vmatmul.bf16.gmra.mxu3 %v5647_v27  ;;  %v4412_v27 = vld [vmem:[%s7688_s1 + $0x3c8] sm:$0xf0]  ;;  %2238 = vmatpush.bf16.msrb.mxu2 %v4343_v57 }
 0x15b   : > { %v4415_v62 = vor.u32 %v4896_v26, %v4412_v27  ;;  %2139 = vmatpush.bf16.msrb.mxu0 %v4223_v56 }
 0x15c   : > { %v1856_v61 = vpop.f32.mrf.mxu2  ;;  %v1760_v0 = vpop.f32.mrf.mxu0 }
 0x15d   : > { %v1857_v60 = vadd.f32 %v1856_v61, %v1808_v24  ;;  %v1905_v19 = vpop.f32.mrf.mxu3  ;;  %v1809_v32 = vpop.f32.mrf.mxu1  ;;  %2286 = vmatpush.bf16.msrb.mxu3 %v4415_v62  ;;  %v1761_v21 = vadd.f32 %v1760_v0, %v6061_v31 }
 0x15f   : > { %v1906_v23 = vadd.f32 %v1905_v19, %v1857_v60  ;;  %v1810_v4 = vadd.f32 %v1809_v32, %v1761_v21  ;;  %v4862_v60 = vld [vmem:[%s7688_s1 + $0x2b4] sm:$0xf]  ;;  %v4276_v19 = vld [vmem:[%s7688_s1 + $0x2b8] sm:$0xf0] }
 0x160   : > { %v4279_v0 = vor.u32 %v4862_v60, %v4276_v19 }
 0x161   : > { %3360 = vst [vmem:[%s6377_s28 + $0x10] sm:$0xff] %v1906_v23 }
 0x162   : > { %2189 = vmatpush.bf16.msrb.mxu1 %v4279_v0 }
 0x164   : > { %v1858_v5 = vpop.f32.mrf.mxu2  ;;  %v1763_v37 = vpop.f32.mrf.mxu0 }
 0x165   : > { %v1859_v28 = vadd.f32 %v1858_v5, %v1810_v4  ;;  %v1907_v33 = vpop.f32.mrf.mxu3  ;;  %v1812_v48 = vpop.f32.mrf.mxu1  ;;  %v1764_v31 = vadd.f32 %v1763_v37, %v6086_v34  ;;  %v4846_v34 = vld [vmem:[%s7688_s1 + $0x234] sm:$0xf]  ;;  %v4876_v5 = vld [vmem:[%s7688_s1 + $0x324] sm:$0xf] }
 0x167   : > { %v1908_v58 = vadd.f32 %v1907_v33, %v1859_v28  ;;  %1958 = vmatmul.bf16.gmra.mxu0 %v5685_v49  ;;  %v1813_v49 = vadd.f32 %v1812_v48, %v1764_v31  ;;  %v4332_v28 = vld [vmem:[%s7688_s1 + $0x328] sm:$0xf0] }
 0x168   : > { %2007 = vmatmul.bf16.gmra.mxu1 %v5687_v50  ;;  %v4212_v50 = vld [vmem:[%s7688_s1 + $0x238] sm:$0xf0]  ;;  %v4335_v33 = vor.u32 %v4876_v5, %v4332_v28 }
 0x169   : > { %3361 = vst [vmem:[%s6377_s28 + $0x18] sm:$0xff] %v1908_v58  ;;  %2056 = vmatmul.bf16.gmra.mxu2 %v5689_v51  ;;  %v4894_v51 = vld [vmem:[%s7688_s1 + $0x3b4] sm:$0xf]  ;;  %v4215_v24 = vor.u32 %v4846_v34, %v4212_v50  ;;  %v4860_v50 = vld [vmem:[%s7688_s1 + $0x2a4] sm:$0xf] }
 0x16a   : > { %2105 = vmatmul.bf16.gmra.mxu3 %v5691_v52  ;;  %v4404_v52 = vld [vmem:[%s7688_s1 + $0x3b8] sm:$0xf0]  ;;  %2239 = vmatpush.bf16.msrb.mxu2 %v4335_v33 }
 0x16b   : > { %v4407_v17 = vor.u32 %v4894_v51, %v4404_v52  ;;  %2140 = vmatpush.bf16.msrb.mxu0 %v4215_v24  ;;  %v4268_v51 = vld [vmem:[%s7688_s1 + $0x2a8] sm:$0xf0]  ;;  %v4260_v5 = vld [vmem:[%s7688_s1 + $0x298] sm:$0xf0] }
 0x16c   : > { %v1861_v29 = vpop.f32.mrf.mxu2  ;;  %v1765_v27 = vpop.f32.mrf.mxu0  ;;  %v4271_v52 = vor.u32 %v4860_v50, %v4268_v51 }
 0x16d   : > { %v1862_v25 = vadd.f32 %v1861_v29, %v1813_v49  ;;  %v1910_v26 = vpop.f32.mrf.mxu3  ;;  %v1814_v61 = vpop.f32.mrf.mxu1  ;;  %2287 = vmatpush.bf16.msrb.mxu3 %v4407_v17  ;;  %v1766_v62 = vadd.f32 %v1765_v27, %v6111_v35 }
 0x16e   : > { %2190 = vmatpush.bf16.msrb.mxu1 %v4271_v52 }
 0x16f   : > { %v1911_v56 = vadd.f32 %v1910_v26, %v1862_v25  ;;  %v1815_v32 = vadd.f32 %v1814_v61, %v1766_v62  ;;  %v4324_v62 = vld [vmem:[%s7688_s1 + $0x318] sm:$0xf0] }
 0x171   : > { %3362 = vst [vmem:[%s6377_s28 + $0x20] sm:$0xff] %v1911_v56  ;;  %v4874_v56 = vld [vmem:[%s7688_s1 + $0x314] sm:$0xf] }
 0x172   : > { %v4327_v60 = vor.u32 %v4874_v56, %v4324_v62 }
 0x174   : > { %v1863_v23 = vpop.f32.mrf.mxu2  ;;  %v1768_v7 = vpop.f32.mrf.mxu0  ;;  %2240 = vmatpush.bf16.msrb.mxu2 %v4327_v60 }
 0x175   : > { %v1864_v21 = vadd.f32 %v1863_v23, %v1815_v32  ;;  %v1912_v22 = vpop.f32.mrf.mxu3  ;;  %v1817_v55 = vpop.f32.mrf.mxu1  ;;  %v1769_v35 = vadd.f32 %v1768_v7, %v6136_v30  ;;  %v4844_v30 = vld [vmem:[%s7688_s1 + $0x224] sm:$0xf] }
 0x177   : > { %v1913_v4 = vadd.f32 %v1912_v22, %v1864_v21  ;;  %1963 = vmatmul.bf16.gmra.mxu0 %v5729_v12  ;;  %v1818_v12 = vadd.f32 %v1817_v55, %v1769_v35  ;;  %v4858_v35 = vld [vmem:[%s7688_s1 + $0x294] sm:$0xf] }
 0x178   : > { %2012 = vmatmul.bf16.gmra.mxu1 %v5731_v13  ;;  %v4204_v13 = vld [vmem:[%s7688_s1 + $0x228] sm:$0xf0]  ;;  %v4263_v28 = vor.u32 %v4858_v35, %v4260_v5  ;;  %v7726_v35 = vld [vmem:[#allocation15_spill] sm:$0xff]  ;;  %v7727_v5 = vld [vmem:[#allocation16_spill] sm:$0xff] }
 0x179   : > { %3363 = vst [vmem:[%s6377_s28 + $0x28] sm:$0xff] %v1913_v4  ;;  %2061 = vmatmul.bf16.gmra.mxu2 %v5733_v14  ;;  %v4892_v14 = vld [vmem:[%s7688_s1 + $0x3a4] sm:$0xf]  ;;  %v4207_v48 = vor.u32 %v4844_v30, %v4204_v13 }
 0x17a   : > { %2110 = vmatmul.bf16.gmra.mxu3 %v5735_v15  ;;  %v4396_v15 = vld [vmem:[%s7688_s1 + $0x3a8] sm:$0xf0]  ;;  %2191 = vmatpush.bf16.msrb.mxu1 %v4263_v28  ;;  %v7728_v28 = vld [vmem:[#allocation17_spill] sm:$0xff] }
 0x17b   : > { %v4399_v58 = vor.u32 %v4892_v14, %v4396_v15  ;;  %2141 = vmatpush.bf16.msrb.mxu0 %v4207_v48  ;;  %v4872_v48 = vld [vmem:[%s7688_s1 + $0x304] sm:$0xf] }
 0x17c   : > { %v1866_v37 = vpop.f32.mrf.mxu2  ;;  %v1770_v54 = vpop.f32.mrf.mxu0 }
 0x17d   : > { %v1867_v31 = vadd.f32 %v1866_v37, %v1818_v12  ;;  %v1915_v53 = vpop.f32.mrf.mxu3  ;;  %v1819_v34 = vpop.f32.mrf.mxu1  ;;  %2288 = vmatpush.bf16.msrb.mxu3 %v4399_v58  ;;  %v1771_v57 = vadd.f32 %v1770_v54, %v6161_v59  ;;  %v4316_v58 = vld [vmem:[%s7688_s1 + $0x308] sm:$0xf0] }
 0x17f   : > { %v1916_v49 = vadd.f32 %v1915_v53, %v1867_v31  ;;  %v1820_v29 = vadd.f32 %v1819_v34, %v1771_v57  ;;  %v4319_v31 = vor.u32 %v4872_v48, %v4316_v58 }
 0x181   : > { %3364 = vst [vmem:[%s6377_s28 + $0x30] sm:$0xff] %v1916_v49  ;;  %2241 = vmatpush.bf16.msrb.mxu2 %v4319_v31 }
 0x184   : > { %v1868_v24 = vpop.f32.mrf.mxu2  ;;  %v1773_v26 = vpop.f32.mrf.mxu0 }
 0x185   : > { %v1869_v17 = vadd.f32 %v1868_v24, %v1820_v29  ;;  %v1917_v25 = vpop.f32.mrf.mxu3  ;;  %v1822_v27 = vpop.f32.mrf.mxu1  ;;  %v1774_v59 = vadd.f32 %v1773_v26, %v6186_v38  ;;  %v4842_v38 = vld [vmem:[%s7688_s1 + $0x214] sm:$0xf]  ;;  %v4856_v24 = vld [vmem:[%s7688_s1 + $0x284] sm:$0xf] }
 0x187   : > { %v1918_v61 = vadd.f32 %v1917_v25, %v1869_v17  ;;  %1968 = vmatmul.bf16.gmra.mxu0 %v5773_v40  ;;  %v1823_v40 = vadd.f32 %v1822_v27, %v1774_v59  ;;  %v4252_v17 = vld [vmem:[%s7688_s1 + $0x288] sm:$0xf0] }
 0x188   : > { %2017 = vmatmul.bf16.gmra.mxu1 %v5775_v41  ;;  %v4196_v41 = vld [vmem:[%s7688_s1 + $0x218] sm:$0xf0]  ;;  %v4255_v25 = vor.u32 %v4856_v24, %v4252_v17 }
 0x189   : > { %3365 = vst [vmem:[%s6377_s28 + $0x38] sm:$0xff] %v1918_v61  ;;  %2066 = vmatmul.bf16.gmra.mxu2 %v5777_v42  ;;  %v4890_v42 = vld [vmem:[%s7688_s1 + $0x394] sm:$0xf]  ;;  %v4199_v0 = vor.u32 %v4842_v38, %v4196_v41 }
 0x18a   : > { %2115 = vmatmul.bf16.gmra.mxu3 %v5779_v43  ;;  %v4388_v43 = vld [vmem:[%s7688_s1 + $0x398] sm:$0xf0]  ;;  %2192 = vmatpush.bf16.msrb.mxu1 %v4255_v25 }
 0x18b   : > { %v4391_v32 = vor.u32 %v4890_v42, %v4388_v43  ;;  %2142 = vmatpush.bf16.msrb.mxu0 %v4199_v0 }
 0x18c   : > { %v1871_v19 = vpop.f32.mrf.mxu2  ;;  %v1775_v22 = vpop.f32.mrf.mxu0 }
 0x18d   : > { %v1872_v23 = vadd.f32 %v1871_v19, %v1823_v40  ;;  %v1920_v21 = vpop.f32.mrf.mxu3  ;;  %v1824_v7 = vpop.f32.mrf.mxu1  ;;  %2289 = vmatpush.bf16.msrb.mxu3 %v4391_v32  ;;  %v1776_v4 = vadd.f32 %v1775_v22, %v6211_v39  ;;  %v7724_v40 = vld [vmem:[#allocation13_spill] sm:$0xff] }
 0x18f   : > { %v1921_v55 = vadd.f32 %v1920_v21, %v1872_v23  ;;  %v1825_v30 = vadd.f32 %v1824_v7, %v1776_v4  ;;  %v7725_v4 = vld [vmem:[#allocation14_spill] sm:$0xff] }
 0x191   : > { %3366 = vst [vmem:[%s6377_s28 + $0x40] sm:$0xff] %v1921_v55 }
 0x194   : > { %v1873_v12 = vpop.f32.mrf.mxu2  ;;  %v1778_v14 = vpop.f32.mrf.mxu0 }
 0x195   : > { %v1874_v33 = vadd.f32 %v1873_v12, %v1825_v30  ;;  %v1922_v13 = vpop.f32.mrf.mxu3  ;;  %v1827_v15 = vpop.f32.mrf.mxu1  ;;  %v1779_v39 = vadd.f32 %v1778_v14, %v6236_v1  ;;  %v4840_v1 = vld [vmem:[%s7688_s1 + $0x204] sm:$0xf] }
 0x197   : > { %v1923_v37 = vadd.f32 %v1922_v13, %v1874_v33  ;;  %1973 = vmatmul.bf16.gmra.mxu0 %v5817_v8  ;;  %v1828_v8 = vadd.f32 %v1827_v15, %v1779_v39 }
 0x198   : > { %2022 = vmatmul.bf16.gmra.mxu1 %v5819_v9  ;;  %v4188_v9 = vld [vmem:[%s7688_s1 + $0x208] sm:$0xf0] }
 0x199   : > { %3367 = vst [vmem:[%s6377_s28 + $0x48] sm:$0xff] %v1923_v37  ;;  %2071 = vmatmul.bf16.gmra.mxu2 %v5821_v10  ;;  %v4888_v10 = vld [vmem:[%s7688_s1 + $0x384] sm:$0xf]  ;;  %v4191_v54 = vor.u32 %v4840_v1, %v4188_v9 }
 0x19a   : > { %2120 = vmatmul.bf16.gmra.mxu3 %v5823_v11  ;;  %v4380_v11 = vld [vmem:[%s7688_s1 + $0x388] sm:$0xf0] }
 0x19b   : > { %v4383_v34 = vor.u32 %v4888_v10, %v4380_v11  ;;  %2143 = vmatpush.bf16.msrb.mxu0 %v4191_v54  ;;  %v7729_v54 = vld [vmem:[#allocation18_spill] sm:$0xff] }
 0x19c   : > { %v1876_v53 = vpop.f32.mrf.mxu2  ;;  %v1780_v50 = vpop.f32.mrf.mxu0 }
 0x19d   : > { %v1877_v49 = vadd.f32 %v1876_v53, %v1828_v8  ;;  %v1925_v57 = vpop.f32.mrf.mxu3  ;;  %v1829_v51 = vpop.f32.mrf.mxu1  ;;  %2290 = vmatpush.bf16.msrb.mxu3 %v4383_v34  ;;  %v1781_v29 = vadd.f32 %v1780_v50, %v6261_v36  ;;  %v7731_v34 = vld [vmem:[#allocation20_spill] sm:$0xff]  ;;  %v4965_v50 = vld [vmem:[%s7733_s3 + $0x1e4] sm:$0xf0] }
 0x19f   : > { %v1926_v52 = vadd.f32 %v1925_v57, %v1877_v49  ;;  %v1830_v26 = vadd.f32 %v1829_v51, %v1781_v29  ;;  %v7732_v49 = vld [vmem:[#allocation21_spill] sm:$0xff]  ;;  %v4674_v57 = vld [vmem:[%s7733_s3 + $0x1c8] sm:$0xf]  ;;  %v4961_v51 = vld [vmem:[%s7733_s3 + $0x1cc] sm:$0xf] }
 0x1a0   : > { %v4676_v29 = vld [vmem:[%s7733_s3 + $0x1e8] sm:$0xf0] }
 0x1a1   : > { %3368 = vst [vmem:[%s6377_s28 + $0x50] sm:$0xff] %v1926_v52  ;;  %v4675_v52 = vor.u32 %v4965_v50, %v4674_v57  ;;  %v4679_v17 = vor.u32 %v4961_v51, %v4676_v29  ;;  %v7738_v50 = vld [vmem:[#allocation26_spill] sm:$0xff]  ;;  %v7739_v51 = vld [vmem:[#allocation27_spill] sm:$0xff]  ;;  %v7741_v29 = vld [vmem:[#allocation29_spill] sm:$0xff] }
 0x1a3   : > { %2936 = vmatpush.bf16.msra.mxu2 %v4675_v52  ;;  %2985 = vmatpush.bf16.msra.mxu3 %v4679_v17  ;;  %v7740_v52 = vld [vmem:[#allocation28_spill] sm:$0xff]  ;;  %v4949_v17 = vld [vmem:[%s7733_s3 + $0x164] sm:$0xf0] }
 0x1a4   : > { %v1878_v27 = vpop.f32.mrf.mxu2  ;;  %v1783_v56 = vpop.f32.mrf.mxu0 }
 0x1a5   : > { %v1879_v61 = vadd.f32 %v1878_v27, %v1830_v26  ;;  %v1927_v59 = vpop.f32.mrf.mxu3  ;;  %v1832_v62 = vpop.f32.mrf.mxu1  ;;  %v1784_v36 = vadd.f32 %v1783_v56, %v6286_v6 }
 0x1a7   : > { %v1928_v38 = vadd.f32 %v1927_v59, %v1879_v61  ;;  %1978 = vmatmul.bf16.gmra.mxu0 %v5861_v44  ;;  %v1833_v60 = vadd.f32 %v1832_v62, %v1784_v36  ;;  %v4964_v36 = vld [vmem:[%s7733_s3 + $0x1dc] sm:$0xf0] }
 0x1a8   : > { %2027 = vmatmul.bf16.gmra.mxu1 %v5863_v45 }
 0x1a9   : > { %3369 = vst [vmem:[%s6377_s28 + $0x58] sm:$0xff] %v1928_v38  ;;  %2076 = vmatmul.bf16.gmra.mxu2 %v5865_v46  ;;  %v4666_v38 = vld [vmem:[%s7733_s3 + $0x1c0] sm:$0xf] }
 0x1aa   : > { %2125 = vmatmul.bf16.gmra.mxu3 %v7724_v40  ;;  %v4960_v40 = vld [vmem:[%s7733_s3 + $0x1c4] sm:$0xf] }
 0x1ac   : > { %v1881_v41 = vpop.f32.mrf.mxu2  ;;  %v1785_v19 = vpop.f32.mrf.mxu0 }
 0x1ad   : > { %v1882_v42 = vadd.f32 %v1881_v41, %v1833_v60  ;;  %v1930_v43 = vpop.f32.mrf.mxu3  ;;  %v1834_v0 = vpop.f32.mrf.mxu1  ;;  %v1786_v23 = vadd.f32 %v1785_v19, %v6311_v47  ;;  %v4667_v60 = vor.u32 %v4964_v36, %v4666_v38  ;;  %v4668_v41 = vld [vmem:[%s7733_s3 + $0x1e0] sm:$0xf0] }
 0x1af   : > { %v1931_v32 = vadd.f32 %v1930_v43, %v1882_v42  ;;  %v1835_v6 = vadd.f32 %v1834_v0, %v1786_v23  ;;  %v4671_v42 = vor.u32 %v4960_v40, %v4668_v41  ;;  %2838 = vmatpush.bf16.msra.mxu0 %v4667_v60 }
 0x1b1   : > { %3370 = vst [vmem:[%s6377_s28 + $0x60] sm:$0xff] %v1931_v32  ;;  %2887 = vmatpush.bf16.msra.mxu1 %v4671_v42 }
 0x1b4   : > { %v1883_v44 = vpop.f32.mrf.mxu2  ;;  %v1788_v45 = vpop.f32.mrf.mxu0 }
 0x1b5   : > { %v1884_v21 = vadd.f32 %v1883_v44, %v1835_v6  ;;  %v1932_v22 = vpop.f32.mrf.mxu3  ;;  %v1837_v7 = vpop.f32.mrf.mxu1  ;;  %v1789_v55 = vadd.f32 %v1788_v45, %v6336_v18  ;;  %v5063_v18 = vld [vmem:[%s7695_s2] sm:$0x3]  ;;  %v7735_v45 = vld [vmem:[#allocation23_spill] sm:$0xff] }
 0x1b6   : > { %v6565_v39 = vperm.slane %v5063_v18, 1 }
 0x1b7   : > { %v1933_v46 = vadd.f32 %v1932_v22, %v1884_v21  ;;  %1983 = vmatmul.bf16.gmra.mxu0 %v7725_v4  ;;  %v1838_v47 = vadd.f32 %v1837_v7, %v1789_v55  ;;  %v7734_v22 = vld [vmem:[#allocation22_spill] sm:$0xff]  ;;  %v7736_v7 = vld [vmem:[#allocation24_spill] sm:$0xff] }
 0x1b8   : > { %2032 = vmatmul.bf16.gmra.mxu1 %v7726_v35  ;;  %v4642_v55 = vld [vmem:[%s7733_s3 + $0x188] sm:$0xf]  ;;  %v4953_v35 = vld [vmem:[%s7733_s3 + $0x18c] sm:$0xf] }
 0x1b9   : > { %3371 = vst [vmem:[%s6377_s28 + $0x68] sm:$0xff] %v1933_v46  ;;  %2081 = vmatmul.bf16.gmra.mxu2 %v7727_v5  ;;  %v7737_v46 = vld [vmem:[#allocation25_spill] sm:$0xff]  ;;  %v4957_v4 = vld [vmem:[%s7733_s3 + $0x1a4] sm:$0xf0] }
 0x1ba   : > { %2130 = vmatmul.bf16.gmra.mxu3 %v7728_v28  ;;  %v4643_v5 = vor.u32 %v4957_v4, %v4642_v55  ;;  %v4644_v28 = vld [vmem:[%s7733_s3 + $0x1a8] sm:$0xf0] }
 0x1bc   : > { %v1886_v30 = vpop.f32.mrf.mxu2  ;;  %v1790_v13 = vpop.f32.mrf.mxu0  ;;  %2937 = vmatpush.bf16.msra.mxu2 %v4643_v5  ;;  %v7742_v5 = vld [vmem:[#allocation30_spill] sm:$0xff] }
 0x1bd   : > { %v1887_v12 = vadd.f32 %v1886_v30, %v1838_v47  ;;  %v1935_v33 = vpop.f32.mrf.mxu3  ;;  %v1839_v14 = vpop.f32.mrf.mxu1  ;;  %v1791_v37 = vadd.f32 %v1790_v13, %v6347_v16  ;;  %v7730_v16 = vld [vmem:[#allocation19_spill] sm:$0xff]  ;;  %v4647_v30 = vor.u32 %v4953_v35, %v4644_v28 }
 0x1be   : > { %v7743_v28 = vld [vmem:[#allocation31_spill] sm:$0xff] }
 0x1bf   : > { %v1936_v15 = vadd.f32 %v1935_v33, %v1887_v12  ;;  %v1840_v48 = vadd.f32 %v1839_v14, %v1791_v37  ;;  %2986 = vmatpush.bf16.msra.mxu3 %v4647_v30  ;;  %v7745_v30 = vld [vmem:[#allocation33_spill] sm:$0xff] }
 0x1c1   : > { %3372 = vst [vmem:[%s6377_s28 + $0x70] sm:$0xff] %v1936_v15 }
 0x1c4   : > { %v1888_v58 = vpop.f32.mrf.mxu2  ;;  %v1949_v31 = vpop.f32.mrf.mxu0 }
 0x1c5   : > { %v1889_v1 = vadd.f32 %v1888_v58, %v1840_v48  ;;  %v1937_v8 = vpop.f32.mrf.mxu3  ;;  %v1950_v9 = vadd.f32 %v1949_v31, %v6565_v39  ;;  %v1998_v10 = vpop.f32.mrf.mxu1  ;;  %v4634_v48 = vld [vmem:[%s7733_s3 + $0x180] sm:$0xf]  ;;  %v4636_v31 = vld [vmem:[%s7733_s3 + $0x1a0] sm:$0xf0] }
 0x1c6   : > { %v4956_v58 = vld [vmem:[%s7733_s3 + $0x19c] sm:$0xf0] }
 0x1c7   : > { %v1938_v11 = vadd.f32 %v1937_v8, %v1889_v1  ;;  %v1999_v53 = vadd.f32 %v1998_v10, %v1950_v9  ;;  %2144 = vmatmul.bf16.vlgmr.msrb.gmra.mxu0 %v7729_v54  ;;  %v4952_v1 = vld [vmem:[%s7733_s3 + $0x184] sm:$0xf]  ;;  %v4635_v8 = vor.u32 %v4956_v58, %v4634_v48 }
 0x1c8   : > { %2193 = vmatmul.bf16.vlgmr.msrb.gmra.mxu1 %v7730_v16  ;;  %v4639_v9 = vor.u32 %v4952_v1, %v4636_v31 }
 0x1c9   : > { %3373 = vst [vmem:[%s6377_s28 + $0x78] sm:$0xff] %v1938_v11  ;;  %2242 = vmatmul.bf16.vlgmr.msrb.gmra.mxu2 %v7731_v34  ;;  %2839 = vmatpush.bf16.msra.mxu0 %v4635_v8 }
 0x1ca   : > { %2291 = vmatmul.bf16.vlgmr.msrb.gmra.mxu3 %v7732_v49  ;;  %2888 = vmatpush.bf16.msra.mxu1 %v4639_v9 }
 0x1cc   : > { %v2047_v24 = vpop.f32.mrf.mxu2  ;;  %v1951_v27 = vpop.f32.mrf.mxu0 }
 0x1cd   : > { %v2048_v25 = vadd.f32 %v2047_v24, %v1999_v53  ;;  %v2096_v26 = vpop.f32.mrf.mxu3  ;;  %v1952_v61 = vadd.f32 %v1951_v27, %v6565_v39  ;;  %v2000_v59 = vpop.f32.mrf.mxu1  ;;  %v4610_v24 = vld [vmem:[%s7733_s3 + $0x148] sm:$0xf]  ;;  %v4612_v27 = vld [vmem:[%s7733_s3 + $0x168] sm:$0xf0] }
 0x1cf   : > { %v6586_v56 = vadd.f32 %v2096_v26, %v2048_v25  ;;  %v2001_v62 = vadd.f32 %v2000_v59, %v1952_v61  ;;  %v4945_v25 = vld [vmem:[%s7733_s3 + $0x14c] sm:$0xf]  ;;  %v4611_v26 = vor.u32 %v4949_v17, %v4610_v24 }
 0x1d0   : > { %v4615_v59 = vor.u32 %v4945_v25, %v4612_v27 }
 0x1d1   : > { %2938 = vmatpush.bf16.msra.mxu2 %v4611_v26 }
 0x1d2   : > { %2987 = vmatpush.bf16.msra.mxu3 %v4615_v59  ;;  %v7747_v59 = vld [vmem:[#allocation35_spill] sm:$0xff] }
 0x1d4   : > { %v2049_v43 = vpop.f32.mrf.mxu2  ;;  %v1954_v32 = vpop.f32.mrf.mxu0 }
 0x1d5   : > { %v2050_v19 = vadd.f32 %v2049_v43, %v2001_v62  ;;  %v2098_v0 = vpop.f32.mrf.mxu3  ;;  %v1955_v23 = vadd.f32 %v1954_v32, %v6565_v39  ;;  %v2003_v6 = vpop.f32.mrf.mxu1  ;;  %v4602_v43 = vld [vmem:[%s7733_s3 + $0x140] sm:$0xf] }
 0x1d7   : > { %v6601_v44 = vadd.f32 %v2098_v0, %v2050_v19  ;;  %v2004_v21 = vadd.f32 %v2003_v6, %v1955_v23  ;;  %2149 = vmatmul.bf16.gmra.mxu0 %v7734_v22  ;;  %v4948_v19 = vld [vmem:[%s7733_s3 + $0x15c] sm:$0xf0]  ;;  %v4944_v0 = vld [vmem:[%s7733_s3 + $0x144] sm:$0xf] }
 0x1d8   : > { %2198 = vmatmul.bf16.gmra.mxu1 %v7735_v45  ;;  %v4603_v32 = vor.u32 %v4948_v19, %v4602_v43  ;;  %v4604_v23 = vld [vmem:[%s7733_s3 + $0x160] sm:$0xf0]  ;;  %v4548_v43 = vld [vmem:[%s7733_s3 + $0xe8] sm:$0xf0] }
 0x1d9   : > { %2247 = vmatmul.bf16.gmra.mxu2 %v7736_v7  ;;  %v4607_v6 = vor.u32 %v4944_v0, %v4604_v23 }
 0x1da   : > { %2296 = vmatmul.bf16.gmra.mxu3 %v7737_v46  ;;  %2840 = vmatpush.bf16.msra.mxu0 %v4603_v32 }
 0x1db   : > { %2889 = vmatpush.bf16.msra.mxu1 %v4607_v6 }
 0x1dc   : > { %v2052_v47 = vpop.f32.mrf.mxu2  ;;  %v1956_v13 = vpop.f32.mrf.mxu0 }
 0x1dd   : > { %v2053_v12 = vadd.f32 %v2052_v47, %v2004_v21  ;;  %v2101_v33 = vpop.f32.mrf.mxu3  ;;  %v1957_v14 = vadd.f32 %v1956_v13, %v6565_v39  ;;  %v2005_v15 = vpop.f32.mrf.mxu1  ;;  %v7744_v47 = vld [vmem:[#allocation32_spill] sm:$0xff]  ;;  %v4937_v13 = vld [vmem:[%s7733_s3 + $0x10c] sm:$0xf] }
 0x1df   : > { %v6620_v37 = vadd.f32 %v2101_v33, %v2053_v12  ;;  %v2006_v18 = vadd.f32 %v2005_v15, %v1957_v14  ;;  %v4578_v12 = vld [vmem:[%s7733_s3 + $0x108] sm:$0xf]  ;;  %v4580_v15 = vld [vmem:[%s7733_s3 + $0x128] sm:$0xf0] }
 0x1e0   : > { %v4941_v33 = vld [vmem:[%s7733_s3 + $0x124] sm:$0xf0]  ;;  %v4583_v48 = vor.u32 %v4937_v13, %v4580_v15  ;;  %v7751_v15 = vld [vmem:[#allocation39_spill] sm:$0xff] }
 0x1e1   : > { %v4579_v14 = vor.u32 %v4941_v33, %v4578_v12 }
 0x1e2   : > { %2988 = vmatpush.bf16.msra.mxu3 %v4583_v48  ;;  %v7753_v48 = vld [vmem:[#allocation41_spill] sm:$0xff] }
 0x1e3   : > { %2939 = vmatpush.bf16.msra.mxu2 %v4579_v14  ;;  %v7750_v14 = vld [vmem:[#allocation38_spill] sm:$0xff] }
 0x1e4   : > { %v2054_v10 = vpop.f32.mrf.mxu2  ;;  %v1959_v54 = vpop.f32.mrf.mxu0 }
 0x1e5   : > { %v2055_v11 = vadd.f32 %v2054_v10, %v2006_v18  ;;  %v2103_v53 = vpop.f32.mrf.mxu3  ;;  %v1960_v16 = vadd.f32 %v1959_v54, %v6565_v39  ;;  %v2008_v34 = vpop.f32.mrf.mxu1  ;;  %v4940_v54 = vld [vmem:[%s7733_s3 + $0x11c] sm:$0xf0] }
 0x1e7   : > { %v6635_v49 = vadd.f32 %v2103_v53, %v2055_v11  ;;  %v2009_v57 = vadd.f32 %v2008_v34, %v1960_v16  ;;  %2154 = vmatmul.bf16.gmra.mxu0 %v7738_v50  ;;  %v4570_v53 = vld [vmem:[%s7733_s3 + $0x100] sm:$0xf]  ;;  %v4936_v16 = vld [vmem:[%s7733_s3 + $0x104] sm:$0xf] }
 0x1e8   : > { %2203 = vmatmul.bf16.gmra.mxu1 %v7739_v51  ;;  %v4571_v34 = vor.u32 %v4940_v54, %v4570_v53 }
 0x1e9   : > { %2252 = vmatmul.bf16.gmra.mxu2 %v7740_v52 }
 0x1ea   : > { %2301 = vmatmul.bf16.gmra.mxu3 %v7741_v29  ;;  %2841 = vmatpush.bf16.msra.mxu0 %v4571_v34 }
 0x1ec   : > { %v2057_v61 = vpop.f32.mrf.mxu2  ;;  %v1961_v36 = vpop.f32.mrf.mxu0 }
 0x1ed   : > { %v2058_v62 = vadd.f32 %v2057_v61, %v2009_v57  ;;  %v2106_v38 = vpop.f32.mrf.mxu3  ;;  %v1962_v40 = vadd.f32 %v1961_v36, %v6565_v39  ;;  %v2010_v60 = vpop.f32.mrf.mxu1  ;;  %v4572_v57 = vld [vmem:[%s7733_s3 + $0x120] sm:$0xf0]  ;;  %v7746_v61 = vld [vmem:[#allocation34_spill] sm:$0xff] }
 0x1ee   : > { %v4575_v50 = vor.u32 %v4936_v16, %v4572_v57  ;;  %v4546_v36 = vld [vmem:[%s7733_s3 + $0xc8] sm:$0xf] }
 0x1ef   : > { %v6654_v41 = vadd.f32 %v2106_v38, %v2058_v62  ;;  %v2011_v42 = vadd.f32 %v2010_v60, %v1962_v40  ;;  %v7748_v62 = vld [vmem:[#allocation36_spill] sm:$0xff]  ;;  %v7749_v38 = vld [vmem:[#allocation37_spill] sm:$0xff]  ;;  %v4933_v40 = vld [vmem:[%s7733_s3 + $0xe4] sm:$0xf0] }
 0x1f0   : > { %2890 = vmatpush.bf16.msra.mxu1 %v4575_v50  ;;  %v4929_v60 = vld [vmem:[%s7733_s3 + $0xcc] sm:$0xf] }
 0x1f1   : > { %v4551_v0 = vor.u32 %v4929_v60, %v4548_v43  ;;  %v4482_v60 = vld [vmem:[%s7733_s3 + $0x48] sm:$0xf]  ;;  %v4913_v43 = vld [vmem:[%s7733_s3 + $0x4c] sm:$0xf] }
 0x1f3   : > { %2989 = vmatpush.bf16.msra.mxu3 %v4551_v0  ;;  %v7756_v0 = vld [vmem:[#allocation44_spill] sm:$0xff] }
 0x1f4   : > { %v2059_v21 = vpop.f32.mrf.mxu2  ;;  %v1964_v7 = vpop.f32.mrf.mxu0 }
 0x1f5   : > { %v2060_v22 = vadd.f32 %v2059_v21, %v2011_v42  ;;  %v2108_v45 = vpop.f32.mrf.mxu3  ;;  %v1965_v46 = vadd.f32 %v1964_v7, %v6565_v39  ;;  %v2013_v55 = vpop.f32.mrf.mxu1  ;;  %v4547_v42 = vor.u32 %v4933_v40, %v4546_v36  ;;  %v4932_v7 = vld [vmem:[%s7733_s3 + $0xdc] sm:$0xf0]  ;;  %v7754_v40 = vld [vmem:[#allocation42_spill] sm:$0xff] }
 0x1f7   : > { %v6669_v4 = vadd.f32 %v2108_v45, %v2060_v22  ;;  %v2014_v35 = vadd.f32 %v2013_v55, %v1965_v46  ;;  %2159 = vmatmul.bf16.gmra.mxu0 %v7742_v5  ;;  %2940 = vmatpush.bf16.msra.mxu2 %v4547_v42  ;;  %v4538_v45 = vld [vmem:[%s7733_s3 + $0xc0] sm:$0xf]  ;;  %v4928_v46 = vld [vmem:[%s7733_s3 + $0xc4] sm:$0xf]  ;;  %v4917_v42 = vld [vmem:[%s7733_s3 + $0x64] sm:$0xf0] }
 0x1f8   : > { %2208 = vmatmul.bf16.gmra.mxu1 %v7743_v28  ;;  %v4539_v55 = vor.u32 %v4932_v7, %v4538_v45  ;;  %v7757_v45 = vld [vmem:[#allocation45_spill] sm:$0xff] }
 0x1f9   : > { %2257 = vmatmul.bf16.gmra.mxu2 %v7744_v47 }
 0x1fa   : > { %2306 = vmatmul.bf16.gmra.mxu3 %v7745_v30  ;;  %2842 = vmatpush.bf16.msra.mxu0 %v4539_v55 }
 0x1fc   : > { %v2062_v18 = vpop.f32.mrf.mxu2  ;;  %v1966_v8 = vpop.f32.mrf.mxu0 }
 0x1fd   : > { %v2063_v58 = vadd.f32 %v2062_v18, %v2014_v35  ;;  %v2111_v1 = vpop.f32.mrf.mxu3  ;;  %v1967_v31 = vadd.f32 %v1966_v8, %v6565_v39  ;;  %v2015_v9 = vpop.f32.mrf.mxu1  ;;  %v4540_v35 = vld [vmem:[%s7733_s3 + $0xe0] sm:$0xf0]  ;;  %v7752_v18 = vld [vmem:[#allocation40_spill] sm:$0xff]  ;;  %v4921_v8 = vld [vmem:[%s7733_s3 + $0x8c] sm:$0xf] }
 0x1fe   : > { %v4543_v5 = vor.u32 %v4928_v46, %v4540_v35 }
 0x1ff   : > { %v6688_v10 = vadd.f32 %v2111_v1, %v2063_v58  ;;  %v2016_v11 = vadd.f32 %v2015_v9, %v1967_v31  ;;  %v4514_v58 = vld [vmem:[%s7733_s3 + $0x88] sm:$0xf]  ;;  %v4516_v9 = vld [vmem:[%s7733_s3 + $0xa8] sm:$0xf0] }
 0x200   : > { %2891 = vmatpush.bf16.msra.mxu1 %v4543_v5  ;;  %v4925_v1 = vld [vmem:[%s7733_s3 + $0xa4] sm:$0xf0]  ;;  %v4519_v53 = vor.u32 %v4921_v8, %v4516_v9 }
 0x201   : > { %v4515_v31 = vor.u32 %v4925_v1, %v4514_v58 }
 0x202   : > { %2990 = vmatpush.bf16.msra.mxu3 %v4519_v53  ;;  %v4474_v53 = vld [vmem:[%s7733_s3 + $0x40] sm:$0xf] }
 0x203   : > { %2941 = vmatpush.bf16.msra.mxu2 %v4515_v31 }
 0x204   : > { %v2064_v51 = vpop.f32.mrf.mxu2  ;;  %v1969_v24 = vpop.f32.mrf.mxu0 }
 0x205   : > { %v2065_v52 = vadd.f32 %v2064_v51, %v2016_v11  ;;  %v2113_v29 = vpop.f32.mrf.mxu3  ;;  %v1970_v17 = vadd.f32 %v1969_v24, %v6565_v39  ;;  %v2018_v25 = vpop.f32.mrf.mxu1  ;;  %v4506_v51 = vld [vmem:[%s7733_s3 + $0x80] sm:$0xf] }
 0x207   : > { %v6703_v26 = vadd.f32 %v2113_v29, %v2065_v52  ;;  %v2019_v27 = vadd.f32 %v2018_v25, %v1970_v17  ;;  %2164 = vmatmul.bf16.gmra.mxu0 %v7746_v61  ;;  %v4924_v52 = vld [vmem:[%s7733_s3 + $0x9c] sm:$0xf0]  ;;  %v4920_v29 = vld [vmem:[%s7733_s3 + $0x84] sm:$0xf] }
 0x208   : > { %2213 = vmatmul.bf16.gmra.mxu1 %v7747_v59  ;;  %v4507_v24 = vor.u32 %v4924_v52, %v4506_v51  ;;  %v4508_v17 = vld [vmem:[%s7733_s3 + $0xa0] sm:$0xf0] }
 0x209   : > { %2262 = vmatmul.bf16.gmra.mxu2 %v7748_v62  ;;  %v4511_v25 = vor.u32 %v4920_v29, %v4508_v17  ;;  %v4450_v29 = vld [vmem:[%s7733_s3 + $0x8] sm:$0xf]  ;;  %v4905_v17 = vld [vmem:[%s7733_s3 + $0xc] sm:$0xf] }
 0x20a   : > { %2311 = vmatmul.bf16.gmra.mxu3 %v7749_v38  ;;  %2843 = vmatpush.bf16.msra.mxu0 %v4507_v24  ;;  %v4909_v24 = vld [vmem:[%s7733_s3 + $0x24] sm:$0xf0] }
 0x20b   : > { %2892 = vmatpush.bf16.msra.mxu1 %v4511_v25 }
 0x20c   : > { %v2067_v19 = vpop.f32.mrf.mxu2  ;;  %v6721_v6 = vpop.f32.mrf.mxu0 }
 0x20d   : > { %v2068_v32 = vadd.f32 %v2067_v19, %v2019_v27  ;;  %v2116_v23 = vpop.f32.mrf.mxu3  ;;  %v6723_v21 = vpop.f32.mrf.mxu1  ;;  %v7755_v19 = vld [vmem:[#allocation43_spill] sm:$0xff] }
 0x20f   : > { %v6725_v22 = vadd.f32 %v2116_v23, %v2068_v32  ;;  %v4483_v32 = vor.u32 %v4917_v42, %v4482_v60  ;;  %v4484_v23 = vld [vmem:[%s7733_s3 + $0x68] sm:$0xf0] }
 0x210   : > { %v4487_v7 = vor.u32 %v4913_v43, %v4484_v23  ;;  %v4904_v43 = vld [vmem:[%s7733_s3 + $0x4] sm:$0xf] }
 0x211   : > { %2942 = vmatpush.bf16.msra.mxu2 %v4483_v32 }
 0x212   : > { %2991 = vmatpush.bf16.msra.mxu3 %v4487_v7 }
 0x214   : > { %v6739_v28 = vpop.f32.mrf.mxu2  ;;  %v1974_v30 = vpop.f32.mrf.mxu0 }
 0x215   : > { %v6741_v47 = vpop.f32.mrf.mxu3  ;;  %v1975_v12 = vadd.f32 %v1974_v30, %v6565_v39  ;;  %v2023_v33 = vpop.f32.mrf.mxu1 }
 0x217   : > { %v2024_v13 = vadd.f32 %v2023_v33, %v1975_v12  ;;  %2169 = vmatmul.bf16.gmra.mxu0 %v7750_v14 }
 0x218   : > { %2218 = vmatmul.bf16.gmra.mxu1 %v7751_v15 }
 0x219   : > { %2267 = vmatmul.bf16.gmra.mxu2 %v7752_v18 }
 0x21a   : > { %2316 = vmatmul.bf16.gmra.mxu3 %v7753_v48 }
 0x21c   : > { %v2072_v11 = vpop.f32.mrf.mxu2  ;;  %v6760_v34 = vpop.f32.mrf.mxu0 }
 0x21d   : > { %v2073_v54 = vadd.f32 %v2072_v11, %v2024_v13  ;;  %v2121_v16 = vpop.f32.mrf.mxu3  ;;  %v6762_v57 = vpop.f32.mrf.mxu1 }
 0x21f   : > { %v6764_v50 = vadd.f32 %v2121_v16, %v2073_v54 }
 0x224   : > { %v6778_v27 = vpop.f32.mrf.mxu2  ;;  %v1979_v59 = vpop.f32.mrf.mxu0 }
 0x225   : > { %v6780_v61 = vpop.f32.mrf.mxu3  ;;  %v1980_v62 = vadd.f32 %v1979_v59, %v6565_v39  ;;  %v2028_v38 = vpop.f32.mrf.mxu1  ;;  %v4451_v59 = vor.u32 %v4909_v24, %v4450_v29 }
 0x227   : > { %v2029_v36 = vadd.f32 %v2028_v38, %v1980_v62  ;;  %2174 = vmatmul.bf16.gmra.mxu0 %v7754_v40  ;;  %v4452_v62 = vld [vmem:[%s7733_s3 + $0x28] sm:$0xf0]  ;;  %v4442_v38 = vld [vmem:[%s7733_s3] sm:$0xf]  ;;  %2943 = vmatpush.bf16.msra.mxu2 %v4451_v59 }
 0x228   : > { %2223 = vmatmul.bf16.gmra.mxu1 %v7755_v19  ;;  %v4455_v60 = vor.u32 %v4905_v17, %v4452_v62  ;;  %v4444_v19 = vld [vmem:[%s7733_s3 + $0x20] sm:$0xf0] }
 0x229   : > { %2272 = vmatmul.bf16.gmra.mxu2 %v7756_v0  ;;  %v4447_v0 = vor.u32 %v4904_v43, %v4444_v19 }
 0x22a   : > { %2321 = vmatmul.bf16.gmra.mxu3 %v7757_v45 }
 0x22b   : > { %2992 = vmatpush.bf16.msra.mxu3 %v4455_v60 }
 0x22c   : > { %v2077_v46 = vpop.f32.mrf.mxu2  ;;  %v6799_v5 = vpop.f32.mrf.mxu0 }
 0x22d   : > { %v2078_v55 = vadd.f32 %v2077_v46, %v2029_v36  ;;  %v2126_v35 = vpop.f32.mrf.mxu3  ;;  %v6801_v30 = vpop.f32.mrf.mxu1  ;;  %v4908_v36 = vld [vmem:[%s7733_s3 + $0x1c] sm:$0xf0] }
 0x22e   : > { %v4443_v42 = vor.u32 %v4908_v36, %v4442_v38 }
 0x22f   : > { %v6803_v12 = vadd.f32 %v2126_v35, %v2078_v55 }
 0x234   : > { %v6805_v33 = vpop.f32.mrf.mxu2  ;;  %v1984_v14 = vpop.f32.mrf.mxu0 }
 0x235   : > { %v6807_v13 = vpop.f32.mrf.mxu3  ;;  %v1985_v15 = vadd.f32 %v1984_v14, %v6565_v39  ;;  %v2033_v18 = vpop.f32.mrf.mxu1 }
 0x237   : > { %v2034_v48 = vadd.f32 %v2033_v18, %v1985_v15  ;;  %2179 = vmatmul.bf16.gmra.mxu0 %v6302_v63  ;;  %v4476_v63 = vld [vmem:[%s7733_s3 + $0x60] sm:$0xf0] }
 0x238   : > { %2228 = vmatmul.bf16.gmra.mxu1 %v6304_v2  ;;  %v4916_v2 = vld [vmem:[%s7733_s3 + $0x5c] sm:$0xf0] }
 0x239   : > { %2277 = vmatmul.bf16.gmra.mxu2 %v6306_v3  ;;  %v4475_v3 = vor.u32 %v4916_v2, %v4474_v53 }
 0x23a   : > { %2326 = vmatmul.bf16.gmra.mxu3 %v6309_v20  ;;  %v4912_v20 = vld [vmem:[%s7733_s3 + $0x44] sm:$0xf] }
 0x23b   : > { %v4479_v54 = vor.u32 %v4912_v20, %v4476_v63  ;;  %2844 = vmatpush.bf16.msra.mxu0 %v4475_v3  ;;  %v4690_v20 = vld [vmem:[%s7733_s3 + $0x1d8] sm:$0xf]  ;;  %v4963_v63 = vld [vmem:[%s7733_s3 + $0x1dc] sm:$0xf] }
 0x23c   : > { %v2082_v58 = vpop.f32.mrf.mxu2  ;;  %v6814_v31 = vpop.f32.mrf.mxu0  ;;  %v4967_v3 = vld [vmem:[%s7733_s3 + $0x1f4] sm:$0xf0] }
 0x23d   : > { %v2083_v1 = vadd.f32 %v2082_v58, %v2034_v48  ;;  %v2131_v8 = vpop.f32.mrf.mxu3  ;;  %v6816_v9 = vpop.f32.mrf.mxu1  ;;  %2893 = vmatpush.bf16.msra.mxu1 %v4479_v54  ;;  %v2332_v54 = vld [vmem:[%s6870_s25] sm:$0xff]  ;;  %v4691_v29 = vor.u32 %v4967_v3, %v4690_v20 }
 0x23f   : > { %v6818_v11 = vadd.f32 %v2131_v8, %v2083_v1  ;;  %2845 = vmatpush.bf16.msra.mxu0 %v4443_v42  ;;  %3132 = vmatpush.bf16.msrb.mxu2 %v4691_v29  ;;  %v5064_v42 = vld [vmem:[%s6377_s28] sm:$0xff]  ;;  %v4658_v29 = vld [vmem:[%s7733_s3 + $0x198] sm:$0xf] }
 0x241   : > { %2894 = vmatpush.bf16.msra.mxu1 %v4447_v0 }
 0x244   : > { %v6832_v16 = vpop.f32.mrf.mxu2  ;;  %v2145_v52 = vpop.f32.mrf.mxu0 }
 0x245   : > { %v6834_v51 = vpop.f32.mrf.mxu3  ;;  %v2194_v25 = vpop.f32.mrf.mxu1  ;;  %v2146_v40 = vadd.f32 %v2145_v52, %v6586_v56 }
 0x247   : > { %v2195_v32 = vadd.f32 %v2194_v25, %v2146_v40 }
 0x24c   : > { %v2243_v23 = vpop.f32.mrf.mxu2  ;;  %v2147_v7 = vpop.f32.mrf.mxu0 }
 0x24d   : > { %v2244_v56 = vadd.f32 %v2243_v23, %v2195_v32  ;;  %v2292_v45 = vpop.f32.mrf.mxu3  ;;  %v2196_v46 = vpop.f32.mrf.mxu1  ;;  %v2148_v35 = vadd.f32 %v2147_v7, %v6601_v44  ;;  %v4682_v23 = vld [vmem:[%s7733_s3 + $0x1d0] sm:$0xf]  ;;  %v2333_v7 = vld [vmem:[%s6870_s25 + $0x8] sm:$0xff] }
 0x24f   : > { %v2293_v55 = vadd.f32 %v2292_v45, %v2244_v56  ;;  %v2197_v18 = vadd.f32 %v2196_v46, %v2148_v35  ;;  %v4966_v56 = vld [vmem:[%s7733_s3 + $0x1ec] sm:$0xf0]  ;;  %v4962_v45 = vld [vmem:[%s7733_s3 + $0x1d4] sm:$0xf] }
 0x251   : > { %v2348_v14 = vmul.f32 0.5, %v2293_v55  ;;  %3374 = vst [vmem:[%s6863_s22] sm:$0xff] %v2293_v55  ;;  %v4684_v55 = vld [vmem:[%s7733_s3 + $0x1f0] sm:$0xf0] }
 0x252   : > { %v4687_v35 = vor.u32 %v4962_v45, %v4684_v55 }
 0x253   : > { %v2364_v15 = vmul.f32 1.442695, %v2348_v14 }
 0x254   : > { %v2245_v48 = vpop.f32.mrf.mxu2  ;;  %v2150_v8 = vpop.f32.mrf.mxu0  ;;  %3083 = vmatpush.bf16.msrb.mxu1 %v4687_v35 }
 0x255   : > { %5031 = vpow2.f32 %v2364_v15  ;;  %v2246_v58 = vadd.f32 %v2245_v48, %v2197_v18  ;;  %v2294_v1 = vpop.f32.mrf.mxu3  ;;  %v2199_v44 = vpop.f32.mrf.mxu1  ;;  %v2151_v2 = vadd.f32 %v2150_v8, %v6620_v37  ;;  %v4692_v37 = vld [vmem:[%s7733_s3 + $0x1f8] sm:$0xf0] }
 0x256   : > { %v4695_v24 = vor.u32 %v4963_v63, %v4692_v37  ;;  %v4959_v37 = vld [vmem:[%s7733_s3 + $0x1b4] sm:$0xf0] }
 0x257   : > { %v2295_v53 = vadd.f32 %v2294_v1, %v2246_v58  ;;  %v2200_v59 = vadd.f32 %v2199_v44, %v2151_v2 }
 0x258   : > { %3181 = vmatpush.bf16.msrb.mxu3 %v4695_v24 }
 0x259   : > { %v2349_v52 = vmul.f32 0.5, %v2295_v53  ;;  %3375 = vst [vmem:[%s6863_s22 + $0x8] sm:$0xff] %v2295_v53  ;;  %v5065_v53 = vld [vmem:[%s6377_s28 + $0x8] sm:$0xff] }
 0x25b   : > { %v5032_v17 = vpop.eup %5031  ;;  %v2366_v25 = vmul.f32 1.442695, %v2349_v52  ;;  %v2334_v52 = vld [vmem:[%s6870_s25 + $0x10] sm:$0xff] }
 0x25c   : > { %v2396_v62 = vmul.f32 %v5032_v17, %v2332_v54  ;;  %v2248_v38 = vpop.f32.mrf.mxu2  ;;  %v2152_v60 = vpop.f32.mrf.mxu0  ;;  %v4659_v17 = vor.u32 %v4959_v37, %v4658_v29 }
 0x25d   : > { %5033 = vpow2.f32 %v2366_v25  ;;  %v2249_v36 = vadd.f32 %v2248_v38, %v2200_v59  ;;  %v2297_v40 = vpop.f32.mrf.mxu3  ;;  %v2201_v19 = vpop.f32.mrf.mxu1  ;;  %v2153_v32 = vadd.f32 %v2152_v60, %v6635_v49  ;;  %v4683_v49 = vor.u32 %v4966_v56, %v4682_v23  ;;  %v4955_v25 = vld [vmem:[%s7733_s3 + $0x19c] sm:$0xf] }
 0x25e   : > { %v2412_v43 = vadd.f32 %v5064_v42, %v2396_v62  ;;  %3133 = vmatpush.bf16.msrb.mxu2 %v4659_v17  ;;  %v4626_v17 = vld [vmem:[%s7733_s3 + $0x158] sm:$0xf] }
 0x25f   : > { %v2298_v0 = vadd.f32 %v2297_v40, %v2249_v36  ;;  %v2202_v18 = vadd.f32 %v2201_v19, %v2153_v32  ;;  %3034 = vmatpush.bf16.msrb.mxu0 %v4683_v49  ;;  %v4958_v49 = vld [vmem:[%s7733_s3 + $0x1ac] sm:$0xf0] }
 0x260   : > { %3390 = vst [vmem:[%s6890_s18] sm:$0xff] %v2412_v43 }
 0x261   : > { %v2350_v46 = vmul.f32 0.5, %v2298_v0  ;;  %3376 = vst [vmem:[%s6863_s22 + $0x10] sm:$0xff] %v2298_v0  ;;  %v5066_v0 = vld [vmem:[%s6377_s28 + $0x10] sm:$0xff] }
 0x263   : > { %v5034_v14 = vpop.eup %5033  ;;  %v2368_v15 = vmul.f32 1.442695, %v2350_v46  ;;  %v4650_v46 = vld [vmem:[%s7733_s3 + $0x190] sm:$0xf] }
 0x264   : > { %v2397_v48 = vmul.f32 %v5034_v14, %v2333_v7  ;;  %v2250_v58 = vpop.f32.mrf.mxu2  ;;  %v2155_v44 = vpop.f32.mrf.mxu0  ;;  %v2335_v7 = vld [vmem:[%s6870_s25 + $0x18] sm:$0xff]  ;;  %v4651_v35 = vor.u32 %v4958_v49, %v4650_v46  ;;  %v4954_v14 = vld [vmem:[%s7733_s3 + $0x194] sm:$0xf]  ;;  %v2337_v49 = vld [vmem:[%s6870_s25 + $0x28] sm:$0xff] }
 0x265   : > { %5035 = vpow2.f32 %v2368_v15  ;;  %v2251_v1 = vadd.f32 %v2250_v58, %v2202_v18  ;;  %v2299_v8 = vpop.f32.mrf.mxu3  ;;  %v2204_v20 = vpop.f32.mrf.mxu1  ;;  %v2156_v63 = vadd.f32 %v2155_v44, %v6654_v41  ;;  %v4660_v41 = vld [vmem:[%s7733_s3 + $0x1b8] sm:$0xf0] }
 0x266   : > { %v2413_v2 = vadd.f32 %v5065_v53, %v2397_v48  ;;  %v4663_v59 = vor.u32 %v4955_v25, %v4660_v41  ;;  %3035 = vmatpush.bf16.msrb.mxu0 %v4651_v35  ;;  %v4951_v25 = vld [vmem:[%s7733_s3 + $0x174] sm:$0xf0]  ;;  %v4950_v35 = vld [vmem:[%s7733_s3 + $0x16c] sm:$0xf0] }
 0x267   : > { %v2300_v3 = vadd.f32 %v2299_v8, %v2251_v1  ;;  %v2205_v36 = vadd.f32 %v2204_v20, %v2156_v63  ;;  %v5067_v20 = vld [vmem:[%s6377_s28 + $0x18] sm:$0xff] }
 0x268   : > { %v6909_v54 = vpack.c.bf16 %v2413_v2, %v2412_v43  ;;  %3391 = vst [vmem:[%s6890_s18 + $0x8] sm:$0xff] %v2413_v2  ;;  %3182 = vmatpush.bf16.msrb.mxu3 %v4663_v59  ;;  %v4627_v59 = vor.u32 %v4951_v25, %v4626_v17 }
 0x269   : > { %v2351_v24 = vmul.f32 0.5, %v2300_v3  ;;  %3377 = vst [vmem:[%s6863_s22 + $0x18] sm:$0xff] %v2300_v3 }
 0x26a   : > { %2846 = vmatmul.bf16.vlgmr.msra.gmra.mxu0 %v6909_v54  ;;  %2895 = vmatmul.bf16.vlgmr.msra.gmra.mxu1 %v6909_v54 }
 0x26b   : > { %v5036_v62 = vpop.eup %5035  ;;  %v2370_v38 = vmul.f32 1.442695, %v2351_v24  ;;  %2944 = vmatmul.bf16.vlgmr.msra.gmra.mxu2 %v6909_v54  ;;  %2993 = vmatmul.bf16.vlgmr.msra.gmra.mxu3 %v6909_v54  ;;  %v2336_v24 = vld [vmem:[%s6870_s25 + $0x20] sm:$0xff] }
 0x26c   : > { %v2398_v40 = vmul.f32 %v5036_v62, %v2334_v52  ;;  %v2253_v60 = vpop.f32.mrf.mxu2  ;;  %v2157_v19 = vpop.f32.mrf.mxu0  ;;  %v4947_v62 = vld [vmem:[%s7733_s3 + $0x15c] sm:$0xf]  ;;  %3134 = vmatpush.bf16.msrb.mxu2 %v4627_v59  ;;  %v4594_v59 = vld [vmem:[%s7733_s3 + $0x118] sm:$0xf] }
 0x26d   : > { %5037 = vpow2.f32 %v2370_v38  ;;  %v2254_v42 = vadd.f32 %v2253_v60, %v2205_v36  ;;  %v2302_v43 = vpop.f32.mrf.mxu3  ;;  %v2206_v23 = vpop.f32.mrf.mxu1  ;;  %v2158_v45 = vadd.f32 %v2157_v19, %v6669_v4  ;;  %v4652_v4 = vld [vmem:[%s7733_s3 + $0x1b0] sm:$0xf0] }
 0x26e   : > { %v2414_v32 = vadd.f32 %v5066_v0, %v2398_v40  ;;  %v4655_v15 = vor.u32 %v4954_v14, %v4652_v4 }
 0x26f   : > { %v2303_v56 = vadd.f32 %v2302_v43, %v2254_v42  ;;  %v2207_v58 = vadd.f32 %v2206_v23, %v2158_v45  ;;  %v5068_v23 = vld [vmem:[%s6377_s28 + $0x20] sm:$0xff] }
 0x270   : > { %3392 = vst [vmem:[%s6890_s18 + $0x10] sm:$0xff] %v2414_v32  ;;  %3084 = vmatpush.bf16.msrb.mxu1 %v4655_v15  ;;  %v4946_v15 = vld [vmem:[%s7733_s3 + $0x154] sm:$0xf] }
 0x271   : > { %v2352_v55 = vmul.f32 0.5, %v2303_v56  ;;  %3378 = vst [vmem:[%s6863_s22 + $0x20] sm:$0xff] %v2303_v56 }
 0x273   : > { %v5038_v18 = vpop.eup %5037  ;;  %v2372_v48 = vmul.f32 1.442695, %v2352_v55  ;;  %v4618_v55 = vld [vmem:[%s7733_s3 + $0x150] sm:$0xf] }
 0x274   : > { %v2399_v1 = vmul.f32 %v5038_v18, %v2335_v7  ;;  %v2255_v8 = vpop.f32.mrf.mxu2  ;;  %v2160_v2 = vpop.f32.mrf.mxu0  ;;  %v4619_v4 = vor.u32 %v4950_v35, %v4618_v55  ;;  %v2339_v35 = vld [vmem:[%s6870_s25 + $0x38] sm:$0xff] }
 0x275   : > { %5039 = vpow2.f32 %v2372_v48  ;;  %v2256_v44 = vadd.f32 %v2255_v8, %v2207_v58  ;;  %v2304_v53 = vpop.f32.mrf.mxu3  ;;  %v2209_v63 = vpop.f32.mrf.mxu1  ;;  %v2161_v29 = vadd.f32 %v2160_v2, %v6688_v10  ;;  %v4628_v10 = vld [vmem:[%s7733_s3 + $0x178] sm:$0xf0]  ;;  %v1972_v58 = vadd.f32 %v6721_v6, %v6565_v39 }
 0x276   : > { %v2415_v3 = vadd.f32 %v5067_v20, %v2399_v1  ;;  %v4631_v38 = vor.u32 %v4947_v62, %v4628_v10  ;;  %3036 = vmatpush.bf16.msrb.mxu0 %v4619_v4  ;;  %v4943_v62 = vld [vmem:[%s7733_s3 + $0x134] sm:$0xf0]  ;;  %v4942_v4 = vld [vmem:[%s7733_s3 + $0x12c] sm:$0xf0] }
 0x277   : > { %v2305_v52 = vadd.f32 %v2304_v53, %v2256_v44  ;;  %v2210_v60 = vadd.f32 %v2209_v63, %v2161_v29  ;;  %v5069_v63 = vld [vmem:[%s6377_s28 + $0x28] sm:$0xff] }
 0x278   : > { %v6949_v37 = vpack.c.bf16 %v2415_v3, %v2414_v32  ;;  %3393 = vst [vmem:[%s6890_s18 + $0x18] sm:$0xff] %v2415_v3  ;;  %3183 = vmatpush.bf16.msrb.mxu3 %v4631_v38 }
 0x279   : > { %v2353_v41 = vmul.f32 0.5, %v2305_v52  ;;  %3379 = vst [vmem:[%s6863_s22 + $0x28] sm:$0xff] %v2305_v52 }
 0x27a   : > { %2851 = vmatmul.bf16.gmra.mxu0 %v6949_v37  ;;  %2900 = vmatmul.bf16.gmra.mxu1 %v6949_v37 }
 0x27b   : > { %v5040_v36 = vpop.eup %5039  ;;  %v2374_v40 = vmul.f32 1.442695, %v2353_v41  ;;  %2949 = vmatmul.bf16.gmra.mxu2 %v6949_v37  ;;  %2998 = vmatmul.bf16.gmra.mxu3 %v6949_v37  ;;  %v2338_v41 = vld [vmem:[%s6870_s25 + $0x30] sm:$0xff] }
 0x27c   : > { %v2400_v42 = vmul.f32 %v5040_v36, %v2336_v24  ;;  %v2258_v43 = vpop.f32.mrf.mxu2  ;;  %v2162_v32 = vpop.f32.mrf.mxu0  ;;  %v2021_v24 = vadd.f32 %v6723_v21, %v1972_v58  ;;  %v4595_v21 = vor.u32 %v4943_v62, %v4594_v59  ;;  %v4596_v36 = vld [vmem:[%s7733_s3 + $0x138] sm:$0xf0]  ;;  %v2340_v59 = vld [vmem:[%s6870_s25 + $0x40] sm:$0xff]  ;;  %v4562_v62 = vld [vmem:[%s7733_s3 + $0xd8] sm:$0xf] }
 0x27d   : > { %5041 = vpow2.f32 %v2374_v40  ;;  %v2259_v19 = vadd.f32 %v2258_v43, %v2210_v60  ;;  %v2307_v0 = vpop.f32.mrf.mxu3  ;;  %v2211_v45 = vpop.f32.mrf.mxu1  ;;  %v2163_v46 = vadd.f32 %v2162_v32, %v6703_v26  ;;  %v4620_v26 = vld [vmem:[%s7733_s3 + $0x170] sm:$0xf0] }
 0x27e   : > { %v2416_v56 = vadd.f32 %v5068_v23, %v2400_v42  ;;  %v4623_v18 = vor.u32 %v4946_v15, %v4620_v26  ;;  %v2070_v10 = vadd.f32 %v6739_v28, %v2021_v24  ;;  %3135 = vmatpush.bf16.msrb.mxu2 %v4595_v21  ;;  %v4938_v26 = vld [vmem:[%s7733_s3 + $0x114] sm:$0xf] }
 0x27f   : > { %v2308_v7 = vadd.f32 %v2307_v0, %v2259_v19  ;;  %v2212_v8 = vadd.f32 %v2211_v45, %v2163_v46  ;;  %v5070_v45 = vld [vmem:[%s6377_s28 + $0x30] sm:$0xff] }
 0x280   : > { %3394 = vst [vmem:[%s6890_s18 + $0x20] sm:$0xff] %v2416_v56  ;;  %3085 = vmatpush.bf16.msrb.mxu1 %v4623_v18  ;;  %v2119_v0 = vadd.f32 %v6741_v47, %v2070_v10  ;;  %v4588_v18 = vld [vmem:[%s7733_s3 + $0x130] sm:$0xf0]  ;;  %v4935_v10 = vld [vmem:[%s7733_s3 + $0xf4] sm:$0xf0] }
 0x281   : > { %v2354_v14 = vmul.f32 0.5, %v2308_v7  ;;  %3380 = vst [vmem:[%s6863_s22 + $0x30] sm:$0xff] %v2308_v7 }
 0x283   : > { %v5042_v48 = vpop.eup %5041  ;;  %v2376_v1 = vmul.f32 1.442695, %v2354_v14  ;;  %v4586_v14 = vld [vmem:[%s7733_s3 + $0x110] sm:$0xf] }
 0x284   : > { %v2401_v44 = vmul.f32 %v5042_v48, %v2337_v49  ;;  %v2260_v53 = vpop.f32.mrf.mxu2  ;;  %v2165_v3 = vpop.f32.mrf.mxu0  ;;  %v4587_v15 = vor.u32 %v4942_v4, %v4586_v14  ;;  %v4591_v48 = vor.u32 %v4938_v26, %v4588_v18  ;;  %v4930_v4 = vld [vmem:[%s7733_s3 + $0xd4] sm:$0xf]  ;;  %v1982_v18 = vadd.f32 %v6799_v5, %v6565_v39 }
 0x285   : > { %5043 = vpow2.f32 %v2376_v1  ;;  %v2261_v2 = vadd.f32 %v2260_v53, %v2212_v8  ;;  %v2309_v20 = vpop.f32.mrf.mxu3  ;;  %v2214_v29 = vpop.f32.mrf.mxu1  ;;  %v2166_v6 = vadd.f32 %v2165_v3, %v6725_v22  ;;  %v4939_v22 = vld [vmem:[%s7733_s3 + $0x11c] sm:$0xf]  ;;  %v1977_v1 = vadd.f32 %v6760_v34, %v6565_v39 }
 0x286   : > { %v2417_v52 = vadd.f32 %v5069_v63, %v2401_v44  ;;  %v4599_v40 = vor.u32 %v4939_v22, %v4596_v36  ;;  %3037 = vmatpush.bf16.msrb.mxu0 %v4587_v15  ;;  %3086 = vmatpush.bf16.msrb.mxu1 %v4591_v48  ;;  %v4564_v22 = vld [vmem:[%s7733_s3 + $0xf8] sm:$0xf0] }
 0x287   : > { %v2310_v17 = vadd.f32 %v2309_v20, %v2261_v2  ;;  %v2215_v28 = vadd.f32 %v2214_v29, %v2166_v6 }
 0x288   : > { %v6992_v25 = vpack.c.bf16 %v2417_v52, %v2416_v56  ;;  %3395 = vst [vmem:[%s6890_s18 + $0x28] sm:$0xff] %v2417_v52  ;;  %3184 = vmatpush.bf16.msrb.mxu3 %v4599_v40  ;;  %v5071_v52 = vld [vmem:[%s6377_s28 + $0x38] sm:$0xff] }
 0x289   : > { %v2355_v38 = vmul.f32 0.5, %v2310_v17  ;;  %3381 = vst [vmem:[%s6863_s22 + $0x38] sm:$0xff] %v2310_v17  ;;  %v2026_v17 = vadd.f32 %v6762_v57, %v1977_v1  ;;  %v4563_v57 = vor.u32 %v4935_v10, %v4562_v62  ;;  %v4532_v10 = vld [vmem:[%s7733_s3 + $0xb8] sm:$0xf0] }
 0x28a   : > { %2856 = vmatmul.bf16.gmra.mxu0 %v6992_v25  ;;  %2905 = vmatmul.bf16.gmra.mxu1 %v6992_v25 }
 0x28b   : > { %v5044_v60 = vpop.eup %5043  ;;  %v2378_v42 = vmul.f32 1.442695, %v2355_v38  ;;  %2954 = vmatmul.bf16.gmra.mxu2 %v6992_v25  ;;  %3003 = vmatmul.bf16.gmra.mxu3 %v6992_v25  ;;  %v2075_v38 = vadd.f32 %v6778_v27, %v2026_v17  ;;  %v2342_v17 = vld [vmem:[%s6870_s25 + $0x50] sm:$0xff] }
 0x28c   : > { %v2402_v43 = vmul.f32 %v5044_v60, %v2338_v41  ;;  %v2263_v19 = vpop.f32.mrf.mxu2  ;;  %v2167_v56 = vpop.f32.mrf.mxu0  ;;  %3136 = vmatpush.bf16.msrb.mxu2 %v4563_v57 }
 0x28d   : > { %5045 = vpow2.f32 %v2378_v42  ;;  %v2264_v32 = vadd.f32 %v2263_v19, %v2215_v28  ;;  %v2312_v23 = vpop.f32.mrf.mxu3  ;;  %v2216_v46 = vpop.f32.mrf.mxu1  ;;  %v2168_v55 = vadd.f32 %v2167_v56, %v2119_v0 }
 0x28e   : > { %v2418_v7 = vadd.f32 %v5070_v45, %v2402_v43  ;;  %v2124_v43 = vadd.f32 %v6780_v61, %v2075_v38 }
 0x28f   : > { %v2313_v49 = vadd.f32 %v2312_v23, %v2264_v32  ;;  %v2217_v44 = vadd.f32 %v2216_v46, %v2168_v55  ;;  %v5072_v23 = vld [vmem:[%s6377_s28 + $0x40] sm:$0xff]  ;;  %v4554_v55 = vld [vmem:[%s7733_s3 + $0xd0] sm:$0xf] }
 0x290   : > { %3396 = vst [vmem:[%s6890_s18 + $0x30] sm:$0xff] %v2418_v7 }
 0x291   : > { %v2356_v47 = vmul.f32 0.5, %v2313_v49  ;;  %3382 = vst [vmem:[%s6863_s22 + $0x40] sm:$0xff] %v2313_v49  ;;  %v2341_v49 = vld [vmem:[%s6870_s25 + $0x48] sm:$0xff] }
 0x293   : > { %v5046_v58 = vpop.eup %5045  ;;  %v2380_v8 = vmul.f32 1.442695, %v2356_v47  ;;  %v4556_v47 = vld [vmem:[%s7733_s3 + $0xf0] sm:$0xf0] }
 0x294   : > { %v2403_v53 = vmul.f32 %v5046_v58, %v2339_v35  ;;  %v2265_v2 = vpop.f32.mrf.mxu2  ;;  %v2170_v63 = vpop.f32.mrf.mxu0  ;;  %v4934_v35 = vld [vmem:[%s7733_s3 + $0xec] sm:$0xf0]  ;;  %v4559_v15 = vor.u32 %v4930_v4, %v4556_v47 }
 0x295   : > { %5047 = vpow2.f32 %v2380_v8  ;;  %v2266_v20 = vadd.f32 %v2265_v2, %v2217_v44  ;;  %v2314_v3 = vpop.f32.mrf.mxu3  ;;  %v2219_v24 = vpop.f32.mrf.mxu1  ;;  %v2171_v34 = vadd.f32 %v2170_v63, %v6764_v50  ;;  %v4931_v50 = vld [vmem:[%s7733_s3 + $0xdc] sm:$0xf]  ;;  %v4555_v14 = vor.u32 %v4934_v35, %v4554_v55 }
 0x296   : > { %v2419_v29 = vadd.f32 %v5071_v52, %v2403_v53  ;;  %v4567_v36 = vor.u32 %v4931_v50, %v4564_v22  ;;  %3087 = vmatpush.bf16.msrb.mxu1 %v4559_v15  ;;  %v2031_v52 = vadd.f32 %v6801_v30, %v1982_v18 }
 0x297   : > { %v2315_v6 = vadd.f32 %v2314_v3, %v2266_v20  ;;  %v2220_v27 = vadd.f32 %v2219_v24, %v2171_v34  ;;  %3038 = vmatpush.bf16.msrb.mxu0 %v4555_v14  ;;  %v5073_v20 = vld [vmem:[%s6377_s28 + $0x48] sm:$0xff]  ;;  %v4927_v34 = vld [vmem:[%s7733_s3 + $0xb4] sm:$0xf0] }
 0x298   : > { %v7036_v41 = vpack.c.bf16 %v2419_v29, %v2418_v7  ;;  %3397 = vst [vmem:[%s6890_s18 + $0x38] sm:$0xff] %v2419_v29  ;;  %3185 = vmatpush.bf16.msrb.mxu3 %v4567_v36 }
 0x299   : > { %v2357_v21 = vmul.f32 0.5, %v2315_v6  ;;  %3383 = vst [vmem:[%s6863_s22 + $0x48] sm:$0xff] %v2315_v6  ;;  %v4530_v6 = vld [vmem:[%s7733_s3 + $0x98] sm:$0xf] }
 0x29a   : > { %2861 = vmatmul.bf16.gmra.mxu0 %v7036_v41  ;;  %2910 = vmatmul.bf16.gmra.mxu1 %v7036_v41  ;;  %v4531_v30 = vor.u32 %v4927_v34, %v4530_v6 }
 0x29b   : > { %v5048_v40 = vpop.eup %5047  ;;  %v2382_v60 = vmul.f32 1.442695, %v2357_v21  ;;  %2959 = vmatmul.bf16.gmra.mxu2 %v7036_v41  ;;  %3008 = vmatmul.bf16.gmra.mxu3 %v7036_v41 }
 0x29c   : > { %v2404_v42 = vmul.f32 %v5048_v40, %v2340_v59  ;;  %v2268_v28 = vpop.f32.mrf.mxu2  ;;  %v2172_v32 = vpop.f32.mrf.mxu0  ;;  %v2080_v59 = vadd.f32 %v6805_v33, %v2031_v52  ;;  %3137 = vmatpush.bf16.msrb.mxu2 %v4531_v30  ;;  %v4492_v30 = vld [vmem:[%s7733_s3 + $0x70] sm:$0xf0] }
 0x29d   : > { %5049 = vpow2.f32 %v2382_v60  ;;  %v2269_v19 = vadd.f32 %v2268_v28, %v2220_v27  ;;  %v2317_v0 = vpop.f32.mrf.mxu3  ;;  %v2221_v45 = vpop.f32.mrf.mxu1  ;;  %v2173_v46 = vadd.f32 %v2172_v32, %v2124_v43  ;;  %v2343_v32 = vld [vmem:[%s6870_s25 + $0x58] sm:$0xff] }
 0x29e   : > { %v2420_v56 = vadd.f32 %v5072_v23, %v2404_v42  ;;  %v2129_v36 = vadd.f32 %v6807_v13, %v2080_v59  ;;  %v5074_v42 = vld [vmem:[%s6377_s28 + $0x50] sm:$0xff] }
 0x29f   : > { %v2318_v7 = vadd.f32 %v2317_v0, %v2269_v19  ;;  %v2222_v58 = vadd.f32 %v2221_v45, %v2173_v46  ;;  %v4522_v23 = vld [vmem:[%s7733_s3 + $0x90] sm:$0xf]  ;;  %v4524_v46 = vld [vmem:[%s7733_s3 + $0xb0] sm:$0xf0] }
 0x2a0   : > { %3398 = vst [vmem:[%s6890_s18 + $0x40] sm:$0xff] %v2420_v56 }
 0x2a1   : > { %v2358_v61 = vmul.f32 0.5, %v2318_v7  ;;  %3384 = vst [vmem:[%s6863_s22 + $0x50] sm:$0xff] %v2318_v7  ;;  %v4922_v7 = vld [vmem:[%s7733_s3 + $0x94] sm:$0xf] }
 0x2a2   : > { %v4527_v55 = vor.u32 %v4922_v7, %v4524_v46  ;;  %v2345_v7 = vld [vmem:[%s6870_s25 + $0x68] sm:$0xff] }
 0x2a3   : > { %v5050_v26 = vpop.eup %5049  ;;  %v2384_v48 = vmul.f32 1.442695, %v2358_v61 }
 0x2a4   : > { %v2405_v1 = vmul.f32 %v5050_v26, %v2341_v49  ;;  %v2270_v8 = vpop.f32.mrf.mxu2  ;;  %v2175_v2 = vpop.f32.mrf.mxu0  ;;  %v1987_v49 = vadd.f32 %v6814_v31, %v6565_v39  ;;  %3088 = vmatpush.bf16.msrb.mxu1 %v4527_v55 }
 0x2a5   : > { %5051 = vpow2.f32 %v2384_v48  ;;  %v2271_v44 = vadd.f32 %v2270_v8, %v2222_v58  ;;  %v2319_v53 = vpop.f32.mrf.mxu3  ;;  %v2224_v63 = vpop.f32.mrf.mxu1  ;;  %v2176_v5 = vadd.f32 %v2175_v2, %v6803_v12  ;;  %v4923_v12 = vld [vmem:[%s7733_s3 + $0x9c] sm:$0xf] }
 0x2a6   : > { %v2421_v3 = vadd.f32 %v5073_v20, %v2405_v1  ;;  %v4535_v38 = vor.u32 %v4923_v12, %v4532_v10  ;;  %v2036_v48 = vadd.f32 %v6816_v9, %v1987_v49  ;;  %v5075_v58 = vld [vmem:[%s6377_s28 + $0x58] sm:$0xff] }
 0x2a7   : > { %v2320_v29 = vadd.f32 %v2319_v53, %v2271_v44  ;;  %v2225_v33 = vadd.f32 %v2224_v63, %v2176_v5  ;;  %v2344_v53 = vld [vmem:[%s6870_s25 + $0x60] sm:$0xff]  ;;  %v4498_v20 = vld [vmem:[%s7733_s3 + $0x58] sm:$0xf]  ;;  %v4918_v5 = vld [vmem:[%s7733_s3 + $0x6c] sm:$0xf0] }
 0x2a8   : > { %v7080_v24 = vpack.c.bf16 %v2421_v3, %v2420_v56  ;;  %3399 = vst [vmem:[%s6890_s18 + $0x48] sm:$0xff] %v2421_v3  ;;  %3186 = vmatpush.bf16.msrb.mxu3 %v4535_v38  ;;  %v4926_v56 = vld [vmem:[%s7733_s3 + $0xac] sm:$0xf0]  ;;  %v2085_v8 = vadd.f32 %v6832_v16, %v2036_v48  ;;  %v4919_v9 = vld [vmem:[%s7733_s3 + $0x74] sm:$0xf0] }
 0x2a9   : > { %v2359_v62 = vmul.f32 0.5, %v2320_v29  ;;  %3385 = vst [vmem:[%s6863_s22 + $0x58] sm:$0xff] %v2320_v29  ;;  %v4523_v45 = vor.u32 %v4926_v56, %v4522_v23  ;;  %v4499_v63 = vor.u32 %v4919_v9, %v4498_v20  ;;  %v4500_v16 = vld [vmem:[%s7733_s3 + $0x78] sm:$0xf0]  ;;  %v4490_v29 = vld [vmem:[%s7733_s3 + $0x50] sm:$0xf] }
 0x2aa   : > { %2866 = vmatmul.bf16.gmra.mxu0 %v7080_v24  ;;  %2915 = vmatmul.bf16.gmra.mxu1 %v7080_v24  ;;  %v4466_v12 = vld [vmem:[%s7733_s3 + $0x18] sm:$0xf]  ;;  %v2134_v10 = vadd.f32 %v6834_v51, %v2085_v8  ;;  %v4460_v23 = vld [vmem:[%s7733_s3 + $0x30] sm:$0xf0] }
 0x2ab   : > { %v5052_v21 = vpop.eup %5051  ;;  %v2386_v57 = vmul.f32 1.442695, %v2359_v62  ;;  %2964 = vmatmul.bf16.gmra.mxu2 %v7080_v24  ;;  %3013 = vmatmul.bf16.gmra.mxu3 %v7080_v24  ;;  %v4491_v62 = vor.u32 %v4918_v5, %v4490_v29  ;;  %v2347_v9 = vld [vmem:[%s6870_s25 + $0x78] sm:$0xff]  ;;  %v7211_v29 = vld [vmem:[%s7759_s4] sm:$0xff] }
 0x2ac   : > { %v2406_v50 = vmul.f32 %v5052_v21, %v2342_v17  ;;  %v2273_v22 = vpop.f32.mrf.mxu2  ;;  %v2177_v27 = vpop.f32.mrf.mxu0  ;;  %3039 = vmatpush.bf16.msrb.mxu0 %v4523_v45  ;;  %v4914_v17 = vld [vmem:[%s7733_s3 + $0x54] sm:$0xf]  ;;  %3138 = vmatpush.bf16.msrb.mxu2 %v4499_v63  ;;  %v7215_v5 = vperm.slane %v7211_v29, 0 }
 0x2ad   : > { %5053 = vpow2.f32 %v2386_v57  ;;  %v2274_v40 = vadd.f32 %v2273_v22, %v2225_v33  ;;  %v2322_v60 = vpop.f32.mrf.mxu3  ;;  %v2226_v43 = vpop.f32.mrf.mxu1  ;;  %v2178_v0 = vadd.f32 %v2177_v27, %v2129_v36  ;;  %v4495_v57 = vor.u32 %v4914_v17, %v4492_v30  ;;  %v4911_v33 = vld [vmem:[%s7733_s3 + $0x34] sm:$0xf0]  ;;  %v4468_v22 = vld [vmem:[%s7733_s3 + $0x38] sm:$0xf0] }
 0x2ae   : > { %v2422_v28 = vadd.f32 %v5074_v42, %v2406_v50  ;;  %v4907_v50 = vld [vmem:[%s7733_s3 + $0x1c] sm:$0xf]  ;;  %v4458_v42 = vld [vmem:[%s7733_s3 + $0x10] sm:$0xf]  ;;  %v7218_v17 = vperm.slane %v7211_v29, 1  ;;  %v7231_v30 = vperm.slane %v7211_v29, 2 }
 0x2af   : > { %v2323_v19 = vadd.f32 %v2322_v60, %v2274_v40  ;;  %v2227_v14 = vadd.f32 %v2226_v43, %v2178_v0  ;;  %v4467_v60 = vor.u32 %v4911_v33, %v4466_v12  ;;  %v4471_v27 = vor.u32 %v4907_v50, %v4468_v22  ;;  %v4906_v43 = vld [vmem:[%s7733_s3 + $0x14] sm:$0xf]  ;;  %3089 = vmatpush.bf16.msrb.mxu1 %v4495_v57 }
 0x2b0   : > { %3400 = vst [vmem:[%s6890_s18 + $0x50] sm:$0xff] %v2422_v28  ;;  %3040 = vmatpush.bf16.msrb.mxu0 %v4491_v62  ;;  %v4463_v45 = vor.u32 %v4906_v43, %v4460_v23  ;;  %v7234_v12 = vperm.slane %v7211_v29, 3 }
 0x2b1   : > { %v2360_v13 = vmul.f32 0.5, %v2323_v19  ;;  %3386 = vst [vmem:[%s6863_s22 + $0x60] sm:$0xff] %v2323_v19  ;;  %v5076_v19 = vld [vmem:[%s6377_s28 + $0x60] sm:$0xff]  ;;  %3139 = vmatpush.bf16.msrb.mxu2 %v4467_v60 }
 0x2b3   : > { %v5054_v35 = vpop.eup %5053  ;;  %v2388_v61 = vmul.f32 1.442695, %v2360_v13  ;;  %3090 = vmatpush.bf16.msrb.mxu1 %v4463_v45 }
 0x2b4   : > { %v2407_v4 = vmul.f32 %v5054_v35, %v2343_v32  ;;  %v2275_v47 = vpop.f32.mrf.mxu2  ;;  %v2180_v18 = vpop.f32.mrf.mxu0 }
 0x2b5   : > { %5055 = vpow2.f32 %v2388_v61  ;;  %v2276_v15 = vadd.f32 %v2275_v47, %v2227_v14  ;;  %v2324_v26 = vpop.f32.mrf.mxu3  ;;  %v2181_v31 = vadd.f32 %v2180_v18, %v6818_v11  ;;  %v2229_v2 = vpop.f32.mrf.mxu1  ;;  %v4915_v11 = vld [vmem:[%s7733_s3 + $0x5c] sm:$0xf] }
 0x2b6   : > { %v2423_v1 = vadd.f32 %v5075_v58, %v2407_v4  ;;  %v4503_v52 = vor.u32 %v4915_v11, %v4500_v16  ;;  %v5079_v11 = vld [vmem:[%s6377_s28 + $0x78] sm:$0xff] }
 0x2b7   : > { %v2325_v39 = vadd.f32 %v2324_v26, %v2276_v15  ;;  %v2230_v59 = vadd.f32 %v2229_v2, %v2181_v31  ;;  %v5077_v15 = vld [vmem:[%s6377_s28 + $0x68] sm:$0xff]  ;;  %v5078_v2 = vld [vmem:[%s6377_s28 + $0x70] sm:$0xff]  ;;  %s5094_s28 = sshra.s32 %s3455_s14, 4  ;;  %s5095_s28 = int_to_ptr.hbm [resolvable:$true] %s5094_s28 }
 0x2b8   : > { %v7125_v44 = vpack.c.bf16 %v2423_v1, %v2422_v28  ;;  %3401 = vst [vmem:[%s6890_s18 + $0x58] sm:$0xff] %v2423_v1  ;;  %3187 = vmatpush.bf16.msrb.mxu3 %v4503_v52  ;;  %v4910_v28 = vld [vmem:[%s7733_s3 + $0x2c] sm:$0xf0]  ;;  %s5096_s1 = scalar_lea.hbm %s5095_s28, 128  ;;  %s5100_s3 = scalar_lea.hbm %s7642_s7, 256 }
 0x2b9   : > { %v2361_v3 = vmul.f32 0.5, %v2325_v39  ;;  %3387 = vst [vmem:[%s6863_s22 + $0x68] sm:$0xff] %v2325_v39  ;;  %v4459_v32 = vor.u32 %v4910_v28, %v4458_v42  ;;  %v2346_v1 = vld [vmem:[%s6870_s25 + $0x70] sm:$0xff]  ;;  %s3663_s25 = sshll.u32 %s6345_s23, 10  ;;  %p5097_p11 = scmp.ne.s32.totalorder %s5095_s28, %s5096_s1 }
 0x2ba   : > { %2871 = vmatmul.bf16.gmra.mxu0 %v7125_v44  ;;  %2920 = vmatmul.bf16.gmra.mxu1 %v7125_v44  ;;  %s7222_s26 = scalar_lea.vmem [#allocation2], %s3663_s25  ;;  %p5101_p0 = scmp.lt.s32.totalorder %s5095_s28, %s7642_s7 }
 0x2bb   : > { %v5056_v6 = vpop.eup %5055  ;;  %v2390_v34 = vmul.f32 1.442695, %v2361_v3  ;;  %2969 = vmatmul.bf16.gmra.mxu2 %v7125_v44  ;;  %3018 = vmatmul.bf16.gmra.mxu3 %v7125_v44  ;;  %p5098_p12 = pnand %p5097_p11, %p5330_p5  ;;  %p5102_p1 = scmp.lt.s32.totalorder %s5100_s3, %s5096_s1 }
 0x2bc   : > { %v2408_v38 = vmul.f32 %v5056_v6, %v2344_v53  ;;  %v2278_v21 = vpop.f32.mrf.mxu2  ;;  %v2182_v40 = vpop.f32.mrf.mxu0  ;;  %3188 = vmatpush.bf16.msrb.mxu3 %v4471_v27  ;;  %3041 = vmatpush.bf16.msrb.mxu0 %v4459_v32 }
 0x2bd   : > { %5057 = vpow2.f32 %v2390_v34  ;;  %v2279_v51 = vadd.f32 %v2278_v21, %v2230_v59  ;;  %v2327_v36 = vpop.f32.mrf.mxu3  ;;  %v2183_v13 = vadd.f32 %v2182_v40, %v2134_v10  ;;  %v2231_v49 = vpop.f32.mrf.mxu1  ;;  %p5099_p13 = pneg %p5098_p12  ;;  %p5103_p2 = por %p5102_p1, %p5101_p0 }
 0x2be   : > { %v2424_v0 = vadd.f32 %v5076_v19, %v2408_v38 }
 0x2bf   : > { %v2328_v56 = vadd.f32 %v2327_v36, %v2279_v51  ;;  %v2232_v61 = vadd.f32 %v2231_v49, %v2183_v13  ;;  %p5104_p3 = pnand %p5103_p2, %p5099_p13 }
 0x2c0   : > { %3402 = vst [vmem:[%s6890_s18 + $0x60] sm:$0xff] %v2424_v0 }
 0x2c1   : > { %v2362_v46 = vmul.f32 0.5, %v2328_v56  ;;  %3388 = vst [vmem:[%s6863_s22 + $0x70] sm:$0xff] %v2328_v56 }
 0x2c3   : > { %v5058_v55 = vpop.eup %5057  ;;  %v2392_v35 = vmul.f32 1.442695, %v2362_v46 }
 0x2c4   : > { %v2409_v14 = vmul.f32 %v5058_v55, %v2345_v7  ;;  %v2280_v4 = vpop.f32.mrf.mxu2 }
 0x2c5   : > { %5059 = vpow2.f32 %v2392_v35  ;;  %v2281_v47 = vadd.f32 %v2280_v4, %v2232_v61  ;;  %v2329_v18 = vpop.f32.mrf.mxu3 }
 0x2c6   : > { %v2425_v26 = vadd.f32 %v5077_v15, %v2409_v14 }
 0x2c7   : > { %v2330_v48 = vadd.f32 %v2329_v18, %v2281_v47 }
 0x2c8   : > { %v7188_v58 = vpack.c.bf16 %v2425_v26, %v2424_v0  ;;  %3403 = vst [vmem:[%s6890_s18 + $0x68] sm:$0xff] %v2425_v26 }
 0x2c9   : > { %v2363_v39 = vmul.f32 0.5, %v2330_v48  ;;  %3389 = vst [vmem:[%s6863_s22 + $0x78] sm:$0xff] %v2330_v48 }
 0x2ca   : > { %2876 = vmatmul.bf16.gmra.mxu0 %v7188_v58  ;;  %2925 = vmatmul.bf16.gmra.mxu1 %v7188_v58 }
 0x2cb   : > { %v5060_v31 = vpop.eup %5059  ;;  %v2394_v8 = vmul.f32 1.442695, %v2363_v39  ;;  %2974 = vmatmul.bf16.gmra.mxu2 %v7188_v58  ;;  %3023 = vmatmul.bf16.gmra.mxu3 %v7188_v58 }
 0x2cc   : > { %v2410_v53 = vmul.f32 %v5060_v31, %v2346_v1 }
 0x2cd   : > { %5061 = vpow2.f32 %v2394_v8 }
 0x2ce   : > { %v2426_v20 = vadd.f32 %v5078_v2, %v2410_v53 }
 0x2d0   : > { %3404 = vst [vmem:[%s6890_s18 + $0x70] sm:$0xff] %v2426_v20 }
 0x2d3   : > { %v5062_v3 = vpop.eup %5061 }
 0x2d4   : > { %v2411_v63 = vmul.f32 %v5062_v3, %v2347_v9 }
 0x2d6   : > { %v2427_v16 = vadd.f32 %v5079_v11, %v2411_v63 }
 0x2d8   : > { %v7201_v52 = vpack.c.bf16 %v2427_v16, %v2426_v20  ;;  %3405 = vst [vmem:[%s6890_s18 + $0x78] sm:$0xff] %v2427_v16 }
 0x2da   : > { %2881 = vmatmul.bf16.gmra.mxu0 %v7201_v52  ;;  %2930 = vmatmul.bf16.gmra.mxu1 %v7201_v52 }
 0x2db   : > { %2979 = vmatmul.bf16.gmra.mxu2 %v7201_v52  ;;  %3028 = vmatmul.bf16.gmra.mxu3 %v7201_v52 }
 0x2e7   : > { %v2847_v6 = vpop.f32.mrf.mxu0  ;;  %v2896_v34 = vpop.f32.mrf.mxu1 }
 0x2e8   : > { %v2848_v59 = vadd.f32 %v2847_v6, %v7215_v5  ;;  %v2897_v62 = vadd.f32 %v2896_v34, %v7218_v17 }
 0x2ea   : > { %3230 = vst [vmem:[%s7222_s26] sm:$0xff] %v2848_v59  ;;  %3042 = vmatmul.bf16.vlgmr.msrb.gmra.mxu0 %v6909_v54  ;;  %3091 = vmatmul.bf16.vlgmr.msrb.gmra.mxu1 %v6909_v54 }
 0x2eb   : > { %3231 = vst [vmem:[%s7222_s26 + $0x8] sm:$0xff] %v2897_v62  ;;  %3140 = vmatmul.bf16.vlgmr.msrb.gmra.mxu2 %v6909_v54  ;;  %3189 = vmatmul.bf16.vlgmr.msrb.gmra.mxu3 %v6909_v54 }
 0x2ee   : > { %v2945_v10 = vpop.f32.mrf.mxu2  ;;  %v2994_v38 = vpop.f32.mrf.mxu3 }
 0x2ef   : > { %v2946_v21 = vadd.f32 %v2945_v10, %v7231_v30  ;;  %v2995_v57 = vadd.f32 %v2994_v38, %v7234_v12  ;;  %v2849_v33 = vpop.f32.mrf.mxu0  ;;  %v2898_v50 = vpop.f32.mrf.mxu1 }
 0x2f0   : > { %v2850_v22 = vadd.f32 %v2849_v33, %v7215_v5  ;;  %v2899_v54 = vadd.f32 %v2898_v50, %v7218_v17 }
 0x2f1   : > { %3232 = vst [vmem:[%s7222_s26 + $0x10] sm:$0xff] %v2946_v21 }
 0x2f2   : > { %3233 = vst [vmem:[%s7222_s26 + $0x18] sm:$0xff] %v2995_v57 }
 0x2f3   : > { %3238 = vst [vmem:[%s7222_s26 + $0x40] sm:$0xff] %v2850_v22 }
 0x2f4   : > { %3239 = vst [vmem:[%s7222_s26 + $0x48] sm:$0xff] %v2899_v54 }
 0x2f6   : > { %v2947_v51 = vpop.f32.mrf.mxu2  ;;  %v2996_v36 = vpop.f32.mrf.mxu3 }
 0x2f7   : > { %v2948_v40 = vadd.f32 %v2947_v51, %v7231_v30  ;;  %v2997_v60 = vadd.f32 %v2996_v36, %v7234_v12  ;;  %v2852_v27 = vpop.f32.mrf.mxu0  ;;  %v2901_v42 = vpop.f32.mrf.mxu1 }
 0x2f8   : > { %v2853_v28 = vadd.f32 %v2852_v27, %v7215_v5  ;;  %v2902_v43 = vadd.f32 %v2901_v42, %v7218_v17 }
 0x2f9   : > { %3240 = vst [vmem:[%s7222_s26 + $0x50] sm:$0xff] %v2948_v40 }
 0x2fa   : > { %3241 = vst [vmem:[%s7222_s26 + $0x58] sm:$0xff] %v2997_v60  ;;  %3047 = vmatmul.bf16.gmra.mxu0 %v6949_v37  ;;  %3096 = vmatmul.bf16.gmra.mxu1 %v6949_v37 }
 0x2fb   : > { %3246 = vst [vmem:[%s7222_s26 + $0x80] sm:$0xff] %v2853_v28  ;;  %3145 = vmatmul.bf16.gmra.mxu2 %v6949_v37  ;;  %3194 = vmatmul.bf16.gmra.mxu3 %v6949_v37 }
 0x2fc   : > { %3247 = vst [vmem:[%s7222_s26 + $0x88] sm:$0xff] %v2902_v43 }
 0x2fe   : > { %v2950_v19 = vpop.f32.mrf.mxu2  ;;  %v2999_v0 = vpop.f32.mrf.mxu3 }
 0x2ff   : > { %v2951_v32 = vadd.f32 %v2950_v19, %v7231_v30  ;;  %v3000_v23 = vadd.f32 %v2999_v0, %v7234_v12  ;;  %v2854_v56 = vpop.f32.mrf.mxu0  ;;  %v2903_v13 = vpop.f32.mrf.mxu1 }
 0x300   : > { %v2855_v45 = vadd.f32 %v2854_v56, %v7215_v5  ;;  %v2904_v7 = vadd.f32 %v2903_v13, %v7218_v17 }
 0x301   : > { %3248 = vst [vmem:[%s7222_s26 + $0x90] sm:$0xff] %v2951_v32 }
 0x302   : > { %3249 = vst [vmem:[%s7222_s26 + $0x98] sm:$0xff] %v3000_v23 }
 0x303   : > { %3254 = vst [vmem:[%s7222_s26 + $0xc0] sm:$0xff] %v2855_v45 }
 0x304   : > { %3255 = vst [vmem:[%s7222_s26 + $0xc8] sm:$0xff] %v2904_v7 }
 0x306   : > { %v2952_v37 = vpop.f32.mrf.mxu2  ;;  %v3001_v46 = vpop.f32.mrf.mxu3 }
 0x307   : > { %v2953_v49 = vadd.f32 %v2952_v37, %v7231_v30  ;;  %v3002_v55 = vadd.f32 %v3001_v46, %v7234_v12  ;;  %v2857_v35 = vpop.f32.mrf.mxu0  ;;  %v2906_v61 = vpop.f32.mrf.mxu1 }
 0x308   : > { %v2858_v14 = vadd.f32 %v2857_v35, %v7215_v5  ;;  %v2907_v4 = vadd.f32 %v2906_v61, %v7218_v17 }
 0x309   : > { %3256 = vst [vmem:[%s7222_s26 + $0xd0] sm:$0xff] %v2953_v49 }
 0x30a   : > { %3257 = vst [vmem:[%s7222_s26 + $0xd8] sm:$0xff] %v3002_v55  ;;  %3052 = vmatmul.bf16.gmra.mxu0 %v6992_v25  ;;  %3101 = vmatmul.bf16.gmra.mxu1 %v6992_v25 }
 0x30b   : > { %3262 = vst [vmem:[%s7222_s26 + $0x100] sm:$0xff] %v2858_v14  ;;  %3150 = vmatmul.bf16.gmra.mxu2 %v6992_v25  ;;  %3199 = vmatmul.bf16.gmra.mxu3 %v6992_v25 }
 0x30c   : > { %3263 = vst [vmem:[%s7222_s26 + $0x108] sm:$0xff] %v2907_v4 }
 0x30e   : > { %v2955_v47 = vpop.f32.mrf.mxu2  ;;  %v3004_v15 = vpop.f32.mrf.mxu3 }
 0x30f   : > { %v2956_v26 = vadd.f32 %v2955_v47, %v7231_v30  ;;  %v3005_v18 = vadd.f32 %v3004_v15, %v7234_v12  ;;  %v2859_v48 = vpop.f32.mrf.mxu0  ;;  %v2908_v1 = vpop.f32.mrf.mxu1 }
 0x310   : > { %v2860_v39 = vadd.f32 %v2859_v48, %v7215_v5  ;;  %v2909_v31 = vadd.f32 %v2908_v1, %v7218_v17 }
 0x311   : > { %3264 = vst [vmem:[%s7222_s26 + $0x110] sm:$0xff] %v2956_v26 }
 0x312   : > { %3265 = vst [vmem:[%s7222_s26 + $0x118] sm:$0xff] %v3005_v18 }
 0x313   : > { %3270 = vst [vmem:[%s7222_s26 + $0x140] sm:$0xff] %v2860_v39 }
 0x314   : > { %3271 = vst [vmem:[%s7222_s26 + $0x148] sm:$0xff] %v2909_v31 }
 0x316   : > { %v2957_v25 = vpop.f32.mrf.mxu2  ;;  %v3006_v8 = vpop.f32.mrf.mxu3 }
 0x317   : > { %v2958_v53 = vadd.f32 %v2957_v25, %v7231_v30  ;;  %v3007_v2 = vadd.f32 %v3006_v8, %v7234_v12  ;;  %v2862_v20 = vpop.f32.mrf.mxu0  ;;  %v2911_v9 = vpop.f32.mrf.mxu1 }
 0x318   : > { %v2863_v3 = vadd.f32 %v2862_v20, %v7215_v5  ;;  %v2912_v63 = vadd.f32 %v2911_v9, %v7218_v17 }
 0x319   : > { %3272 = vst [vmem:[%s7222_s26 + $0x150] sm:$0xff] %v2958_v53 }
 0x31a   : > { %3273 = vst [vmem:[%s7222_s26 + $0x158] sm:$0xff] %v3007_v2  ;;  %3057 = vmatmul.bf16.gmra.mxu0 %v7036_v41  ;;  %3106 = vmatmul.bf16.gmra.mxu1 %v7036_v41 }
 0x31b   : > { %3278 = vst [vmem:[%s7222_s26 + $0x180] sm:$0xff] %v2863_v3  ;;  %3155 = vmatmul.bf16.gmra.mxu2 %v7036_v41  ;;  %3204 = vmatmul.bf16.gmra.mxu3 %v7036_v41 }
 0x31c   : > { %3279 = vst [vmem:[%s7222_s26 + $0x188] sm:$0xff] %v2912_v63 }
 0x31e   : > { %v2960_v11 = vpop.f32.mrf.mxu2  ;;  %v3009_v16 = vpop.f32.mrf.mxu3 }
 0x31f   : > { %v2961_v6 = vadd.f32 %v2960_v11, %v7231_v30  ;;  %v3010_v34 = vadd.f32 %v3009_v16, %v7234_v12  ;;  %v2864_v59 = vpop.f32.mrf.mxu0  ;;  %v2913_v62 = vpop.f32.mrf.mxu1 }
 0x320   : > { %v2865_v10 = vadd.f32 %v2864_v59, %v7215_v5  ;;  %v2914_v38 = vadd.f32 %v2913_v62, %v7218_v17 }
 0x321   : > { %3280 = vst [vmem:[%s7222_s26 + $0x190] sm:$0xff] %v2961_v6 }
 0x322   : > { %3281 = vst [vmem:[%s7222_s26 + $0x198] sm:$0xff] %v3010_v34 }
 0x323   : > { %3286 = vst [vmem:[%s7222_s26 + $0x1c0] sm:$0xff] %v2865_v10 }
 0x324   : > { %3287 = vst [vmem:[%s7222_s26 + $0x1c8] sm:$0xff] %v2914_v38 }
 0x326   : > { %v2962_v41 = vpop.f32.mrf.mxu2  ;;  %v3011_v21 = vpop.f32.mrf.mxu3 }
 0x327   : > { %v2963_v57 = vadd.f32 %v2962_v41, %v7231_v30  ;;  %v3012_v33 = vadd.f32 %v3011_v21, %v7234_v12  ;;  %v2867_v50 = vpop.f32.mrf.mxu0  ;;  %v2916_v22 = vpop.f32.mrf.mxu1 }
 0x328   : > { %v2868_v54 = vadd.f32 %v2867_v50, %v7215_v5  ;;  %v2917_v51 = vadd.f32 %v2916_v22, %v7218_v17 }
 0x329   : > { %3288 = vst [vmem:[%s7222_s26 + $0x1d0] sm:$0xff] %v2963_v57 }
 0x32a   : > { %3289 = vst [vmem:[%s7222_s26 + $0x1d8] sm:$0xff] %v3012_v33  ;;  %3062 = vmatmul.bf16.gmra.mxu0 %v7080_v24  ;;  %3111 = vmatmul.bf16.gmra.mxu1 %v7080_v24 }
 0x32b   : > { %3294 = vst [vmem:[%s7222_s26 + $0x200] sm:$0xff] %v2868_v54  ;;  %3160 = vmatmul.bf16.gmra.mxu2 %v7080_v24  ;;  %3209 = vmatmul.bf16.gmra.mxu3 %v7080_v24  ;;  %v7388_v54 = vperm.slane %v7211_v29, 5 }
 0x32c   : > { %3295 = vst [vmem:[%s7222_s26 + $0x208] sm:$0xff] %v2917_v51 }
 0x32e   : > { %v2965_v36 = vpop.f32.mrf.mxu2  ;;  %v3014_v40 = vpop.f32.mrf.mxu3 }
 0x32f   : > { %v2966_v60 = vadd.f32 %v2965_v36, %v7231_v30  ;;  %v3015_v27 = vadd.f32 %v3014_v40, %v7234_v12  ;;  %v2869_v42 = vpop.f32.mrf.mxu0  ;;  %v2918_v28 = vpop.f32.mrf.mxu1 }
 0x330   : > { %v2870_v43 = vadd.f32 %v2869_v42, %v7215_v5  ;;  %v2919_v19 = vadd.f32 %v2918_v28, %v7218_v17 }
 0x331   : > { %3296 = vst [vmem:[%s7222_s26 + $0x210] sm:$0xff] %v2966_v60 }
 0x332   : > { %3297 = vst [vmem:[%s7222_s26 + $0x218] sm:$0xff] %v3015_v27 }
 0x333   : > { %3302 = vst [vmem:[%s7222_s26 + $0x240] sm:$0xff] %v2870_v43 }
 0x334   : > { %3303 = vst [vmem:[%s7222_s26 + $0x248] sm:$0xff] %v2919_v19 }
 0x336   : > { %v2967_v24 = vpop.f32.mrf.mxu2  ;;  %v3016_v0 = vpop.f32.mrf.mxu3 }
 0x337   : > { %v2968_v32 = vadd.f32 %v2967_v24, %v7231_v30  ;;  %v3017_v23 = vadd.f32 %v3016_v0, %v7234_v12  ;;  %v2872_v56 = vpop.f32.mrf.mxu0  ;;  %v2921_v13 = vpop.f32.mrf.mxu1 }
 0x338   : > { %v2873_v45 = vadd.f32 %v2872_v56, %v7215_v5  ;;  %v2922_v7 = vadd.f32 %v2921_v13, %v7218_v17 }
 0x339   : > { %3304 = vst [vmem:[%s7222_s26 + $0x250] sm:$0xff] %v2968_v32 }
 0x33a   : > { %3305 = vst [vmem:[%s7222_s26 + $0x258] sm:$0xff] %v3017_v23  ;;  %3067 = vmatmul.bf16.gmra.mxu0 %v7125_v44  ;;  %3116 = vmatmul.bf16.gmra.mxu1 %v7125_v44 }
 0x33b   : > { %3310 = vst [vmem:[%s7222_s26 + $0x280] sm:$0xff] %v2873_v45  ;;  %3165 = vmatmul.bf16.gmra.mxu2 %v7125_v44  ;;  %3214 = vmatmul.bf16.gmra.mxu3 %v7125_v44 }
 0x33c   : > { %3311 = vst [vmem:[%s7222_s26 + $0x288] sm:$0xff] %v2922_v7 }
 0x33e   : > { %v2970_v37 = vpop.f32.mrf.mxu2  ;;  %v3019_v46 = vpop.f32.mrf.mxu3 }
 0x33f   : > { %v2971_v49 = vadd.f32 %v2970_v37, %v7231_v30  ;;  %v3020_v55 = vadd.f32 %v3019_v46, %v7234_v12  ;;  %v2874_v35 = vpop.f32.mrf.mxu0  ;;  %v2923_v61 = vpop.f32.mrf.mxu1 }
 0x340   : > { %v2875_v14 = vadd.f32 %v2874_v35, %v7215_v5  ;;  %v2924_v4 = vadd.f32 %v2923_v61, %v7218_v17 }
 0x341   : > { %3312 = vst [vmem:[%s7222_s26 + $0x290] sm:$0xff] %v2971_v49 }
 0x342   : > { %3313 = vst [vmem:[%s7222_s26 + $0x298] sm:$0xff] %v3020_v55 }
 0x343   : > { %3318 = vst [vmem:[%s7222_s26 + $0x2c0] sm:$0xff] %v2875_v14 }
 0x344   : > { %3319 = vst [vmem:[%s7222_s26 + $0x2c8] sm:$0xff] %v2924_v4 }
 0x346   : > { %v2972_v44 = vpop.f32.mrf.mxu2  ;;  %v3021_v47 = vpop.f32.mrf.mxu3 }
 0x347   : > { %v2973_v15 = vadd.f32 %v2972_v44, %v7231_v30  ;;  %v3022_v26 = vadd.f32 %v3021_v47, %v7234_v12  ;;  %v2877_v18 = vpop.f32.mrf.mxu0  ;;  %v2926_v48 = vpop.f32.mrf.mxu1 }
 0x348   : > { %v2878_v1 = vadd.f32 %v2877_v18, %v7215_v5  ;;  %v2927_v39 = vadd.f32 %v2926_v48, %v7218_v17 }
 0x349   : > { %3320 = vst [vmem:[%s7222_s26 + $0x2d0] sm:$0xff] %v2973_v15 }
 0x34a   : > { %3321 = vst [vmem:[%s7222_s26 + $0x2d8] sm:$0xff] %v3022_v26  ;;  %3072 = vmatmul.bf16.gmra.mxu0 %v7188_v58  ;;  %3121 = vmatmul.bf16.gmra.mxu1 %v7188_v58 }
 0x34b   : > { %3326 = vst [vmem:[%s7222_s26 + $0x300] sm:$0xff] %v2878_v1  ;;  %3170 = vmatmul.bf16.gmra.mxu2 %v7188_v58  ;;  %3219 = vmatmul.bf16.gmra.mxu3 %v7188_v58 }
 0x34c   : > { %3327 = vst [vmem:[%s7222_s26 + $0x308] sm:$0xff] %v2927_v39 }
 0x34e   : > { %v2975_v31 = vpop.f32.mrf.mxu2  ;;  %v3024_v25 = vpop.f32.mrf.mxu3 }
 0x34f   : > { %v2976_v8 = vadd.f32 %v2975_v31, %v7231_v30  ;;  %v3025_v53 = vadd.f32 %v3024_v25, %v7234_v12  ;;  %v2879_v2 = vpop.f32.mrf.mxu0  ;;  %v2928_v20 = vpop.f32.mrf.mxu1 }
 0x350   : > { %v2880_v9 = vadd.f32 %v2879_v2, %v7215_v5  ;;  %v2929_v3 = vadd.f32 %v2928_v20, %v7218_v17 }
 0x351   : > { %3328 = vst [vmem:[%s7222_s26 + $0x310] sm:$0xff] %v2976_v8 }
 0x352   : > { %3329 = vst [vmem:[%s7222_s26 + $0x318] sm:$0xff] %v3025_v53 }
 0x353   : > { %3334 = vst [vmem:[%s7222_s26 + $0x340] sm:$0xff] %v2880_v9 }
 0x354   : > { %3335 = vst [vmem:[%s7222_s26 + $0x348] sm:$0xff] %v2929_v3 }
 0x356   : > { %v2977_v58 = vpop.f32.mrf.mxu2  ;;  %v3026_v63 = vpop.f32.mrf.mxu3 }
 0x357   : > { %v2978_v11 = vadd.f32 %v2977_v58, %v7231_v30  ;;  %v3027_v16 = vadd.f32 %v3026_v63, %v7234_v12  ;;  %v2882_v6 = vpop.f32.mrf.mxu0  ;;  %v2931_v34 = vpop.f32.mrf.mxu1 }
 0x358   : > { %v2883_v59 = vadd.f32 %v2882_v6, %v7215_v5  ;;  %v2932_v62 = vadd.f32 %v2931_v34, %v7218_v17 }
 0x359   : > { %3336 = vst [vmem:[%s7222_s26 + $0x350] sm:$0xff] %v2978_v11 }
 0x35a   : > { %3337 = vst [vmem:[%s7222_s26 + $0x358] sm:$0xff] %v3027_v16  ;;  %3077 = vmatmul.bf16.gmra.mxu0 %v7201_v52  ;;  %3126 = vmatmul.bf16.gmra.mxu1 %v7201_v52 }
 0x35b   : > { %3342 = vst [vmem:[%s7222_s26 + $0x380] sm:$0xff] %v2883_v59  ;;  %3175 = vmatmul.bf16.gmra.mxu2 %v7201_v52  ;;  %3224 = vmatmul.bf16.gmra.mxu3 %v7201_v52  ;;  %v7385_v52 = vperm.slane %v7211_v29, 4 }
 0x35c   : > { %3343 = vst [vmem:[%s7222_s26 + $0x388] sm:$0xff] %v2932_v62 }
 0x35e   : > { %v2980_v10 = vpop.f32.mrf.mxu2  ;;  %v3029_v38 = vpop.f32.mrf.mxu3 }
 0x35f   : > { %v2981_v41 = vadd.f32 %v2980_v10, %v7231_v30  ;;  %v3030_v21 = vadd.f32 %v3029_v38, %v7234_v12  ;;  %v2884_v57 = vpop.f32.mrf.mxu0  ;;  %v2933_v33 = vpop.f32.mrf.mxu1 }
 0x360   : > { %v2885_v50 = vadd.f32 %v2884_v57, %v7215_v5  ;;  %v2934_v22 = vadd.f32 %v2933_v33, %v7218_v17 }
 0x361   : > { %3344 = vst [vmem:[%s7222_s26 + $0x390] sm:$0xff] %v2981_v41 }
 0x362   : > { %3345 = vst [vmem:[%s7222_s26 + $0x398] sm:$0xff] %v3030_v21 }
 0x363   : > { %3350 = vst [vmem:[%s7222_s26 + $0x3c0] sm:$0xff] %v2885_v50 }
 0x364   : > { %3351 = vst [vmem:[%s7222_s26 + $0x3c8] sm:$0xff] %v2934_v22 }
 0x366   : > { %v2982_v51 = vpop.f32.mrf.mxu2  ;;  %v3031_v36 = vpop.f32.mrf.mxu3 }
 0x367   : > { %v2983_v5 = vadd.f32 %v2982_v51, %v7231_v30  ;;  %v3032_v17 = vadd.f32 %v3031_v36, %v7234_v12  ;;  %v3043_v40 = vpop.f32.mrf.mxu0  ;;  %v3092_v60 = vpop.f32.mrf.mxu1  ;;  %v7407_v30 = vperm.slane %v7211_v29, 6  ;;  %v7410_v12 = vperm.slane %v7211_v29, 7 }
 0x368   : > { %v3044_v27 = vadd.f32 %v3043_v40, %v7385_v52  ;;  %v3093_v42 = vadd.f32 %v3092_v60, %v7388_v54 }
 0x369   : > { %3352 = vst [vmem:[%s7222_s26 + $0x3d0] sm:$0xff] %v2983_v5 }
 0x36a   : > { %3353 = vst [vmem:[%s7222_s26 + $0x3d8] sm:$0xff] %v3032_v17 }
 0x36b   : > { %3234 = vst [vmem:[%s7222_s26 + $0x20] sm:$0xff] %v3044_v27 }
 0x36c   : > { %3235 = vst [vmem:[%s7222_s26 + $0x28] sm:$0xff] %v3093_v42 }
 0x36d   : > { %5107 = shalt.err (!%p5104_p3)
}
 0x36e   : > { %s5236_s16 = smov 128   ;;  %s5237_s21 = smov 8   ;;  %v3141_v29 = vpop.f32.mrf.mxu2  ;;  %v3190_v28 = vpop.f32.mrf.mxu3 }
 0x36f   : > { %4974 = dma.vmem_to_hbm [thread:$0]  (%p5330_p5), %s3453_s29, 2048, %s3455_s14, %s7417_s0, %s5236_s16, %s5236_s16, %s5237_s21   ;;  %v3142_v43 = vadd.f32 %v3141_v29, %v7407_v30  ;;  %v3191_v19 = vadd.f32 %v3190_v28, %v7410_v12  ;;  %v3045_v24 = vpop.f32.mrf.mxu0  ;;  %v3094_v0 = vpop.f32.mrf.mxu1 }
 0x370   : > { %s7433_s1 = sshll.u32 %s3468_s17, 4  ;;  %v3046_v32 = vadd.f32 %v3045_v24, %v7385_v52  ;;  %v3095_v23 = vadd.f32 %v3094_v0, %v7388_v54  ;;  %s3469_s2 = sshll.u32 %s6863_s22, 4  ;;  %s3472_s1 = int_to_ptr.hbm [resolvable:$true] %s7433_s1  ;;  %s3470_s2 = int_to_ptr.vmem [resolvable:$true] %s3469_s2 }
 0x371   : > { %3236 = vst [vmem:[%s7222_s26 + $0x30] sm:$0xff] %v3142_v43  ;;  %s3485_s5 = scalar_lea.hbm %s7644_s9, %s7391_s24  ;;  %s3486_s29 = sshll.u32 %s6890_s18, 4  ;;  %s7450_s29 = int_to_ptr.vmem [resolvable:$true] %s3486_s29 }
 0x372   : > { %3237 = vst [vmem:[%s7222_s26 + $0x38] sm:$0xff] %v3191_v19  ;;  %s7452_s14 = sshll.u32 %s3485_s5, 4  ;;  %s5122_s25 = sshra.s32 %s3472_s1, 4  ;;  %s5123_s25 = int_to_ptr.hbm [resolvable:$true] %s5122_s25  ;;  %s3489_s14 = int_to_ptr.hbm [resolvable:$true] %s7452_s14 }
 0x373   : > { %3242 = vst [vmem:[%s7222_s26 + $0x60] sm:$0xff] %v3046_v32  ;;  %s5124_s17 = scalar_lea.hbm %s5123_s25, 128  ;;  %s5128_s27 = scalar_lea.hbm %s7643_s8, 256 }
 0x374   : > { %3243 = vst [vmem:[%s7222_s26 + $0x68] sm:$0xff] %v3095_v23  ;;  %p5125_p4 = scmp.ne.s32.totalorder %s5123_s25, %s5124_s17  ;;  %p5129_p9 = scmp.lt.s32.totalorder %s5123_s25, %s7643_s8 }
 0x375   : > { %p5130_p10 = scmp.lt.s32.totalorder %s5128_s27, %s5124_s17 }
 0x376   : > { %p5126_p7 = pnand %p5125_p4, %p5330_p5 }
 0x377   : > { %p5131_p11 = por %p5130_p10, %p5129_p9 }
 0x378   : > { %p5127_p8 = pneg %p5126_p7 }
 0x37a   : > { %p5132_p12 = pnand %p5131_p11, %p5127_p8 }
 0x37c   : > { %5135 = shalt.err (!%p5132_p12)
}
 0x37d   : > { %4975 = dma.vmem_to_hbm [thread:$0]  (%p5330_p5), %s3470_s2, 2048, %s3472_s1, %s7417_s0, %s5236_s16, %s5236_s16, %s5237_s21   ;;  %v3143_v56 = vpop.f32.mrf.mxu2  ;;  %v3192_v13 = vpop.f32.mrf.mxu3 }
 0x37e   : > { %v3144_v45 = vadd.f32 %v3143_v56, %v7407_v30  ;;  %v3193_v7 = vadd.f32 %v3192_v13, %v7410_v12  ;;  %v3048_v37 = vpop.f32.mrf.mxu0  ;;  %v3097_v46 = vpop.f32.mrf.mxu1  ;;  %s3422_s18 = scalar_lea.sflag [#allocation8], %s6345_s23  ;;  %s5150_s4 = sshra.s32 %s3489_s14, 4  ;;  %s5151_s4 = int_to_ptr.hbm [resolvable:$true] %s5150_s4 }
 0x37f   : > { %s5152_s5 = scalar_lea.hbm %s5151_s4, 128  ;;  %s5156_s0 = scalar_lea.hbm %s7644_s9, 256 }
 0x380   : > { %p5153_p13 = scmp.ne.s32.totalorder %s5151_s4, %s5152_s5  ;;  %p5157_p2 = scmp.lt.s32.totalorder %s5151_s4, %s7644_s9 }
 0x381   : > { %p5158_p3 = scmp.lt.s32.totalorder %s5156_s0, %s5152_s5 }
 0x382   : > { %p5154_p0 = pnand %p5153_p13, %p5330_p5 }
 0x383   : > { %p5159_p4 = por %p5158_p3, %p5157_p2 }
 0x384   : > { %p5155_p1 = pneg %p5154_p0 }
 0x386   : > { %p5160_p7 = pnand %p5159_p4, %p5155_p1 }
 0x388   : > { %5163 = shalt.err (!%p5160_p7)
}
 0x389   : > { %4976 = dma.vmem_to_hbm [thread:$0]  (%p5330_p5), %s7450_s29, 2048, %s3489_s14, %s3422_s18, %s5236_s16, %s5236_s16, %s5237_s21   ;;  %v3049_v49 = vadd.f32 %v3048_v37, %v7385_v52  ;;  %v3098_v55 = vadd.f32 %v3097_v46, %v7388_v54  ;;  %v3146_v35 = vpop.f32.mrf.mxu2  ;;  %v3195_v61 = vpop.f32.mrf.mxu3 }
 0x38a   : > { %3244 = vst [vmem:[%s7222_s26 + $0x70] sm:$0xff] %v3144_v45  ;;  %v3147_v14 = vadd.f32 %v3146_v35, %v7407_v30  ;;  %v3196_v4 = vadd.f32 %v3195_v61, %v7410_v12  ;;  %v3050_v44 = vpop.f32.mrf.mxu0  ;;  %v3099_v47 = vpop.f32.mrf.mxu1  ;;  %s4969_s16 = sshll.u32 %s5311_s13, 10  ;;  %s3435_s22 = sshll.u32 %s7222_s26, 4  ;;  %s3436_s22 = int_to_ptr.vmem [resolvable:$true] %s3435_s22 }
 0x38b   : > { %3245 = vst [vmem:[%s7222_s26 + $0x78] sm:$0xff] %v3193_v7  ;;  %v3051_v15 = vadd.f32 %v3050_v44, %v7385_v52  ;;  %v3100_v26 = vadd.f32 %v3099_v47, %v7388_v54  ;;  %s3434_s14 = scalar_lea.hbm %s7641_s6, %s4969_s16  ;;  %s3407_s13 = scalar_lea.sflag [#allocation3], %s6345_s23 }
 0x38c   : > { %3250 = vst [vmem:[%s7222_s26 + $0xa0] sm:$0xff] %v3049_v49  ;;  %s3437_s28 = sshll.u32 %s3434_s14, 4  ;;  %s5184_s4 = scalar_lea.hbm %s7641_s6, 2048  ;;  %s3438_s28 = int_to_ptr.hbm [resolvable:$true] %s3437_s28 }
 0x38d   : > { %3251 = vst [vmem:[%s7222_s26 + $0xa8] sm:$0xff] %v3098_v55  ;;  %s5178_s27 = sshra.s32 %s3438_s28, 4  ;;  %s5179_s27 = int_to_ptr.hbm [resolvable:$true] %s5178_s27 }
 0x38e   : > { %3252 = vst [vmem:[%s7222_s26 + $0xb0] sm:$0xff] %v3147_v14  ;;  %s5180_s24 = scalar_lea.hbm %s5179_s27, 1024  ;;  %p5185_p11 = scmp.lt.s32.totalorder %s5179_s27, %s7641_s6 }
 0x38f   : > { %3253 = vst [vmem:[%s7222_s26 + $0xb8] sm:$0xff] %v3196_v4  ;;  %p5181_p8 = scmp.ne.s32.totalorder %s5179_s27, %s5180_s24  ;;  %p5186_p12 = scmp.lt.s32.totalorder %s5184_s4, %s5180_s24 }
 0x390   : > { %3258 = vst [vmem:[%s7222_s26 + $0xe0] sm:$0xff] %v3051_v15 }
 0x391   : > { %3259 = vst [vmem:[%s7222_s26 + $0xe8] sm:$0xff] %v3100_v26  ;;  %v3148_v18 = vpop.f32.mrf.mxu2  ;;  %v3197_v48 = vpop.f32.mrf.mxu3  ;;  %p5182_p9 = pnand %p5181_p8, %p5330_p5  ;;  %p5187_p13 = por %p5186_p12, %p5185_p11 }
 0x392   : > { %v3149_v1 = vadd.f32 %v3148_v18, %v7407_v30  ;;  %v3198_v39 = vadd.f32 %v3197_v48, %v7410_v12  ;;  %v3053_v31 = vpop.f32.mrf.mxu0  ;;  %v3102_v25 = vpop.f32.mrf.mxu1 }
 0x393   : > { %v3054_v8 = vadd.f32 %v3053_v31, %v7385_v52  ;;  %v3103_v53 = vadd.f32 %v3102_v25, %v7388_v54  ;;  %p5183_p10 = pneg %p5182_p9 }
 0x394   : > { %3260 = vst [vmem:[%s7222_s26 + $0xf0] sm:$0xff] %v3149_v1 }
 0x395   : > { %3261 = vst [vmem:[%s7222_s26 + $0xf8] sm:$0xff] %v3198_v39  ;;  %p5188_p0 = pnand %p5187_p13, %p5183_p10 }
 0x396   : > { %3266 = vst [vmem:[%s7222_s26 + $0x120] sm:$0xff] %v3054_v8 }
 0x397   : > { %3267 = vst [vmem:[%s7222_s26 + $0x128] sm:$0xff] %v3103_v53 }
 0x399   : > { %v3151_v2 = vpop.f32.mrf.mxu2  ;;  %v3200_v20 = vpop.f32.mrf.mxu3 }
 0x39a   : > { %v3152_v9 = vadd.f32 %v3151_v2, %v7407_v30  ;;  %v3201_v3 = vadd.f32 %v3200_v20, %v7410_v12  ;;  %v3055_v58 = vpop.f32.mrf.mxu0  ;;  %v3104_v63 = vpop.f32.mrf.mxu1 }
 0x39b   : > { %v3056_v11 = vadd.f32 %v3055_v58, %v7385_v52  ;;  %v3105_v16 = vadd.f32 %v3104_v63, %v7388_v54 }
 0x39c   : > { %3268 = vst [vmem:[%s7222_s26 + $0x130] sm:$0xff] %v3152_v9 }
 0x39d   : > { %3269 = vst [vmem:[%s7222_s26 + $0x138] sm:$0xff] %v3201_v3 }
 0x39e   : > { %3274 = vst [vmem:[%s7222_s26 + $0x160] sm:$0xff] %v3056_v11 }
 0x39f   : > { %3275 = vst [vmem:[%s7222_s26 + $0x168] sm:$0xff] %v3105_v16 }
 0x3a1   : > { %v3153_v6 = vpop.f32.mrf.mxu2  ;;  %v3202_v34 = vpop.f32.mrf.mxu3 }
 0x3a2   : > { %v3154_v59 = vadd.f32 %v3153_v6, %v7407_v30  ;;  %v3203_v62 = vadd.f32 %v3202_v34, %v7410_v12  ;;  %v3058_v10 = vpop.f32.mrf.mxu0  ;;  %v3107_v38 = vpop.f32.mrf.mxu1 }
 0x3a3   : > { %v3059_v41 = vadd.f32 %v3058_v10, %v7385_v52  ;;  %v3108_v21 = vadd.f32 %v3107_v38, %v7388_v54 }
 0x3a4   : > { %3276 = vst [vmem:[%s7222_s26 + $0x170] sm:$0xff] %v3154_v59 }
 0x3a5   : > { %3277 = vst [vmem:[%s7222_s26 + $0x178] sm:$0xff] %v3203_v62 }
 0x3a6   : > { %3282 = vst [vmem:[%s7222_s26 + $0x1a0] sm:$0xff] %v3059_v41 }
 0x3a7   : > { %3283 = vst [vmem:[%s7222_s26 + $0x1a8] sm:$0xff] %v3108_v21 }
 0x3a9   : > { %v3156_v57 = vpop.f32.mrf.mxu2  ;;  %v3205_v33 = vpop.f32.mrf.mxu3 }
 0x3aa   : > { %v3157_v50 = vadd.f32 %v3156_v57, %v7407_v30  ;;  %v3206_v22 = vadd.f32 %v3205_v33, %v7410_v12  ;;  %v3060_v51 = vpop.f32.mrf.mxu0  ;;  %v3109_v36 = vpop.f32.mrf.mxu1 }
 0x3ab   : > { %v3061_v5 = vadd.f32 %v3060_v51, %v7385_v52  ;;  %v3110_v17 = vadd.f32 %v3109_v36, %v7388_v54 }
 0x3ac   : > { %3284 = vst [vmem:[%s7222_s26 + $0x1b0] sm:$0xff] %v3157_v50 }
 0x3ad   : > { %3285 = vst [vmem:[%s7222_s26 + $0x1b8] sm:$0xff] %v3206_v22 }
 0x3ae   : > { %3290 = vst [vmem:[%s7222_s26 + $0x1e0] sm:$0xff] %v3061_v5 }
 0x3af   : > { %3291 = vst [vmem:[%s7222_s26 + $0x1e8] sm:$0xff] %v3110_v17 }
 0x3b1   : > { %v3158_v40 = vpop.f32.mrf.mxu2  ;;  %v3207_v60 = vpop.f32.mrf.mxu3 }
 0x3b2   : > { %v3159_v27 = vadd.f32 %v3158_v40, %v7407_v30  ;;  %v3208_v42 = vadd.f32 %v3207_v60, %v7410_v12  ;;  %v3063_v29 = vpop.f32.mrf.mxu0  ;;  %v3112_v28 = vpop.f32.mrf.mxu1 }
 0x3b3   : > { %v3064_v43 = vadd.f32 %v3063_v29, %v7385_v52  ;;  %v3113_v19 = vadd.f32 %v3112_v28, %v7388_v54 }
 0x3b4   : > { %3292 = vst [vmem:[%s7222_s26 + $0x1f0] sm:$0xff] %v3159_v27 }
 0x3b5   : > { %3293 = vst [vmem:[%s7222_s26 + $0x1f8] sm:$0xff] %v3208_v42 }
 0x3b6   : > { %3298 = vst [vmem:[%s7222_s26 + $0x220] sm:$0xff] %v3064_v43 }
 0x3b7   : > { %3299 = vst [vmem:[%s7222_s26 + $0x228] sm:$0xff] %v3113_v19 }
 0x3b9   : > { %v3161_v24 = vpop.f32.mrf.mxu2  ;;  %v3210_v0 = vpop.f32.mrf.mxu3 }
 0x3ba   : > { %v3162_v32 = vadd.f32 %v3161_v24, %v7407_v30  ;;  %v3211_v23 = vadd.f32 %v3210_v0, %v7410_v12  ;;  %v3065_v56 = vpop.f32.mrf.mxu0  ;;  %v3114_v13 = vpop.f32.mrf.mxu1 }
 0x3bb   : > { %v3066_v45 = vadd.f32 %v3065_v56, %v7385_v52  ;;  %v3115_v7 = vadd.f32 %v3114_v13, %v7388_v54 }
 0x3bc   : > { %3300 = vst [vmem:[%s7222_s26 + $0x230] sm:$0xff] %v3162_v32 }
 0x3bd   : > { %3301 = vst [vmem:[%s7222_s26 + $0x238] sm:$0xff] %v3211_v23 }
 0x3be   : > { %3306 = vst [vmem:[%s7222_s26 + $0x260] sm:$0xff] %v3066_v45 }
 0x3bf   : > { %3307 = vst [vmem:[%s7222_s26 + $0x268] sm:$0xff] %v3115_v7 }
 0x3c1   : > { %v3163_v37 = vpop.f32.mrf.mxu2  ;;  %v3212_v46 = vpop.f32.mrf.mxu3 }
 0x3c2   : > { %v3164_v49 = vadd.f32 %v3163_v37, %v7407_v30  ;;  %v3213_v55 = vadd.f32 %v3212_v46, %v7410_v12  ;;  %v3068_v35 = vpop.f32.mrf.mxu0  ;;  %v3117_v61 = vpop.f32.mrf.mxu1 }
 0x3c3   : > { %v3069_v14 = vadd.f32 %v3068_v35, %v7385_v52  ;;  %v3118_v4 = vadd.f32 %v3117_v61, %v7388_v54 }
 0x3c4   : > { %3308 = vst [vmem:[%s7222_s26 + $0x270] sm:$0xff] %v3164_v49 }
 0x3c5   : > { %3309 = vst [vmem:[%s7222_s26 + $0x278] sm:$0xff] %v3213_v55 }
 0x3c6   : > { %3314 = vst [vmem:[%s7222_s26 + $0x2a0] sm:$0xff] %v3069_v14 }
 0x3c7   : > { %3315 = vst [vmem:[%s7222_s26 + $0x2a8] sm:$0xff] %v3118_v4 }
 0x3c9   : > { %v3166_v44 = vpop.f32.mrf.mxu2  ;;  %v3215_v47 = vpop.f32.mrf.mxu3 }
 0x3ca   : > { %v3167_v15 = vadd.f32 %v3166_v44, %v7407_v30  ;;  %v3216_v26 = vadd.f32 %v3215_v47, %v7410_v12  ;;  %v3070_v18 = vpop.f32.mrf.mxu0  ;;  %v3119_v48 = vpop.f32.mrf.mxu1 }
 0x3cb   : > { %v3071_v1 = vadd.f32 %v3070_v18, %v7385_v52  ;;  %v3120_v39 = vadd.f32 %v3119_v48, %v7388_v54 }
 0x3cc   : > { %3316 = vst [vmem:[%s7222_s26 + $0x2b0] sm:$0xff] %v3167_v15 }
 0x3cd   : > { %3317 = vst [vmem:[%s7222_s26 + $0x2b8] sm:$0xff] %v3216_v26 }
 0x3ce   : > { %3322 = vst [vmem:[%s7222_s26 + $0x2e0] sm:$0xff] %v3071_v1 }
 0x3cf   : > { %3323 = vst [vmem:[%s7222_s26 + $0x2e8] sm:$0xff] %v3120_v39 }
 0x3d1   : > { %v3168_v31 = vpop.f32.mrf.mxu2  ;;  %v3217_v25 = vpop.f32.mrf.mxu3 }
 0x3d2   : > { %v3169_v8 = vadd.f32 %v3168_v31, %v7407_v30  ;;  %v3218_v53 = vadd.f32 %v3217_v25, %v7410_v12  ;;  %v3073_v2 = vpop.f32.mrf.mxu0  ;;  %v3122_v20 = vpop.f32.mrf.mxu1 }
 0x3d3   : > { %v3074_v9 = vadd.f32 %v3073_v2, %v7385_v52  ;;  %v3123_v3 = vadd.f32 %v3122_v20, %v7388_v54 }
 0x3d4   : > { %3324 = vst [vmem:[%s7222_s26 + $0x2f0] sm:$0xff] %v3169_v8 }
 0x3d5   : > { %3325 = vst [vmem:[%s7222_s26 + $0x2f8] sm:$0xff] %v3218_v53 }
 0x3d6   : > { %3330 = vst [vmem:[%s7222_s26 + $0x320] sm:$0xff] %v3074_v9 }
 0x3d7   : > { %3331 = vst [vmem:[%s7222_s26 + $0x328] sm:$0xff] %v3123_v3 }
 0x3d9   : > { %v3171_v58 = vpop.f32.mrf.mxu2  ;;  %v3220_v63 = vpop.f32.mrf.mxu3 }
 0x3da   : > { %v3172_v11 = vadd.f32 %v3171_v58, %v7407_v30  ;;  %v3221_v16 = vadd.f32 %v3220_v63, %v7410_v12  ;;  %v3075_v6 = vpop.f32.mrf.mxu0  ;;  %v3124_v34 = vpop.f32.mrf.mxu1 }
 0x3db   : > { %v3076_v59 = vadd.f32 %v3075_v6, %v7385_v52  ;;  %v3125_v62 = vadd.f32 %v3124_v34, %v7388_v54 }
 0x3dc   : > { %3332 = vst [vmem:[%s7222_s26 + $0x330] sm:$0xff] %v3172_v11 }
 0x3dd   : > { %3333 = vst [vmem:[%s7222_s26 + $0x338] sm:$0xff] %v3221_v16 }
 0x3de   : > { %3338 = vst [vmem:[%s7222_s26 + $0x360] sm:$0xff] %v3076_v59 }
 0x3df   : > { %3339 = vst [vmem:[%s7222_s26 + $0x368] sm:$0xff] %v3125_v62 }
 0x3e1   : > { %v3173_v10 = vpop.f32.mrf.mxu2  ;;  %v3222_v38 = vpop.f32.mrf.mxu3 }
 0x3e2   : > { %v3174_v41 = vadd.f32 %v3173_v10, %v7407_v30  ;;  %v3223_v21 = vadd.f32 %v3222_v38, %v7410_v12  ;;  %v3078_v57 = vpop.f32.mrf.mxu0  ;;  %v3127_v33 = vpop.f32.mrf.mxu1 }
 0x3e3   : > { %v3079_v50 = vadd.f32 %v3078_v57, %v7385_v52  ;;  %v3128_v22 = vadd.f32 %v3127_v33, %v7388_v54 }
 0x3e4   : > { %3340 = vst [vmem:[%s7222_s26 + $0x370] sm:$0xff] %v3174_v41 }
 0x3e5   : > { %3341 = vst [vmem:[%s7222_s26 + $0x378] sm:$0xff] %v3223_v21 }
 0x3e6   : > { %3346 = vst [vmem:[%s7222_s26 + $0x3a0] sm:$0xff] %v3079_v50 }
 0x3e7   : > { %3347 = vst [vmem:[%s7222_s26 + $0x3a8] sm:$0xff] %v3128_v22 }
 0x3e9   : > { %v3176_v51 = vpop.f32.mrf.mxu2  ;;  %v3225_v36 = vpop.f32.mrf.mxu3 }
 0x3ea   : > { %v3177_v5 = vadd.f32 %v3176_v51, %v7407_v30  ;;  %v3226_v17 = vadd.f32 %v3225_v36, %v7410_v12  ;;  %v3080_v40 = vpop.f32.mrf.mxu0  ;;  %v3129_v60 = vpop.f32.mrf.mxu1 }
 0x3eb   : > { %v3081_v27 = vadd.f32 %v3080_v40, %v7385_v52  ;;  %v3130_v42 = vadd.f32 %v3129_v60, %v7388_v54 }
 0x3ec   : > { %3348 = vst [vmem:[%s7222_s26 + $0x3b0] sm:$0xff] %v3177_v5 }
 0x3ed   : > { %3349 = vst [vmem:[%s7222_s26 + $0x3b8] sm:$0xff] %v3226_v17 }
 0x3ee   : > { %3354 = vst [vmem:[%s7222_s26 + $0x3e0] sm:$0xff] %v3081_v27 }
 0x3ef   : > { %3355 = vst [vmem:[%s7222_s26 + $0x3e8] sm:$0xff] %v3130_v42 }
 0x3f1   : > { %v3178_v29 = vpop.f32.mrf.mxu2  ;;  %v3227_v28 = vpop.f32.mrf.mxu3 }
 0x3f2   : > { %v3179_v43 = vadd.f32 %v3178_v29, %v7407_v30  ;;  %v3228_v52 = vadd.f32 %v3227_v28, %v7410_v12 }
 0x3f4   : > { %3356 = vst [vmem:[%s7222_s26 + $0x3f0] sm:$0xff] %v3179_v43 }
 0x3f5   : > { %3357 = vst [vmem:[%s7222_s26 + $0x3f8] sm:$0xff] %v3228_v52 }
 0x3f6   : > { %5191 = shalt.err (!%p5188_p0)
}
 0x3f7   : > { %s5238_s23 = smov 1024   ;;  %s5239_s26 = smov 64  }
 0x3f8   : > { %4973 = dma.vmem_to_hbm [thread:$0]  (%p5330_p5), %s3436_s22, 16384, %s3438_s28, %s3407_s13, %s5238_s23, %s5238_s23, %s5239_s26  }
 0x3f9 PF: > { %p4994_p1 = scmp.ge.s32.totalorder %s5234_s12, 2  ;;  %s3503_s17 = sand.u32 1, %s5222_s30  }
 0x3fa   : > { %s3504_s0 = scalar_lea.sflag [#allocation3], %s3503_s17 }
 0x3fb   : > { %p4982_p2 = pnand %p4994_p1, %p5334_p6 }
 0x3fd   : > { %p4983_p3 = pneg %p4982_p2 }
 0x3ff   : > { %5209 = dma.done.wait (%p4983_p3), %s3504_s0, 16384  }
 0x400   : > { %5211 = vsyncadd (%p4983_p3), %s3504_s0, 4294950912  ;;  %s7760_s1 = sadd.s32 4294967294, %s5234_s12  }
 0x401   : > { %s3513_s2 = sand.u32 1, %s7760_s1  }
 0x402   : > { %s3514_s16 = scalar_lea.sflag [#allocation5], %s3513_s2 }
 0x403   : > { %5213 = dma.done.wait (%p4983_p3), %s3514_s16, 4096  }
 0x404   : > { %5215 = vsyncadd (%p4983_p3), %s3514_s16, 4294963200  ;;  %s3534_s19 = scalar_lea.sflag [#allocation8], %s3503_s17 }
 0x405   : > { %5217 = dma.done.wait (%p4983_p3), %s3534_s19, 2048  }
 0x406   : > { %5219 = vsyncadd (%p4983_p3), %s3534_s19, 4294965248  ;;  %s7761_s21 = sld [smem:[#allocation12_spill]]  ;;  %p26_p5 = scmp.ge.s32.totalorder %s5315_s15, 4  }
 0x407   : > { %s7762_s30 = smov %s5226_s10  ;;  %s7763_s10 = smov %s5230_s11 }
 0x408   : > { %s7765_s12 = smov %s5315_s15  ;;  %28 = sbr.rel (!%p26_p5) target bundleno = 14 (0xe), region = 131 }
 0x40c   : > { %s7764_s11 = smov %s7761_s21 }
 0x40d   :  { %3540 = vsyncpa [#allocation3], 1 }
 0x40e   :  { %3542 = vsyncpa [#allocation3 + $0x1], 1 }
 0x40f   :  { %3543 = vsyncpa [#allocation5], 1 }
 0x410   :  { %3545 = vsyncpa [#allocation5 + $0x1], 1 }
 0x411   :  { %3546 = vsyncpa [#allocation8], 1 }
 0x412   :  { %3548 = vsyncpa [#allocation8 + $0x1], 1 }

</bundles_post_ra>
